<compile_context>
chip_gen: v5e
topology: v5e:2x2
jax: 0.10.0
libtpu: 0.0.40
codegen_flags: <defaults>
</compile_context>

<pallas_src>
import functools

import numpy as np

import jax
import jax.numpy as jnp
from jax.experimental import pallas as pl
from jax.experimental.pallas import tpu as pltpu


# ----------------------------- Pallas kernel -----------------------------

def _block_kernel(xo_ref, xe_ref, t1_ref, b1_ref, t2_ref, b2_ref, t3_ref,
                  tsk_ref, b3_ref, *rest, n, ho, head):
    """One whole Detector.Block (optionally + classifier head), fused.

    Layout: every activation is a 2-D (rows, lanes) array with rows = image
    rows (H) and lanes = (w, c) flattened (width-major, channel-minor).
    3x3 convs are 3 accumulated MXU dots against banded-Toeplitz weights
    (one per kernel row tap); H padding lives in the f32 VMEM scratch
    `pad_ref` (zero border rows), W padding is encoded in the Toeplitz zeros.
    """
    if head:
        wcls_ref, bcls_ref, o_ref, pad_ref = rest
    else:
        o_ref, pad_ref = rest

    f32 = jnp.float32
    bf16 = jnp.bfloat16

    # Zero once: interior rows are fully overwritten below, border rows stay 0.
    pad_ref[...] = jnp.zeros_like(pad_ref)

    # ---- conv1 (3x3, stride 2) + folded BN1 + ReLU ------------------------
    # Row taps di=0,1,2 map to input rows 2i-1 / 2i / 2i+1, i.e. odd[i],
    # even[i], odd[i+1] of the wrapper-prepared row splits.
    b1 = b1_ref[...]
    for img in range(n):
        ro, re, rp = img * (ho + 1), img * ho, img * (ho + 2)
        acc = jnp.dot(xo_ref[ro:ro + ho, :], t1_ref[0], preferred_element_type=f32)
        acc += jnp.dot(xe_ref[re:re + ho, :], t1_ref[1], preferred_element_type=f32)
        acc += jnp.dot(xo_ref[ro + 1:ro + 1 + ho, :], t1_ref[2], preferred_element_type=f32)
        pad_ref[rp + 1:rp + 1 + ho, :] = jnp.maximum(acc + b1, 0.0)

    # ---- conv2 (3x3, stride 1) + folded BN2 + ReLU ------------------------
    b2 = b2_ref[...]
    y2s = []
    for img in range(n):
        rp = img * (ho + 2)
        acc = jnp.dot(pad_ref[rp:rp + ho, :].astype(bf16), t2_ref[0], preferred_element_type=f32)
        acc += jnp.dot(pad_ref[rp + 1:rp + 1 + ho, :].astype(bf16), t2_ref[1], preferred_element_type=f32)
        acc += jnp.dot(pad_ref[rp + 2:rp + 2 + ho, :].astype(bf16), t2_ref[2], preferred_element_type=f32)
        y2s.append(jnp.maximum(acc + b2, 0.0))
    for img in range(n):
        rp = img * (ho + 2)
        pad_ref[rp + 1:rp + 1 + ho, :] = y2s[img]

    # ---- conv3 (3x3, stride 1) + folded BN3 + skip (1x1 stride 2) + ReLU ---
    b3 = b3_ref[...]
    for img in range(n):
        rp, re = img * (ho + 2), img * ho
        acc = jnp.dot(pad_ref[rp:rp + ho, :].astype(bf16), t3_ref[0], preferred_element_type=f32)
        acc += jnp.dot(pad_ref[rp + 1:rp + 1 + ho, :].astype(bf16), t3_ref[1], preferred_element_type=f32)
        acc += jnp.dot(pad_ref[rp + 2:rp + 2 + ho, :].astype(bf16), t3_ref[2], preferred_element_type=f32)
        # skip: 1x1 stride-2 conv == one extra dot on the even-row input.
        acc += jnp.dot(xe_ref[re:re + ho, :], tsk_ref[...], preferred_element_type=f32)
        y3 = jnp.maximum(acc + b3, 0.0)
        if head:
            # Final feature map is 1 pixel wide -> lanes are exactly channels,
            # spatial mean is a row mean.  Linear + sigmoid fused here.
            feat = jnp.sum(y3, axis=0, keepdims=True) * (1.0 / ho)
            logit = jnp.dot(feat.astype(bf16), wcls_ref[...],
                            preferred_element_type=f32) + bcls_ref[...]
            o_ref[img:img + 1, :] = 1.0 / (1.0 + jnp.exp(-logit))
        else:
            o_ref[img] = y3.astype(o_ref.dtype)


# ----------------------------- kernel wrapper -----------------------------

def _full_spec(shape):
    zero = (0,) * len(shape)
    return pl.BlockSpec(tuple(shape), lambda i, _z=zero: _z)


def _split_even_odd_rows(y):
    """y: (N, H, K) -> even rows (N*H/2, K) and odd rows with a leading zero
    row per image (N*(H/2+1), K); these feed the in-kernel stride-2 conv."""
    N, H, K = y.shape
    ho = H // 2
    xe = y[:, 0::2, :].reshape(N * ho, K)
    yp = jnp.pad(y, ((0, 0), (1, 0), (0, 0)))
    xo = yp[:, 0::2, :].reshape(N * (ho + 1), K)
    return xe, xo


def block_forward(y, p, *, head=None):
    """One Detector.Block as a single pallas_call.

    y: (N, H, W*C_in) bf16, lane order (w, c).  Returns (N, H/2, W/2*C_out)
    bf16, or the (N, n_out) f32 sigmoid output when `head` is given.
    """
    N, H, _ = y.shape
    ho = H // 2
    L = p["t2"].shape[-1]                       # W_out * C_out (== 128 here)
    xe, xo = _split_even_odd_rows(y)

    operands = [xo, xe, p["t1"], p["b1"], p["t2"], p["b2"], p["t3"],
                p["tskip"], p["b3"]]
    if head is not None:
        wcls, bcls = head
        operands += [wcls, bcls]
        out_shape = jax.ShapeDtypeStruct((N, bcls.shape[-1]), jnp.float32)
    else:
        out_shape = jax.ShapeDtypeStruct((N, ho, L), jnp.bfloat16)

    kern = functools.partial(_block_kernel, n=N, ho=ho, head=head is not None)
    return pl.pallas_call(
        kern,
        out_shape=out_shape,
        grid=(1,),
        in_specs=[_full_spec(a.shape) for a in operands],
        out_specs=_full_spec(out_shape.shape),
        scratch_shapes=[pltpu.VMEM((N * (ho + 2), L), jnp.float32)],
    )(*operands)


def detector_forward(x_nchw, params):
    blocks, head = params
    N, C, H, W = x_nchw.shape
    assert W == (1 << len(blocks)), "fused head assumes 1-pixel-wide final map"
    # NCHW -> (N, H, W*C) with lane order (w, c); bf16 MXU operand.
    y = jnp.transpose(x_nchw, (0, 2, 3, 1)).astype(jnp.bfloat16).reshape(N, H, W * C)
    for i, bp in enumerate(blocks):
        last = i == len(blocks) - 1
        y = block_forward(y, bp, head=head if last else None)
    return y                                    # (N, n_out) f32 sigmoid probs


# ----------------------------- parameters -----------------------------

def _bn_fold(gamma, beta, mean, var, eps):
    """Eval-mode BN -> per-channel (scale, shift); shared by kernel prep & ref."""
    scale = gamma / jnp.sqrt(var + eps)
    shift = beta - mean * scale
    return scale, shift


def _toeplitz_3x3(w, win, wo, stride):
    """w: (3,3,cin,cout) f32 -> (3, win*cin, wo*cout): one banded-Toeplitz
    matrix per kernel ROW tap; column taps / stride / W padding folded in."""
    k, _, cin, cout = w.shape
    t = np.zeros((k, win * cin, wo * cout), np.float32)
    for di in range(k):
        for dj in range(k):
            for jo in range(wo):
                ji = stride * jo + dj - 1
                if 0 <= ji < win:
                    t[di, ji * cin:(ji + 1) * cin, jo * cout:(jo + 1) * cout] = w[di, dj]
    return t


def _toeplitz_1x1_stride2(w, win, wo):
    """w: (cin,cout) -> (win*cin, wo*cout) selecting even columns (1x1 s2 conv)."""
    cin, cout = w.shape
    t = np.zeros((win * cin, wo * cout), np.float32)
    for jo in range(wo):
        ji = 2 * jo
        t[ji * cin:(ji + 1) * cin, jo * cout:(jo + 1) * cout] = w
    return t


def init_raw_params(key, layers=(16, 32, 64, 128), n_out=1, c_in=3):
    """Raw PyTorch-equivalent parameters (HWIO convs, BN stats, skip, linear)."""
    blocks = []
    c = c_in
    for l in layers:
        key, *ks = jax.random.split(key, 10)

        def conv_w(kk, ci, co, kkey):
            return jax.random.normal(kkey, (kk, kk, ci, co), jnp.float32) / np.sqrt(kk * kk * ci)

        blocks.append(dict(
            w1=conv_w(3, c, l, ks[0]),
            w2=conv_w(3, l, l, ks[1]),
            w3=conv_w(3, l, l, ks[2]),
            gamma=1.0 + 0.1 * jax.random.normal(ks[3], (3, l), jnp.float32),
            beta=0.1 * jax.random.normal(ks[4], (3, l), jnp.float32),
            mean=0.1 * jax.random.normal(ks[5], (3, l), jnp.float32),      # running_mean
            var=1.0 + 0.2 * jax.random.uniform(ks[6], (3, l), jnp.float32),  # running_var
            wskip=jax.random.normal(ks[7], (c, l), jnp.float32) / np.sqrt(c),
            bskip=0.1 * jax.random.normal(ks[8], (l,), jnp.float32),
        ))
        c = l
    key, k1, k2 = jax.random.split(key, 3)
    wcls = jax.random.normal(k1, (c, n_out), jnp.float32) / np.sqrt(c)
    bcls = 0.1 * jax.random.normal(k2, (n_out,), jnp.float32)
    return blocks, (wcls, bcls)


def prepare_params(raw, spatial, eps=1e-5):
    """Fold eval-mode BN, build Toeplitz conv weights, cast MXU operands bf16."""
    blocks_raw, (wcls, bcls) = raw
    prepared = []
    win = spatial
    for bp in blocks_raw:
        wo = win // 2
        scale, shift = _bn_fold(bp["gamma"], bp["beta"], bp["mean"], bp["var"], eps)
        scale, shift = np.asarray(scale), np.asarray(shift)
        w1f = np.asarray(bp["w1"]) * scale[0]
        w2f = np.asarray(bp["w2"]) * scale[1]
        w3f = np.asarray(bp["w3"]) * scale[2]
        prepared.append(dict(
            t1=jnp.asarray(_toeplitz_3x3(w1f, win, wo, stride=2), jnp.bfloat16),
            b1=jnp.asarray(np.tile(shift[0], wo)[None, :], jnp.float32),
            t2=jnp.asarray(_toeplitz_3x3(w2f, wo, wo, stride=1), jnp.bfloat16),
            b2=jnp.asarray(np.tile(shift[1], wo)[None, :], jnp.float32),
            t3=jnp.asarray(_toeplitz_3x3(w3f, wo, wo, stride=1), jnp.bfloat16),
            tskip=jnp.asarray(_toeplitz_1x1_stride2(np.asarray(bp["wskip"]), win, wo),
                              jnp.bfloat16),
            b3=jnp.asarray(np.tile(shift[2] + np.asarray(bp["bskip"]), wo)[None, :],
                           jnp.float32),
        ))
        win = wo
    head = (jnp.asarray(wcls, jnp.bfloat16),
            jnp.asarray(np.asarray(bcls)[None, :], jnp.float32))
    return prepared, head


# ----------------------------- pure-JAX reference -----------------------------

def ref_forward(x_nchw, raw, eps=1e-5):
    """Same math as the Pallas path (eval-mode folded BN, bf16 MXU operands,
    f32 accumulate / epilogue) expressed with lax.conv_general_dilated; this
    validates the Toeplitz construction, BN fold, skip and head end to end."""
    blocks, (wcls, bcls) = raw
    act = jnp.transpose(x_nchw, (0, 2, 3, 1))        # NHWC, f32

    def conv(a_bf16, w_bf16, stride, pad):
        return jax.lax.conv_general_dilated(
            a_bf16, w_bf16, window_strides=(stride, stride),
            padding=((pad, pad), (pad, pad)),
            dimension_numbers=("NHWC", "HWIO", "NHWC"),
            preferred_element_type=jnp.float32)

    for bp in blocks:
        xin = act.astype(jnp.bfloat16)
        scale, shift = _bn_fold(bp["gamma"], bp["beta"], bp["mean"], bp["var"], eps)
        y = jnp.maximum(conv(xin, (bp["w1"] * scale[0]).astype(jnp.bfloat16), 2, 1) + shift[0], 0.0)
        y = jnp.maximum(conv(y.astype(jnp.bfloat16),
                             (bp["w2"] * scale[1]).astype(jnp.bfloat16), 1, 1) + shift[1], 0.0)
        y3 = conv(y.astype(jnp.bfloat16), (bp["w3"] * scale[2]).astype(jnp.bfloat16), 1, 1) + shift[2]
        sk = conv(xin, bp["wskip"][None, None].astype(jnp.bfloat16), 2, 0) + bp["bskip"]
        act = jnp.maximum(y3 + sk, 0.0)

    zm = act.mean(axis=(1, 2))
    logits = jnp.dot(zm.astype(jnp.bfloat16), wcls.astype(jnp.bfloat16),
                     preferred_element_type=jnp.float32) + bcls
    return 1.0 / (1.0 + jnp.exp(-logits))


# ----------------------------- main -----------------------------

if __name__ == "__main__":
    key = jax.random.PRNGKey(0)
    kx, kp = jax.random.split(key)

    # PyTorch-convention NCHW input: batch=2, channels=3 (RGB), 16x16 spatial.
    x = jax.random.normal(kx, (2, 3, 16, 16), jnp.float32)
    raw = init_raw_params(kp)
    params = prepare_params(raw, spatial=16)

    fwd = jax.jit(detector_forward)
    out = jax.block_until_ready(fwd(x, params))

    ref = jax.block_until_ready(ref_forward(x, raw))
    assert out.shape == (2, 1), out.shape
    assert jnp.allclose(out, ref, atol=1e-3, rtol=1e-3), (out, ref)

    print("KERNEL_OK")
</pallas_src>

<mosaic_0001>
module attributes {stable_mosaic.version = 11 : i64} {
  func.func @_block_kernel(%arg0: i32, %arg1: memref<6x128xbf16, #tpu.memory_space<vmem>>, %arg2: memref<4x128xbf16, #tpu.memory_space<vmem>>, %arg3: memref<3x128x128xbf16, #tpu.memory_space<vmem>>, %arg4: memref<1x128xf32, #tpu.memory_space<vmem>>, %arg5: memref<3x128x128xbf16, #tpu.memory_space<vmem>>, %arg6: memref<1x128xf32, #tpu.memory_space<vmem>>, %arg7: memref<3x128x128xbf16, #tpu.memory_space<vmem>>, %arg8: memref<128x128xbf16, #tpu.memory_space<vmem>>, %arg9: memref<1x128xf32, #tpu.memory_space<vmem>>, %arg10: memref<2x2x128xbf16, #tpu.memory_space<vmem>>, %arg11: memref<8x128xf32, #tpu.memory_space<vmem>>) attributes {dimension_semantics = [#tpu.dimension_semantics<arbitrary>], iteration_bounds = array<i64: 1>, scalar_prefetch = 0 : i64, scratch_operands = 1 : i64, tpu.core_type = #tpu.core_type<tc>, window_params = [{pipeline_mode = #tpu.pipeline_mode<synchronous>, transform_indices = @transform_0, window_bounds = array<i64: 6, 128>}, {pipeline_mode = #tpu.pipeline_mode<synchronous>, transform_indices = @transform_1, window_bounds = array<i64: 4, 128>}, {pipeline_mode = #tpu.pipeline_mode<synchronous>, transform_indices = @transform_2, window_bounds = array<i64: 3, 128, 128>}, {pipeline_mode = #tpu.pipeline_mode<synchronous>, transform_indices = @transform_3, window_bounds = array<i64: 1, 128>}, {pipeline_mode = #tpu.pipeline_mode<synchronous>, transform_indices = @transform_4, window_bounds = array<i64: 3, 128, 128>}, {pipeline_mode = #tpu.pipeline_mode<synchronous>, transform_indices = @transform_5, window_bounds = array<i64: 1, 128>}, {pipeline_mode = #tpu.pipeline_mode<synchronous>, transform_indices = @transform_6, window_bounds = array<i64: 3, 128, 128>}, {pipeline_mode = #tpu.pipeline_mode<synchronous>, transform_indices = @transform_7, window_bounds = array<i64: 128, 128>}, {pipeline_mode = #tpu.pipeline_mode<synchronous>, transform_indices = @transform_8, window_bounds = array<i64: 1, 128>}, {pipeline_mode = #tpu.pipeline_mode<synchronous>, transform_indices = @transform_9, window_bounds = array<i64: 2, 2, 128>}]} {
    %cst = arith.constant 0.000000e+00 : f32
    %0 = vector.broadcast %cst : f32 to vector<8x128xf32>
    %c0 = arith.constant 0 : index
    %c0_0 = arith.constant 0 : index
    %1 = vector.load %arg11[%c0, %c0_0] : memref<8x128xf32, #tpu.memory_space<vmem>>, vector<8x128xf32>
    tpu.vector_store %arg11[%c0, %c0_0], %0 {strides = array<i32>} : memref<8x128xf32, #tpu.memory_space<vmem>>, vector<8x128xf32>,
    %c0_1 = arith.constant 0 : index
    %c0_2 = arith.constant 0 : index
    %2 = vector.load %arg4[%c0_1, %c0_2] : memref<1x128xf32, #tpu.memory_space<vmem>>, vector<1x128xf32>
    %c0_3 = arith.constant 0 : index
    %c0_4 = arith.constant 0 : index
    %3 = vector.load %arg1[%c0_3, %c0_4] : memref<6x128xbf16, #tpu.memory_space<vmem>>, vector<2x128xbf16>
    %c0_5 = arith.constant 0 : index
    %c0_6 = arith.constant 0 : index
    %c0_7 = arith.constant 0 : index
    %4 = vector.load %arg3[%c0_5, %c0_6, %c0_7] : memref<3x128x128xbf16, #tpu.memory_space<vmem>>, vector<1x128x128xbf16>
    %5 = vector.shape_cast %4 : vector<1x128x128xbf16> to vector<128x128xbf16>
    %cst_8 = arith.constant dense<0.000000e+00> : vector<2x128xf32>
    %6 = tpu.matmul %3, %5, %cst_8 {dimension_numbers = #tpu.dot_dimension_numbers<[1], [0], [0], [1], [0, 0, 1, 1], [], []>} : vector<2x128xbf16>, vector<128x128xbf16>, vector<2x128xf32> -> vector<2x128xf32>
    %c0_9 = arith.constant 0 : index
    %c0_10 = arith.constant 0 : index
    %7 = vector.load %arg2[%c0_9, %c0_10] : memref<4x128xbf16, #tpu.memory_space<vmem>>, vector<2x128xbf16>
    %c1 = arith.constant 1 : index
    %c0_11 = arith.constant 0 : index
    %c0_12 = arith.constant 0 : index
    %8 = vector.load %arg3[%c1, %c0_11, %c0_12] : memref<3x128x128xbf16, #tpu.memory_space<vmem>>, vector<1x128x128xbf16>
    %9 = vector.shape_cast %8 : vector<1x128x128xbf16> to vector<128x128xbf16>
    %cst_13 = arith.constant dense<0.000000e+00> : vector<2x128xf32>
    %10 = tpu.matmul %7, %9, %cst_13 {dimension_numbers = #tpu.dot_dimension_numbers<[1], [0], [0], [1], [0, 0, 1, 1], [], []>} : vector<2x128xbf16>, vector<128x128xbf16>, vector<2x128xf32> -> vector<2x128xf32>
    %11 = arith.addf %6, %10 : vector<2x128xf32>
    %c1_14 = arith.constant 1 : index
    %c0_15 = arith.constant 0 : index
    %12 = vector.load %arg1[%c1_14, %c0_15] : memref<6x128xbf16, #tpu.memory_space<vmem>>, vector<2x128xbf16>
    %c2 = arith.constant 2 : index
    %c0_16 = arith.constant 0 : index
    %c0_17 = arith.constant 0 : index
    %13 = vector.load %arg3[%c2, %c0_16, %c0_17] : memref<3x128x128xbf16, #tpu.memory_space<vmem>>, vector<1x128x128xbf16>
    %14 = vector.shape_cast %13 : vector<1x128x128xbf16> to vector<128x128xbf16>
    %cst_18 = arith.constant dense<0.000000e+00> : vector<2x128xf32>
    %15 = tpu.matmul %12, %14, %cst_18 {dimension_numbers = #tpu.dot_dimension_numbers<[1], [0], [0], [1], [0, 0, 1, 1], [], []>} : vector<2x128xbf16>, vector<128x128xbf16>, vector<2x128xf32> -> vector<2x128xf32>
    %16 = arith.addf %11, %15 : vector<2x128xf32>
    %17 = vector.broadcast %2 : vector<1x128xf32> to vector<2x128xf32>
    %18 = arith.addf %16, %17 : vector<2x128xf32>
    %cst_19 = arith.constant 0.000000e+00 : f32
    %19 = vector.broadcast %cst_19 : f32 to vector<2x128xf32>
    %20 = arith.maximumf %18, %19 : vector<2x128xf32>
    %c1_20 = arith.constant 1 : index
    %c0_21 = arith.constant 0 : index
    %21 = vector.load %arg11[%c1_20, %c0_21] : memref<8x128xf32, #tpu.memory_space<vmem>>, vector<2x128xf32>
    tpu.vector_store %arg11[%c1_20, %c0_21], %20 {strides = array<i32>} : memref<8x128xf32, #tpu.memory_space<vmem>>, vector<2x128xf32>,
    %c3 = arith.constant 3 : index
    %c0_22 = arith.constant 0 : index
    %22 = vector.load %arg1[%c3, %c0_22] : memref<6x128xbf16, #tpu.memory_space<vmem>>, vector<2x128xbf16>
    %c0_23 = arith.constant 0 : index
    %c0_24 = arith.constant 0 : index
    %c0_25 = arith.constant 0 : index
    %23 = vector.load %arg3[%c0_23, %c0_24, %c0_25] : memref<3x128x128xbf16, #tpu.memory_space<vmem>>, vector<1x128x128xbf16>
    %24 = vector.shape_cast %23 : vector<1x128x128xbf16> to vector<128x128xbf16>
    %cst_26 = arith.constant dense<0.000000e+00> : vector<2x128xf32>
    %25 = tpu.matmul %22, %24, %cst_26 {dimension_numbers = #tpu.dot_dimension_numbers<[1], [0], [0], [1], [0, 0, 1, 1], [], []>} : vector<2x128xbf16>, vector<128x128xbf16>, vector<2x128xf32> -> vector<2x128xf32>
    %c2_27 = arith.constant 2 : index
    %c0_28 = arith.constant 0 : index
    %26 = vector.load %arg2[%c2_27, %c0_28] : memref<4x128xbf16, #tpu.memory_space<vmem>>, vector<2x128xbf16>
    %c1_29 = arith.constant 1 : index
    %c0_30 = arith.constant 0 : index
    %c0_31 = arith.constant 0 : index
    %27 = vector.load %arg3[%c1_29, %c0_30, %c0_31] : memref<3x128x128xbf16, #tpu.memory_space<vmem>>, vector<1x128x128xbf16>
    %28 = vector.shape_cast %27 : vector<1x128x128xbf16> to vector<128x128xbf16>
    %cst_32 = arith.constant dense<0.000000e+00> : vector<2x128xf32>
    %29 = tpu.matmul %26, %28, %cst_32 {dimension_numbers = #tpu.dot_dimension_numbers<[1], [0], [0], [1], [0, 0, 1, 1], [], []>} : vector<2x128xbf16>, vector<128x128xbf16>, vector<2x128xf32> -> vector<2x128xf32>
    %30 = arith.addf %25, %29 : vector<2x128xf32>
    %c4 = arith.constant 4 : index
    %c0_33 = arith.constant 0 : index
    %31 = vector.load %arg1[%c4, %c0_33] : memref<6x128xbf16, #tpu.memory_space<vmem>>, vector<2x128xbf16>
    %c2_34 = arith.constant 2 : index
    %c0_35 = arith.constant 0 : index
    %c0_36 = arith.constant 0 : index
    %32 = vector.load %arg3[%c2_34, %c0_35, %c0_36] : memref<3x128x128xbf16, #tpu.memory_space<vmem>>, vector<1x128x128xbf16>
    %33 = vector.shape_cast %32 : vector<1x128x128xbf16> to vector<128x128xbf16>
    %cst_37 = arith.constant dense<0.000000e+00> : vector<2x128xf32>
    %34 = tpu.matmul %31, %33, %cst_37 {dimension_numbers = #tpu.dot_dimension_numbers<[1], [0], [0], [1], [0, 0, 1, 1], [], []>} : vector<2x128xbf16>, vector<128x128xbf16>, vector<2x128xf32> -> vector<2x128xf32>
    %35 = arith.addf %30, %34 : vector<2x128xf32>
    %36 = vector.broadcast %2 : vector<1x128xf32> to vector<2x128xf32>
    %37 = arith.addf %35, %36 : vector<2x128xf32>
    %cst_38 = arith.constant 0.000000e+00 : f32
    %38 = vector.broadcast %cst_38 : f32 to vector<2x128xf32>
    %39 = arith.maximumf %37, %38 : vector<2x128xf32>
    %c5 = arith.constant 5 : index
    %c0_39 = arith.constant 0 : index
    %40 = vector.load %arg11[%c5, %c0_39] : memref<8x128xf32, #tpu.memory_space<vmem>>, vector<2x128xf32>
    tpu.vector_store %arg11[%c5, %c0_39], %39 {strides = array<i32>} : memref<8x128xf32, #tpu.memory_space<vmem>>, vector<2x128xf32>,
    %c0_40 = arith.constant 0 : index
    %c0_41 = arith.constant 0 : index
    %41 = vector.load %arg6[%c0_40, %c0_41] : memref<1x128xf32, #tpu.memory_space<vmem>>, vector<1x128xf32>
    %c0_42 = arith.constant 0 : index
    %c0_43 = arith.constant 0 : index
    %42 = vector.load %arg11[%c0_42, %c0_43] : memref<8x128xf32, #tpu.memory_space<vmem>>, vector<2x128xf32>
    %43 = arith.truncf %42 : vector<2x128xf32> to vector<2x128xbf16>
    %c0_44 = arith.constant 0 : index
    %c0_45 = arith.constant 0 : index
    %c0_46 = arith.constant 0 : index
    %44 = vector.load %arg5[%c0_44, %c0_45, %c0_46] : memref<3x128x128xbf16, #tpu.memory_space<vmem>>, vector<1x128x128xbf16>
    %45 = vector.shape_cast %44 : vector<1x128x128xbf16> to vector<128x128xbf16>
    %cst_47 = arith.constant dense<0.000000e+00> : vector<2x128xf32>
    %46 = tpu.matmul %43, %45, %cst_47 {dimension_numbers = #tpu.dot_dimension_numbers<[1], [0], [0], [1], [0, 0, 1, 1], [], []>} : vector<2x128xbf16>, vector<128x128xbf16>, vector<2x128xf32> -> vector<2x128xf32>
    %c1_48 = arith.constant 1 : index
    %c0_49 = arith.constant 0 : index
    %47 = vector.load %arg11[%c1_48, %c0_49] : memref<8x128xf32, #tpu.memory_space<vmem>>, vector<2x128xf32>
    %48 = arith.truncf %47 : vector<2x128xf32> to vector<2x128xbf16>
    %c1_50 = arith.constant 1 : index
    %c0_51 = arith.constant 0 : index
    %c0_52 = arith.constant 0 : index
    %49 = vector.load %arg5[%c1_50, %c0_51, %c0_52] : memref<3x128x128xbf16, #tpu.memory_space<vmem>>, vector<1x128x128xbf16>
    %50 = vector.shape_cast %49 : vector<1x128x128xbf16> to vector<128x128xbf16>
    %cst_53 = arith.constant dense<0.000000e+00> : vector<2x128xf32>
    %51 = tpu.matmul %48, %50, %cst_53 {dimension_numbers = #tpu.dot_dimension_numbers<[1], [0], [0], [1], [0, 0, 1, 1], [], []>} : vector<2x128xbf16>, vector<128x128xbf16>, vector<2x128xf32> -> vector<2x128xf32>
    %52 = arith.addf %46, %51 : vector<2x128xf32>
    %c2_54 = arith.constant 2 : index
    %c0_55 = arith.constant 0 : index
    %53 = vector.load %arg11[%c2_54, %c0_55] : memref<8x128xf32, #tpu.memory_space<vmem>>, vector<2x128xf32>
    %54 = arith.truncf %53 : vector<2x128xf32> to vector<2x128xbf16>
    %c2_56 = arith.constant 2 : index
    %c0_57 = arith.constant 0 : index
    %c0_58 = arith.constant 0 : index
    %55 = vector.load %arg5[%c2_56, %c0_57, %c0_58] : memref<3x128x128xbf16, #tpu.memory_space<vmem>>, vector<1x128x128xbf16>
    %56 = vector.shape_cast %55 : vector<1x128x128xbf16> to vector<128x128xbf16>
    %cst_59 = arith.constant dense<0.000000e+00> : vector<2x128xf32>
    %57 = tpu.matmul %54, %56, %cst_59 {dimension_numbers = #tpu.dot_dimension_numbers<[1], [0], [0], [1], [0, 0, 1, 1], [], []>} : vector<2x128xbf16>, vector<128x128xbf16>, vector<2x128xf32> -> vector<2x128xf32>
    %58 = arith.addf %52, %57 : vector<2x128xf32>
    %59 = vector.broadcast %41 : vector<1x128xf32> to vector<2x128xf32>
    %60 = arith.addf %58, %59 : vector<2x128xf32>
    %cst_60 = arith.constant 0.000000e+00 : f32
    %61 = vector.broadcast %cst_60 : f32 to vector<2x128xf32>
    %62 = arith.maximumf %60, %61 : vector<2x128xf32>
    %c4_61 = arith.constant 4 : index
    %c0_62 = arith.constant 0 : index
    %63 = vector.load %arg11[%c4_61, %c0_62] : memref<8x128xf32, #tpu.memory_space<vmem>>, vector<2x128xf32>
    %64 = arith.truncf %63 : vector<2x128xf32> to vector<2x128xbf16>
    %c0_63 = arith.constant 0 : index
    %c0_64 = arith.constant 0 : index
    %c0_65 = arith.constant 0 : index
    %65 = vector.load %arg5[%c0_63, %c0_64, %c0_65] : memref<3x128x128xbf16, #tpu.memory_space<vmem>>, vector<1x128x128xbf16>
    %66 = vector.shape_cast %65 : vector<1x128x128xbf16> to vector<128x128xbf16>
    %cst_66 = arith.constant dense<0.000000e+00> : vector<2x128xf32>
    %67 = tpu.matmul %64, %66, %cst_66 {dimension_numbers = #tpu.dot_dimension_numbers<[1], [0], [0], [1], [0, 0, 1, 1], [], []>} : vector<2x128xbf16>, vector<128x128xbf16>, vector<2x128xf32> -> vector<2x128xf32>
    %c5_67 = arith.constant 5 : index
    %c0_68 = arith.constant 0 : index
    %68 = vector.load %arg11[%c5_67, %c0_68] : memref<8x128xf32, #tpu.memory_space<vmem>>, vector<2x128xf32>
    %69 = arith.truncf %68 : vector<2x128xf32> to vector<2x128xbf16>
    %c1_69 = arith.constant 1 : index
    %c0_70 = arith.constant 0 : index
    %c0_71 = arith.constant 0 : index
    %70 = vector.load %arg5[%c1_69, %c0_70, %c0_71] : memref<3x128x128xbf16, #tpu.memory_space<vmem>>, vector<1x128x128xbf16>
    %71 = vector.shape_cast %70 : vector<1x128x128xbf16> to vector<128x128xbf16>
    %cst_72 = arith.constant dense<0.000000e+00> : vector<2x128xf32>
    %72 = tpu.matmul %69, %71, %cst_72 {dimension_numbers = #tpu.dot_dimension_numbers<[1], [0], [0], [1], [0, 0, 1, 1], [], []>} : vector<2x128xbf16>, vector<128x128xbf16>, vector<2x128xf32> -> vector<2x128xf32>
    %73 = arith.addf %67, %72 : vector<2x128xf32>
    %c6 = arith.constant 6 : index
    %c0_73 = arith.constant 0 : index
    %74 = vector.load %arg11[%c6, %c0_73] : memref<8x128xf32, #tpu.memory_space<vmem>>, vector<2x128xf32>
    %75 = arith.truncf %74 : vector<2x128xf32> to vector<2x128xbf16>
    %c2_74 = arith.constant 2 : index
    %c0_75 = arith.constant 0 : index
    %c0_76 = arith.constant 0 : index
    %76 = vector.load %arg5[%c2_74, %c0_75, %c0_76] : memref<3x128x128xbf16, #tpu.memory_space<vmem>>, vector<1x128x128xbf16>
    %77 = vector.shape_cast %76 : vector<1x128x128xbf16> to vector<128x128xbf16>
    %cst_77 = arith.constant dense<0.000000e+00> : vector<2x128xf32>
    %78 = tpu.matmul %75, %77, %cst_77 {dimension_numbers = #tpu.dot_dimension_numbers<[1], [0], [0], [1], [0, 0, 1, 1], [], []>} : vector<2x128xbf16>, vector<128x128xbf16>, vector<2x128xf32> -> vector<2x128xf32>
    %79 = arith.addf %73, %78 : vector<2x128xf32>
    %80 = vector.broadcast %41 : vector<1x128xf32> to vector<2x128xf32>
    %81 = arith.addf %79, %80 : vector<2x128xf32>
    %cst_78 = arith.constant 0.000000e+00 : f32
    %82 = vector.broadcast %cst_78 : f32 to vector<2x128xf32>
    %83 = arith.maximumf %81, %82 : vector<2x128xf32>
    %c1_79 = arith.constant 1 : index
    %c0_80 = arith.constant 0 : index
    %84 = vector.load %arg11[%c1_79, %c0_80] : memref<8x128xf32, #tpu.memory_space<vmem>>, vector<2x128xf32>
    tpu.vector_store %arg11[%c1_79, %c0_80], %62 {strides = array<i32>} : memref<8x128xf32, #tpu.memory_space<vmem>>, vector<2x128xf32>,
    %c5_81 = arith.constant 5 : index
    %c0_82 = arith.constant 0 : index
    %85 = vector.load %arg11[%c5_81, %c0_82] : memref<8x128xf32, #tpu.memory_space<vmem>>, vector<2x128xf32>
    tpu.vector_store %arg11[%c5_81, %c0_82], %83 {strides = array<i32>} : memref<8x128xf32, #tpu.memory_space<vmem>>, vector<2x128xf32>,
    %c0_83 = arith.constant 0 : index
    %c0_84 = arith.constant 0 : index
    %86 = vector.load %arg9[%c0_83, %c0_84] : memref<1x128xf32, #tpu.memory_space<vmem>>, vector<1x128xf32>
    %c0_85 = arith.constant 0 : index
    %c0_86 = arith.constant 0 : index
    %87 = vector.load %arg11[%c0_85, %c0_86] : memref<8x128xf32, #tpu.memory_space<vmem>>, vector<2x128xf32>
    %88 = arith.truncf %87 : vector<2x128xf32> to vector<2x128xbf16>
    %c0_87 = arith.constant 0 : index
    %c0_88 = arith.constant 0 : index
    %c0_89 = arith.constant 0 : index
    %89 = vector.load %arg7[%c0_87, %c0_88, %c0_89] : memref<3x128x128xbf16, #tpu.memory_space<vmem>>, vector<1x128x128xbf16>
    %90 = vector.shape_cast %89 : vector<1x128x128xbf16> to vector<128x128xbf16>
    %cst_90 = arith.constant dense<0.000000e+00> : vector<2x128xf32>
    %91 = tpu.matmul %88, %90, %cst_90 {dimension_numbers = #tpu.dot_dimension_numbers<[1], [0], [0], [1], [0, 0, 1, 1], [], []>} : vector<2x128xbf16>, vector<128x128xbf16>, vector<2x128xf32> -> vector<2x128xf32>
    %c1_91 = arith.constant 1 : index
    %c0_92 = arith.constant 0 : index
    %92 = vector.load %arg11[%c1_91, %c0_92] : memref<8x128xf32, #tpu.memory_space<vmem>>, vector<2x128xf32>
    %93 = arith.truncf %92 : vector<2x128xf32> to vector<2x128xbf16>
    %c1_93 = arith.constant 1 : index
    %c0_94 = arith.constant 0 : index
    %c0_95 = arith.constant 0 : index
    %94 = vector.load %arg7[%c1_93, %c0_94, %c0_95] : memref<3x128x128xbf16, #tpu.memory_space<vmem>>, vector<1x128x128xbf16>
    %95 = vector.shape_cast %94 : vector<1x128x128xbf16> to vector<128x128xbf16>
    %cst_96 = arith.constant dense<0.000000e+00> : vector<2x128xf32>
    %96 = tpu.matmul %93, %95, %cst_96 {dimension_numbers = #tpu.dot_dimension_numbers<[1], [0], [0], [1], [0, 0, 1, 1], [], []>} : vector<2x128xbf16>, vector<128x128xbf16>, vector<2x128xf32> -> vector<2x128xf32>
    %97 = arith.addf %91, %96 : vector<2x128xf32>
    %c2_97 = arith.constant 2 : index
    %c0_98 = arith.constant 0 : index
    %98 = vector.load %arg11[%c2_97, %c0_98] : memref<8x128xf32, #tpu.memory_space<vmem>>, vector<2x128xf32>
    %99 = arith.truncf %98 : vector<2x128xf32> to vector<2x128xbf16>
    %c2_99 = arith.constant 2 : index
    %c0_100 = arith.constant 0 : index
    %c0_101 = arith.constant 0 : index
    %100 = vector.load %arg7[%c2_99, %c0_100, %c0_101] : memref<3x128x128xbf16, #tpu.memory_space<vmem>>, vector<1x128x128xbf16>
    %101 = vector.shape_cast %100 : vector<1x128x128xbf16> to vector<128x128xbf16>
    %cst_102 = arith.constant dense<0.000000e+00> : vector<2x128xf32>
    %102 = tpu.matmul %99, %101, %cst_102 {dimension_numbers = #tpu.dot_dimension_numbers<[1], [0], [0], [1], [0, 0, 1, 1], [], []>} : vector<2x128xbf16>, vector<128x128xbf16>, vector<2x128xf32> -> vector<2x128xf32>
    %103 = arith.addf %97, %102 : vector<2x128xf32>
    %c0_103 = arith.constant 0 : index
    %c0_104 = arith.constant 0 : index
    %104 = vector.load %arg2[%c0_103, %c0_104] : memref<4x128xbf16, #tpu.memory_space<vmem>>, vector<2x128xbf16>
    %c0_105 = arith.constant 0 : index
    %c0_106 = arith.constant 0 : index
    %105 = vector.load %arg8[%c0_105, %c0_106] : memref<128x128xbf16, #tpu.memory_space<vmem>>, vector<128x128xbf16>
    %cst_107 = arith.constant dense<0.000000e+00> : vector<2x128xf32>
    %106 = tpu.matmul %104, %105, %cst_107 {dimension_numbers = #tpu.dot_dimension_numbers<[1], [0], [0], [1], [0, 0, 1, 1], [], []>} : vector<2x128xbf16>, vector<128x128xbf16>, vector<2x128xf32> -> vector<2x128xf32>
    %107 = arith.addf %103, %106 : vector<2x128xf32>
    %108 = vector.broadcast %86 : vector<1x128xf32> to vector<2x128xf32>
    %109 = arith.addf %107, %108 : vector<2x128xf32>
    %cst_108 = arith.constant 0.000000e+00 : f32
    %110 = vector.broadcast %cst_108 : f32 to vector<2x128xf32>
    %111 = arith.maximumf %109, %110 : vector<2x128xf32>
    %112 = arith.truncf %111 : vector<2x128xf32> to vector<2x128xbf16>
    %c0_109 = arith.constant 0 : index
    %c0_110 = arith.constant 0 : index
    %c0_111 = arith.constant 0 : index
    %113 = vector.load %arg10[%c0_109, %c0_110, %c0_111] : memref<2x2x128xbf16, #tpu.memory_space<vmem>>, vector<1x2x128xbf16>
    %114 = vector.shape_cast %113 : vector<1x2x128xbf16> to vector<2x128xbf16>
    %115 = vector.shape_cast %112 : vector<2x128xbf16> to vector<1x2x128xbf16>
    tpu.vector_store %arg10[%c0_109, %c0_110, %c0_111], %115 {strides = array<i32>} : memref<2x2x128xbf16, #tpu.memory_space<vmem>>, vector<1x2x128xbf16>,
    %c4_112 = arith.constant 4 : index
    %c0_113 = arith.constant 0 : index
    %116 = vector.load %arg11[%c4_112, %c0_113] : memref<8x128xf32, #tpu.memory_space<vmem>>, vector<2x128xf32>
    %117 = arith.truncf %116 : vector<2x128xf32> to vector<2x128xbf16>
    %c0_114 = arith.constant 0 : index
    %c0_115 = arith.constant 0 : index
    %c0_116 = arith.constant 0 : index
    %118 = vector.load %arg7[%c0_114, %c0_115, %c0_116] : memref<3x128x128xbf16, #tpu.memory_space<vmem>>, vector<1x128x128xbf16>
    %119 = vector.shape_cast %118 : vector<1x128x128xbf16> to vector<128x128xbf16>
    %cst_117 = arith.constant dense<0.000000e+00> : vector<2x128xf32>
    %120 = tpu.matmul %117, %119, %cst_117 {dimension_numbers = #tpu.dot_dimension_numbers<[1], [0], [0], [1], [0, 0, 1, 1], [], []>} : vector<2x128xbf16>, vector<128x128xbf16>, vector<2x128xf32> -> vector<2x128xf32>
    %c5_118 = arith.constant 5 : index
    %c0_119 = arith.constant 0 : index
    %121 = vector.load %arg11[%c5_118, %c0_119] : memref<8x128xf32, #tpu.memory_space<vmem>>, vector<2x128xf32>
    %122 = arith.truncf %121 : vector<2x128xf32> to vector<2x128xbf16>
    %c1_120 = arith.constant 1 : index
    %c0_121 = arith.constant 0 : index
    %c0_122 = arith.constant 0 : index
    %123 = vector.load %arg7[%c1_120, %c0_121, %c0_122] : memref<3x128x128xbf16, #tpu.memory_space<vmem>>, vector<1x128x128xbf16>
    %124 = vector.shape_cast %123 : vector<1x128x128xbf16> to vector<128x128xbf16>
    %cst_123 = arith.constant dense<0.000000e+00> : vector<2x128xf32>
    %125 = tpu.matmul %122, %124, %cst_123 {dimension_numbers = #tpu.dot_dimension_numbers<[1], [0], [0], [1], [0, 0, 1, 1], [], []>} : vector<2x128xbf16>, vector<128x128xbf16>, vector<2x128xf32> -> vector<2x128xf32>
    %126 = arith.addf %120, %125 : vector<2x128xf32>
    %c6_124 = arith.constant 6 : index
    %c0_125 = arith.constant 0 : index
    %127 = vector.load %arg11[%c6_124, %c0_125] : memref<8x128xf32, #tpu.memory_space<vmem>>, vector<2x128xf32>
    %128 = arith.truncf %127 : vector<2x128xf32> to vector<2x128xbf16>
    %c2_126 = arith.constant 2 : index
    %c0_127 = arith.constant 0 : index
    %c0_128 = arith.constant 0 : index
    %129 = vector.load %arg7[%c2_126, %c0_127, %c0_128] : memref<3x128x128xbf16, #tpu.memory_space<vmem>>, vector<1x128x128xbf16>
    %130 = vector.shape_cast %129 : vector<1x128x128xbf16> to vector<128x128xbf16>
    %cst_129 = arith.constant dense<0.000000e+00> : vector<2x128xf32>
    %131 = tpu.matmul %128, %130, %cst_129 {dimension_numbers = #tpu.dot_dimension_numbers<[1], [0], [0], [1], [0, 0, 1, 1], [], []>} : vector<2x128xbf16>, vector<128x128xbf16>, vector<2x128xf32> -> vector<2x128xf32>
    %132 = arith.addf %126, %131 : vector<2x128xf32>
    %c2_130 = arith.constant 2 : index
    %c0_131 = arith.constant 0 : index
    %133 = vector.load %arg2[%c2_130, %c0_131] : memref<4x128xbf16, #tpu.memory_space<vmem>>, vector<2x128xbf16>
    %c0_132 = arith.constant 0 : index
    %c0_133 = arith.constant 0 : index
    %134 = vector.load %arg8[%c0_132, %c0_133] : memref<128x128xbf16, #tpu.memory_space<vmem>>, vector<128x128xbf16>
    %cst_134 = arith.constant dense<0.000000e+00> : vector<2x128xf32>
    %135 = tpu.matmul %133, %134, %cst_134 {dimension_numbers = #tpu.dot_dimension_numbers<[1], [0], [0], [1], [0, 0, 1, 1], [], []>} : vector<2x128xbf16>, vector<128x128xbf16>, vector<2x128xf32> -> vector<2x128xf32>
    %136 = arith.addf %132, %135 : vector<2x128xf32>
    %137 = vector.broadcast %86 : vector<1x128xf32> to vector<2x128xf32>
    %138 = arith.addf %136, %137 : vector<2x128xf32>
    %cst_135 = arith.constant 0.000000e+00 : f32
    %139 = vector.broadcast %cst_135 : f32 to vector<2x128xf32>
    %140 = arith.maximumf %138, %139 : vector<2x128xf32>
    %141 = arith.truncf %140 : vector<2x128xf32> to vector<2x128xbf16>
    %c1_136 = arith.constant 1 : index
    %c0_137 = arith.constant 0 : index
    %c0_138 = arith.constant 0 : index
    %142 = vector.load %arg10[%c1_136, %c0_137, %c0_138] : memref<2x2x128xbf16, #tpu.memory_space<vmem>>, vector<1x2x128xbf16>
    %143 = vector.shape_cast %142 : vector<1x2x128xbf16> to vector<2x128xbf16>
    %144 = vector.shape_cast %141 : vector<2x128xbf16> to vector<1x2x128xbf16>
    tpu.vector_store %arg10[%c1_136, %c0_137, %c0_138], %144 {strides = array<i32>} : memref<2x2x128xbf16, #tpu.memory_space<vmem>>, vector<1x2x128xbf16>,
    return
  }
  func.func @transform_0(%arg0: i32) -> (i32, i32) {
    %c0_i32 = arith.constant 0 : i32
    %c0_i32_0 = arith.constant 0 : i32
    %c0_i32_1 = arith.constant 0 : i32
    return %c0_i32, %c0_i32_0 : i32, i32
  }
  func.func @transform_1(%arg0: i32) -> (i32, i32) {
    %c0_i32 = arith.constant 0 : i32
    %c0_i32_0 = arith.constant 0 : i32
    %c0_i32_1 = arith.constant 0 : i32
    return %c0_i32, %c0_i32_0 : i32, i32
  }
  func.func @transform_2(%arg0: i32) -> (i32, i32, i32) {
    %c0_i32 = arith.constant 0 : i32
    %c0_i32_0 = arith.constant 0 : i32
    %c0_i32_1 = arith.constant 0 : i32
    %c0_i32_2 = arith.constant 0 : i32
    return %c0_i32, %c0_i32_0, %c0_i32_1 : i32, i32, i32
  }
  func.func @transform_3(%arg0: i32) -> (i32, i32) {
    %c0_i32 = arith.constant 0 : i32
    %c0_i32_0 = arith.constant 0 : i32
    %c0_i32_1 = arith.constant 0 : i32
    return %c0_i32, %c0_i32_0 : i32, i32
  }
  func.func @transform_4(%arg0: i32) -> (i32, i32, i32) {
    %c0_i32 = arith.constant 0 : i32
    %c0_i32_0 = arith.constant 0 : i32
    %c0_i32_1 = arith.constant 0 : i32
    %c0_i32_2 = arith.constant 0 : i32
    return %c0_i32, %c0_i32_0, %c0_i32_1 : i32, i32, i32
  }
  func.func @transform_5(%arg0: i32) -> (i32, i32) {
    %c0_i32 = arith.constant 0 : i32
    %c0_i32_0 = arith.constant 0 : i32
    %c0_i32_1 = arith.constant 0 : i32
    return %c0_i32, %c0_i32_0 : i32, i32
  }
  func.func @transform_6(%arg0: i32) -> (i32, i32, i32) {
    %c0_i32 = arith.constant 0 : i32
    %c0_i32_0 = arith.constant 0 : i32
    %c0_i32_1 = arith.constant 0 : i32
    %c0_i32_2 = arith.constant 0 : i32
    return %c0_i32, %c0_i32_0, %c0_i32_1 : i32, i32, i32
  }
  func.func @transform_7(%arg0: i32) -> (i32, i32) {
    %c0_i32 = arith.constant 0 : i32
    %c0_i32_0 = arith.constant 0 : i32
    %c0_i32_1 = arith.constant 0 : i32
    return %c0_i32, %c0_i32_0 : i32, i32
  }
  func.func @transform_8(%arg0: i32) -> (i32, i32) {
    %c0_i32 = arith.constant 0 : i32
    %c0_i32_0 = arith.constant 0 : i32
    %c0_i32_1 = arith.constant 0 : i32
    return %c0_i32, %c0_i32_0 : i32, i32
  }
  func.func @transform_9(%arg0: i32) -> (i32, i32, i32) {
    %c0_i32 = arith.constant 0 : i32
    %c0_i32_0 = arith.constant 0 : i32
    %c0_i32_1 = arith.constant 0 : i32
    %c0_i32_2 = arith.constant 0 : i32
    return %c0_i32, %c0_i32_0, %c0_i32_1 : i32, i32, i32
  }
}

module attributes {stable_mosaic.version = 11 : i64} {
  func.func @_block_kernel(%arg0: i32, %arg1: memref<18x48xbf16, #tpu.memory_space<vmem>>, %arg2: memref<16x48xbf16, #tpu.memory_space<vmem>>, %arg3: memref<3x48x128xbf16, #tpu.memory_space<vmem>>, %arg4: memref<1x128xf32, #tpu.memory_space<vmem>>, %arg5: memref<3x128x128xbf16, #tpu.memory_space<vmem>>, %arg6: memref<1x128xf32, #tpu.memory_space<vmem>>, %arg7: memref<3x128x128xbf16, #tpu.memory_space<vmem>>, %arg8: memref<48x128xbf16, #tpu.memory_space<vmem>>, %arg9: memref<1x128xf32, #tpu.memory_space<vmem>>, %arg10: memref<2x8x128xbf16, #tpu.memory_space<vmem>>, %arg11: memref<20x128xf32, #tpu.memory_space<vmem>>) attributes {dimension_semantics = [#tpu.dimension_semantics<arbitrary>], iteration_bounds = array<i64: 1>, scalar_prefetch = 0 : i64, scratch_operands = 1 : i64, tpu.core_type = #tpu.core_type<tc>, window_params = [{pipeline_mode = #tpu.pipeline_mode<synchronous>, transform_indices = @transform_0, window_bounds = array<i64: 18, 48>}, {pipeline_mode = #tpu.pipeline_mode<synchronous>, transform_indices = @transform_1, window_bounds = array<i64: 16, 48>}, {pipeline_mode = #tpu.pipeline_mode<synchronous>, transform_indices = @transform_2, window_bounds = array<i64: 3, 48, 128>}, {pipeline_mode = #tpu.pipeline_mode<synchronous>, transform_indices = @transform_3, window_bounds = array<i64: 1, 128>}, {pipeline_mode = #tpu.pipeline_mode<synchronous>, transform_indices = @transform_4, window_bounds = array<i64: 3, 128, 128>}, {pipeline_mode = #tpu.pipeline_mode<synchronous>, transform_indices = @transform_5, window_bounds = array<i64: 1, 128>}, {pipeline_mode = #tpu.pipeline_mode<synchronous>, transform_indices = @transform_6, window_bounds = array<i64: 3, 128, 128>}, {pipeline_mode = #tpu.pipeline_mode<synchronous>, transform_indices = @transform_7, window_bounds = array<i64: 48, 128>}, {pipeline_mode = #tpu.pipeline_mode<synchronous>, transform_indices = @transform_8, window_bounds = array<i64: 1, 128>}, {pipeline_mode = #tpu.pipeline_mode<synchronous>, transform_indices = @transform_9, window_bounds = array<i64: 2, 8, 128>}]} {
    %cst = arith.constant 0.000000e+00 : f32
    %0 = vector.broadcast %cst : f32 to vector<20x128xf32>
    %c0 = arith.constant 0 : index
    %c0_0 = arith.constant 0 : index
    %1 = vector.load %arg11[%c0, %c0_0] : memref<20x128xf32, #tpu.memory_space<vmem>>, vector<20x128xf32>
    tpu.vector_store %arg11[%c0, %c0_0], %0 {strides = array<i32>} : memref<20x128xf32, #tpu.memory_space<vmem>>, vector<20x128xf32>,
    %c0_1 = arith.constant 0 : index
    %c0_2 = arith.constant 0 : index
    %2 = vector.load %arg4[%c0_1, %c0_2] : memref<1x128xf32, #tpu.memory_space<vmem>>, vector<1x128xf32>
    %c0_3 = arith.constant 0 : index
    %c0_4 = arith.constant 0 : index
    %3 = vector.load %arg1[%c0_3, %c0_4] : memref<18x48xbf16, #tpu.memory_space<vmem>>, vector<8x48xbf16>
    %c0_5 = arith.constant 0 : index
    %c0_6 = arith.constant 0 : index
    %c0_7 = arith.constant 0 : index
    %4 = vector.load %arg3[%c0_5, %c0_6, %c0_7] : memref<3x48x128xbf16, #tpu.memory_space<vmem>>, vector<1x48x128xbf16>
    %5 = vector.shape_cast %4 : vector<1x48x128xbf16> to vector<48x128xbf16>
    %cst_8 = arith.constant dense<0.000000e+00> : vector<8x128xf32>
    %6 = tpu.matmul %3, %5, %cst_8 {dimension_numbers = #tpu.dot_dimension_numbers<[1], [0], [0], [1], [0, 0, 1, 1], [], []>} : vector<8x48xbf16>, vector<48x128xbf16>, vector<8x128xf32> -> vector<8x128xf32>
    %c0_9 = arith.constant 0 : index
    %c0_10 = arith.constant 0 : index
    %7 = vector.load %arg2[%c0_9, %c0_10] : memref<16x48xbf16, #tpu.memory_space<vmem>>, vector<8x48xbf16>
    %c1 = arith.constant 1 : index
    %c0_11 = arith.constant 0 : index
    %c0_12 = arith.constant 0 : index
    %8 = vector.load %arg3[%c1, %c0_11, %c0_12] : memref<3x48x128xbf16, #tpu.memory_space<vmem>>, vector<1x48x128xbf16>
    %9 = vector.shape_cast %8 : vector<1x48x128xbf16> to vector<48x128xbf16>
    %cst_13 = arith.constant dense<0.000000e+00> : vector<8x128xf32>
    %10 = tpu.matmul %7, %9, %cst_13 {dimension_numbers = #tpu.dot_dimension_numbers<[1], [0], [0], [1], [0, 0, 1, 1], [], []>} : vector<8x48xbf16>, vector<48x128xbf16>, vector<8x128xf32> -> vector<8x128xf32>
    %11 = arith.addf %6, %10 : vector<8x128xf32>
    %c1_14 = arith.constant 1 : index
    %c0_15 = arith.constant 0 : index
    %12 = vector.load %arg1[%c1_14, %c0_15] : memref<18x48xbf16, #tpu.memory_space<vmem>>, vector<8x48xbf16>
    %c2 = arith.constant 2 : index
    %c0_16 = arith.constant 0 : index
    %c0_17 = arith.constant 0 : index
    %13 = vector.load %arg3[%c2, %c0_16, %c0_17] : memref<3x48x128xbf16, #tpu.memory_space<vmem>>, vector<1x48x128xbf16>
    %14 = vector.shape_cast %13 : vector<1x48x128xbf16> to vector<48x128xbf16>
    %cst_18 = arith.constant dense<0.000000e+00> : vector<8x128xf32>
    %15 = tpu.matmul %12, %14, %cst_18 {dimension_numbers = #tpu.dot_dimension_numbers<[1], [0], [0], [1], [0, 0, 1, 1], [], []>} : vector<8x48xbf16>, vector<48x128xbf16>, vector<8x128xf32> -> vector<8x128xf32>
    %16 = arith.addf %11, %15 : vector<8x128xf32>
    %17 = vector.broadcast %2 : vector<1x128xf32> to vector<8x128xf32>
    %18 = arith.addf %16, %17 : vector<8x128xf32>
    %cst_19 = arith.constant 0.000000e+00 : f32
    %19 = vector.broadcast %cst_19 : f32 to vector<8x128xf32>
    %20 = arith.maximumf %18, %19 : vector<8x128xf32>
    %c1_20 = arith.constant 1 : index
    %c0_21 = arith.constant 0 : index
    %21 = vector.load %arg11[%c1_20, %c0_21] : memref<20x128xf32, #tpu.memory_space<vmem>>, vector<8x128xf32>
    tpu.vector_store %arg11[%c1_20, %c0_21], %20 {strides = array<i32>} : memref<20x128xf32, #tpu.memory_space<vmem>>, vector<8x128xf32>,
    %c9 = arith.constant 9 : index
    %c0_22 = arith.constant 0 : index
    %22 = vector.load %arg1[%c9, %c0_22] : memref<18x48xbf16, #tpu.memory_space<vmem>>, vector<8x48xbf16>
    %c0_23 = arith.constant 0 : index
    %c0_24 = arith.constant 0 : index
    %c0_25 = arith.constant 0 : index
    %23 = vector.load %arg3[%c0_23, %c0_24, %c0_25] : memref<3x48x128xbf16, #tpu.memory_space<vmem>>, vector<1x48x128xbf16>
    %24 = vector.shape_cast %23 : vector<1x48x128xbf16> to vector<48x128xbf16>
    %cst_26 = arith.constant dense<0.000000e+00> : vector<8x128xf32>
    %25 = tpu.matmul %22, %24, %cst_26 {dimension_numbers = #tpu.dot_dimension_numbers<[1], [0], [0], [1], [0, 0, 1, 1], [], []>} : vector<8x48xbf16>, vector<48x128xbf16>, vector<8x128xf32> -> vector<8x128xf32>
    %c8 = arith.constant 8 : index
    %c0_27 = arith.constant 0 : index
    %26 = vector.load %arg2[%c8, %c0_27] : memref<16x48xbf16, #tpu.memory_space<vmem>>, vector<8x48xbf16>
    %c1_28 = arith.constant 1 : index
    %c0_29 = arith.constant 0 : index
    %c0_30 = arith.constant 0 : index
    %27 = vector.load %arg3[%c1_28, %c0_29, %c0_30] : memref<3x48x128xbf16, #tpu.memory_space<vmem>>, vector<1x48x128xbf16>
    %28 = vector.shape_cast %27 : vector<1x48x128xbf16> to vector<48x128xbf16>
    %cst_31 = arith.constant dense<0.000000e+00> : vector<8x128xf32>
    %29 = tpu.matmul %26, %28, %cst_31 {dimension_numbers = #tpu.dot_dimension_numbers<[1], [0], [0], [1], [0, 0, 1, 1], [], []>} : vector<8x48xbf16>, vector<48x128xbf16>, vector<8x128xf32> -> vector<8x128xf32>
    %30 = arith.addf %25, %29 : vector<8x128xf32>
    %c10 = arith.constant 10 : index
    %c0_32 = arith.constant 0 : index
    %31 = vector.load %arg1[%c10, %c0_32] : memref<18x48xbf16, #tpu.memory_space<vmem>>, vector<8x48xbf16>
    %c2_33 = arith.constant 2 : index
    %c0_34 = arith.constant 0 : index
    %c0_35 = arith.constant 0 : index
    %32 = vector.load %arg3[%c2_33, %c0_34, %c0_35] : memref<3x48x128xbf16, #tpu.memory_space<vmem>>, vector<1x48x128xbf16>
    %33 = vector.shape_cast %32 : vector<1x48x128xbf16> to vector<48x128xbf16>
    %cst_36 = arith.constant dense<0.000000e+00> : vector<8x128xf32>
    %34 = tpu.matmul %31, %33, %cst_36 {dimension_numbers = #tpu.dot_dimension_numbers<[1], [0], [0], [1], [0, 0, 1, 1], [], []>} : vector<8x48xbf16>, vector<48x128xbf16>, vector<8x128xf32> -> vector<8x128xf32>
    %35 = arith.addf %30, %34 : vector<8x128xf32>
    %36 = vector.broadcast %2 : vector<1x128xf32> to vector<8x128xf32>
    %37 = arith.addf %35, %36 : vector<8x128xf32>
    %cst_37 = arith.constant 0.000000e+00 : f32
    %38 = vector.broadcast %cst_37 : f32 to vector<8x128xf32>
    %39 = arith.maximumf %37, %38 : vector<8x128xf32>
    %c11 = arith.constant 11 : index
    %c0_38 = arith.constant 0 : index
    %40 = vector.load %arg11[%c11, %c0_38] : memref<20x128xf32, #tpu.memory_space<vmem>>, vector<8x128xf32>
    tpu.vector_store %arg11[%c11, %c0_38], %39 {strides = array<i32>} : memref<20x128xf32, #tpu.memory_space<vmem>>, vector<8x128xf32>,
    %c0_39 = arith.constant 0 : index
    %c0_40 = arith.constant 0 : index
    %41 = vector.load %arg6[%c0_39, %c0_40] : memref<1x128xf32, #tpu.memory_space<vmem>>, vector<1x128xf32>
    %c0_41 = arith.constant 0 : index
    %c0_42 = arith.constant 0 : index
    %42 = vector.load %arg11[%c0_41, %c0_42] : memref<20x128xf32, #tpu.memory_space<vmem>>, vector<8x128xf32>
    %43 = arith.truncf %42 : vector<8x128xf32> to vector<8x128xbf16>
    %c0_43 = arith.constant 0 : index
    %c0_44 = arith.constant 0 : index
    %c0_45 = arith.constant 0 : index
    %44 = vector.load %arg5[%c0_43, %c0_44, %c0_45] : memref<3x128x128xbf16, #tpu.memory_space<vmem>>, vector<1x128x128xbf16>
    %45 = vector.shape_cast %44 : vector<1x128x128xbf16> to vector<128x128xbf16>
    %cst_46 = arith.constant dense<0.000000e+00> : vector<8x128xf32>
    %46 = tpu.matmul %43, %45, %cst_46 {dimension_numbers = #tpu.dot_dimension_numbers<[1], [0], [0], [1], [0, 0, 1, 1], [], []>} : vector<8x128xbf16>, vector<128x128xbf16>, vector<8x128xf32> -> vector<8x128xf32>
    %c1_47 = arith.constant 1 : index
    %c0_48 = arith.constant 0 : index
    %47 = vector.load %arg11[%c1_47, %c0_48] : memref<20x128xf32, #tpu.memory_space<vmem>>, vector<8x128xf32>
    %48 = arith.truncf %47 : vector<8x128xf32> to vector<8x128xbf16>
    %c1_49 = arith.constant 1 : index
    %c0_50 = arith.constant 0 : index
    %c0_51 = arith.constant 0 : index
    %49 = vector.load %arg5[%c1_49, %c0_50, %c0_51] : memref<3x128x128xbf16, #tpu.memory_space<vmem>>, vector<1x128x128xbf16>
    %50 = vector.shape_cast %49 : vector<1x128x128xbf16> to vector<128x128xbf16>
    %cst_52 = arith.constant dense<0.000000e+00> : vector<8x128xf32>
    %51 = tpu.matmul %48, %50, %cst_52 {dimension_numbers = #tpu.dot_dimension_numbers<[1], [0], [0], [1], [0, 0, 1, 1], [], []>} : vector<8x128xbf16>, vector<128x128xbf16>, vector<8x128xf32> -> vector<8x128xf32>
    %52 = arith.addf %46, %51 : vector<8x128xf32>
    %c2_53 = arith.constant 2 : index
    %c0_54 = arith.constant 0 : index
    %53 = vector.load %arg11[%c2_53, %c0_54] : memref<20x128xf32, #tpu.memory_space<vmem>>, vector<8x128xf32>
    %54 = arith.truncf %53 : vector<8x128xf32> to vector<8x128xbf16>
    %c2_55 = arith.constant 2 : index
    %c0_56 = arith.constant 0 : index
    %c0_57 = arith.constant 0 : index
    %55 = vector.load %arg5[%c2_55, %c0_56, %c0_57] : memref<3x128x128xbf16, #tpu.memory_space<vmem>>, vector<1x128x128xbf16>
    %56 = vector.shape_cast %55 : vector<1x128x128xbf16> to vector<128x128xbf16>
    %cst_58 = arith.constant dense<0.000000e+00> : vector<8x128xf32>
    %57 = tpu.matmul %54, %56, %cst_58 {dimension_numbers = #tpu.dot_dimension_numbers<[1], [0], [0], [1], [0, 0, 1, 1], [], []>} : vector<8x128xbf16>, vector<128x128xbf16>, vector<8x128xf32> -> vector<8x128xf32>
    %58 = arith.addf %52, %57 : vector<8x128xf32>
    %59 = vector.broadcast %41 : vector<1x128xf32> to vector<8x128xf32>
    %60 = arith.addf %58, %59 : vector<8x128xf32>
    %cst_59 = arith.constant 0.000000e+00 : f32
    %61 = vector.broadcast %cst_59 : f32 to vector<8x128xf32>
    %62 = arith.maximumf %60, %61 : vector<8x128xf32>
    %c10_60 = arith.constant 10 : index
    %c0_61 = arith.constant 0 : index
    %63 = vector.load %arg11[%c10_60, %c0_61] : memref<20x128xf32, #tpu.memory_space<vmem>>, vector<8x128xf32>
    %64 = arith.truncf %63 : vector<8x128xf32> to vector<8x128xbf16>
    %c0_62 = arith.constant 0 : index
    %c0_63 = arith.constant 0 : index
    %c0_64 = arith.constant 0 : index
    %65 = vector.load %arg5[%c0_62, %c0_63, %c0_64] : memref<3x128x128xbf16, #tpu.memory_space<vmem>>, vector<1x128x128xbf16>
    %66 = vector.shape_cast %65 : vector<1x128x128xbf16> to vector<128x128xbf16>
    %cst_65 = arith.constant dense<0.000000e+00> : vector<8x128xf32>
    %67 = tpu.matmul %64, %66, %cst_65 {dimension_numbers = #tpu.dot_dimension_numbers<[1], [0], [0], [1], [0, 0, 1, 1], [], []>} : vector<8x128xbf16>, vector<128x128xbf16>, vector<8x128xf32> -> vector<8x128xf32>
    %c11_66 = arith.constant 11 : index
    %c0_67 = arith.constant 0 : index
    %68 = vector.load %arg11[%c11_66, %c0_67] : memref<20x128xf32, #tpu.memory_space<vmem>>, vector<8x128xf32>
    %69 = arith.truncf %68 : vector<8x128xf32> to vector<8x128xbf16>
    %c1_68 = arith.constant 1 : index
    %c0_69 = arith.constant 0 : index
    %c0_70 = arith.constant 0 : index
    %70 = vector.load %arg5[%c1_68, %c0_69, %c0_70] : memref<3x128x128xbf16, #tpu.memory_space<vmem>>, vector<1x128x128xbf16>
    %71 = vector.shape_cast %70 : vector<1x128x128xbf16> to vector<128x128xbf16>
    %cst_71 = arith.constant dense<0.000000e+00> : vector<8x128xf32>
    %72 = tpu.matmul %69, %71, %cst_71 {dimension_numbers = #tpu.dot_dimension_numbers<[1], [0], [0], [1], [0, 0, 1, 1], [], []>} : vector<8x128xbf16>, vector<128x128xbf16>, vector<8x128xf32> -> vector<8x128xf32>
    %73 = arith.addf %67, %72 : vector<8x128xf32>
    %c12 = arith.constant 12 : index
    %c0_72 = arith.constant 0 : index
    %74 = vector.load %arg11[%c12, %c0_72] : memref<20x128xf32, #tpu.memory_space<vmem>>, vector<8x128xf32>
    %75 = arith.truncf %74 : vector<8x128xf32> to vector<8x128xbf16>
    %c2_73 = arith.constant 2 : index
    %c0_74 = arith.constant 0 : index
    %c0_75 = arith.constant 0 : index
    %76 = vector.load %arg5[%c2_73, %c0_74, %c0_75] : memref<3x128x128xbf16, #tpu.memory_space<vmem>>, vector<1x128x128xbf16>
    %77 = vector.shape_cast %76 : vector<1x128x128xbf16> to vector<128x128xbf16>
    %cst_76 = arith.constant dense<0.000000e+00> : vector<8x128xf32>
    %78 = tpu.matmul %75, %77, %cst_76 {dimension_numbers = #tpu.dot_dimension_numbers<[1], [0], [0], [1], [0, 0, 1, 1], [], []>} : vector<8x128xbf16>, vector<128x128xbf16>, vector<8x128xf32> -> vector<8x128xf32>
    %79 = arith.addf %73, %78 : vector<8x128xf32>
    %80 = vector.broadcast %41 : vector<1x128xf32> to vector<8x128xf32>
    %81 = arith.addf %79, %80 : vector<8x128xf32>
    %cst_77 = arith.constant 0.000000e+00 : f32
    %82 = vector.broadcast %cst_77 : f32 to vector<8x128xf32>
    %83 = arith.maximumf %81, %82 : vector<8x128xf32>
    %c1_78 = arith.constant 1 : index
    %c0_79 = arith.constant 0 : index
    %84 = vector.load %arg11[%c1_78, %c0_79] : memref<20x128xf32, #tpu.memory_space<vmem>>, vector<8x128xf32>
    tpu.vector_store %arg11[%c1_78, %c0_79], %62 {strides = array<i32>} : memref<20x128xf32, #tpu.memory_space<vmem>>, vector<8x128xf32>,
    %c11_80 = arith.constant 11 : index
    %c0_81 = arith.constant 0 : index
    %85 = vector.load %arg11[%c11_80, %c0_81] : memref<20x128xf32, #tpu.memory_space<vmem>>, vector<8x128xf32>
    tpu.vector_store %arg11[%c11_80, %c0_81], %83 {strides = array<i32>} : memref<20x128xf32, #tpu.memory_space<vmem>>, vector<8x128xf32>,
    %c0_82 = arith.constant 0 : index
    %c0_83 = arith.constant 0 : index
    %86 = vector.load %arg9[%c0_82, %c0_83] : memref<1x128xf32, #tpu.memory_space<vmem>>, vector<1x128xf32>
    %c0_84 = arith.constant 0 : index
    %c0_85 = arith.constant 0 : index
    %87 = vector.load %arg11[%c0_84, %c0_85] : memref<20x128xf32, #tpu.memory_space<vmem>>, vector<8x128xf32>
    %88 = arith.truncf %87 : vector<8x128xf32> to vector<8x128xbf16>
    %c0_86 = arith.constant 0 : index
    %c0_87 = arith.constant 0 : index
    %c0_88 = arith.constant 0 : index
    %89 = vector.load %arg7[%c0_86, %c0_87, %c0_88] : memref<3x128x128xbf16, #tpu.memory_space<vmem>>, vector<1x128x128xbf16>
    %90 = vector.shape_cast %89 : vector<1x128x128xbf16> to vector<128x128xbf16>
    %cst_89 = arith.constant dense<0.000000e+00> : vector<8x128xf32>
    %91 = tpu.matmul %88, %90, %cst_89 {dimension_numbers = #tpu.dot_dimension_numbers<[1], [0], [0], [1], [0, 0, 1, 1], [], []>} : vector<8x128xbf16>, vector<128x128xbf16>, vector<8x128xf32> -> vector<8x128xf32>
    %c1_90 = arith.constant 1 : index
    %c0_91 = arith.constant 0 : index
    %92 = vector.load %arg11[%c1_90, %c0_91] : memref<20x128xf32, #tpu.memory_space<vmem>>, vector<8x128xf32>
    %93 = arith.truncf %92 : vector<8x128xf32> to vector<8x128xbf16>
    %c1_92 = arith.constant 1 : index
    %c0_93 = arith.constant 0 : index
    %c0_94 = arith.constant 0 : index
    %94 = vector.load %arg7[%c1_92, %c0_93, %c0_94] : memref<3x128x128xbf16, #tpu.memory_space<vmem>>, vector<1x128x128xbf16>
    %95 = vector.shape_cast %94 : vector<1x128x128xbf16> to vector<128x128xbf16>
    %cst_95 = arith.constant dense<0.000000e+00> : vector<8x128xf32>
    %96 = tpu.matmul %93, %95, %cst_95 {dimension_numbers = #tpu.dot_dimension_numbers<[1], [0], [0], [1], [0, 0, 1, 1], [], []>} : vector<8x128xbf16>, vector<128x128xbf16>, vector<8x128xf32> -> vector<8x128xf32>
    %97 = arith.addf %91, %96 : vector<8x128xf32>
    %c2_96 = arith.constant 2 : index
    %c0_97 = arith.constant 0 : index
    %98 = vector.load %arg11[%c2_96, %c0_97] : memref<20x128xf32, #tpu.memory_space<vmem>>, vector<8x128xf32>
    %99 = arith.truncf %98 : vector<8x128xf32> to vector<8x128xbf16>
    %c2_98 = arith.constant 2 : index
    %c0_99 = arith.constant 0 : index
    %c0_100 = arith.constant 0 : index
    %100 = vector.load %arg7[%c2_98, %c0_99, %c0_100] : memref<3x128x128xbf16, #tpu.memory_space<vmem>>, vector<1x128x128xbf16>
    %101 = vector.shape_cast %100 : vector<1x128x128xbf16> to vector<128x128xbf16>
    %cst_101 = arith.constant dense<0.000000e+00> : vector<8x128xf32>
    %102 = tpu.matmul %99, %101, %cst_101 {dimension_numbers = #tpu.dot_dimension_numbers<[1], [0], [0], [1], [0, 0, 1, 1], [], []>} : vector<8x128xbf16>, vector<128x128xbf16>, vector<8x128xf32> -> vector<8x128xf32>
    %103 = arith.addf %97, %102 : vector<8x128xf32>
    %c0_102 = arith.constant 0 : index
    %c0_103 = arith.constant 0 : index
    %104 = vector.load %arg2[%c0_102, %c0_103] : memref<16x48xbf16, #tpu.memory_space<vmem>>, vector<8x48xbf16>
    %c0_104 = arith.constant 0 : index
    %c0_105 = arith.constant 0 : index
    %105 = vector.load %arg8[%c0_104, %c0_105] : memref<48x128xbf16, #tpu.memory_space<vmem>>, vector<48x128xbf16>
    %cst_106 = arith.constant dense<0.000000e+00> : vector<8x128xf32>
    %106 = tpu.matmul %104, %105, %cst_106 {dimension_numbers = #tpu.dot_dimension_numbers<[1], [0], [0], [1], [0, 0, 1, 1], [], []>} : vector<8x48xbf16>, vector<48x128xbf16>, vector<8x128xf32> -> vector<8x128xf32>
    %107 = arith.addf %103, %106 : vector<8x128xf32>
    %108 = vector.broadcast %86 : vector<1x128xf32> to vector<8x128xf32>
    %109 = arith.addf %107, %108 : vector<8x128xf32>
    %cst_107 = arith.constant 0.000000e+00 : f32
    %110 = vector.broadcast %cst_107 : f32 to vector<8x128xf32>
    %111 = arith.maximumf %109, %110 : vector<8x128xf32>
    %112 = arith.truncf %111 : vector<8x128xf32> to vector<8x128xbf16>
    %c0_108 = arith.constant 0 : index
    %c0_109 = arith.constant 0 : index
    %c0_110 = arith.constant 0 : index
    %113 = vector.load %arg10[%c0_108, %c0_109, %c0_110] : memref<2x8x128xbf16, #tpu.memory_space<vmem>>, vector<1x8x128xbf16>
    %114 = vector.shape_cast %113 : vector<1x8x128xbf16> to vector<8x128xbf16>
    %115 = vector.shape_cast %112 : vector<8x128xbf16> to vector<1x8x128xbf16>
    tpu.vector_store %arg10[%c0_108, %c0_109, %c0_110], %115 {strides = array<i32>} : memref<2x8x128xbf16, #tpu.memory_space<vmem>>, vector<1x8x128xbf16>,
    %c10_111 = arith.constant 10 : index
    %c0_112 = arith.constant 0 : index
    %116 = vector.load %arg11[%c10_111, %c0_112] : memref<20x128xf32, #tpu.memory_space<vmem>>, vector<8x128xf32>
    %117 = arith.truncf %116 : vector<8x128xf32> to vector<8x128xbf16>
    %c0_113 = arith.constant 0 : index
    %c0_114 = arith.constant 0 : index
    %c0_115 = arith.constant 0 : index
    %118 = vector.load %arg7[%c0_113, %c0_114, %c0_115] : memref<3x128x128xbf16, #tpu.memory_space<vmem>>, vector<1x128x128xbf16>
    %119 = vector.shape_cast %118 : vector<1x128x128xbf16> to vector<128x128xbf16>
    %cst_116 = arith.constant dense<0.000000e+00> : vector<8x128xf32>
    %120 = tpu.matmul %117, %119, %cst_116 {dimension_numbers = #tpu.dot_dimension_numbers<[1], [0], [0], [1], [0, 0, 1, 1], [], []>} : vector<8x128xbf16>, vector<128x128xbf16>, vector<8x128xf32> -> vector<8x128xf32>
    %c11_117 = arith.constant 11 : index
    %c0_118 = arith.constant 0 : index
    %121 = vector.load %arg11[%c11_117, %c0_118] : memref<20x128xf32, #tpu.memory_space<vmem>>, vector<8x128xf32>
    %122 = arith.truncf %121 : vector<8x128xf32> to vector<8x128xbf16>
    %c1_119 = arith.constant 1 : index
    %c0_120 = arith.constant 0 : index
    %c0_121 = arith.constant 0 : index
    %123 = vector.load %arg7[%c1_119, %c0_120, %c0_121] : memref<3x128x128xbf16, #tpu.memory_space<vmem>>, vector<1x128x128xbf16>
    %124 = vector.shape_cast %123 : vector<1x128x128xbf16> to vector<128x128xbf16>
    %cst_122 = arith.constant dense<0.000000e+00> : vector<8x128xf32>
    %125 = tpu.matmul %122, %124, %cst_122 {dimension_numbers = #tpu.dot_dimension_numbers<[1], [0], [0], [1], [0, 0, 1, 1], [], []>} : vector<8x128xbf16>, vector<128x128xbf16>, vector<8x128xf32> -> vector<8x128xf32>
    %126 = arith.addf %120, %125 : vector<8x128xf32>
    %c12_123 = arith.constant 12 : index
    %c0_124 = arith.constant 0 : index
    %127 = vector.load %arg11[%c12_123, %c0_124] : memref<20x128xf32, #tpu.memory_space<vmem>>, vector<8x128xf32>
    %128 = arith.truncf %127 : vector<8x128xf32> to vector<8x128xbf16>
    %c2_125 = arith.constant 2 : index
    %c0_126 = arith.constant 0 : index
    %c0_127 = arith.constant 0 : index
    %129 = vector.load %arg7[%c2_125, %c0_126, %c0_127] : memref<3x128x128xbf16, #tpu.memory_space<vmem>>, vector<1x128x128xbf16>
    %130 = vector.shape_cast %129 : vector<1x128x128xbf16> to vector<128x128xbf16>
    %cst_128 = arith.constant dense<0.000000e+00> : vector<8x128xf32>
    %131 = tpu.matmul %128, %130, %cst_128 {dimension_numbers = #tpu.dot_dimension_numbers<[1], [0], [0], [1], [0, 0, 1, 1], [], []>} : vector<8x128xbf16>, vector<128x128xbf16>, vector<8x128xf32> -> vector<8x128xf32>
    %132 = arith.addf %126, %131 : vector<8x128xf32>
    %c8_129 = arith.constant 8 : index
    %c0_130 = arith.constant 0 : index
    %133 = vector.load %arg2[%c8_129, %c0_130] : memref<16x48xbf16, #tpu.memory_space<vmem>>, vector<8x48xbf16>
    %c0_131 = arith.constant 0 : index
    %c0_132 = arith.constant 0 : index
    %134 = vector.load %arg8[%c0_131, %c0_132] : memref<48x128xbf16, #tpu.memory_space<vmem>>, vector<48x128xbf16>
    %cst_133 = arith.constant dense<0.000000e+00> : vector<8x128xf32>
    %135 = tpu.matmul %133, %134, %cst_133 {dimension_numbers = #tpu.dot_dimension_numbers<[1], [0], [0], [1], [0, 0, 1, 1], [], []>} : vector<8x48xbf16>, vector<48x128xbf16>, vector<8x128xf32> -> vector<8x128xf32>
    %136 = arith.addf %132, %135 : vector<8x128xf32>
    %137 = vector.broadcast %86 : vector<1x128xf32> to vector<8x128xf32>
    %138 = arith.addf %136, %137 : vector<8x128xf32>
    %cst_134 = arith.constant 0.000000e+00 : f32
    %139 = vector.broadcast %cst_134 : f32 to vector<8x128xf32>
    %140 = arith.maximumf %138, %139 : vector<8x128xf32>
    %141 = arith.truncf %140 : vector<8x128xf32> to vector<8x128xbf16>
    %c1_135 = arith.constant 1 : index
    %c0_136 = arith.constant 0 : index
    %c0_137 = arith.constant 0 : index
    %142 = vector.load %arg10[%c1_135, %c0_136, %c0_137] : memref<2x8x128xbf16, #tpu.memory_space<vmem>>, vector<1x8x128xbf16>
    %143 = vector.shape_cast %142 : vector<1x8x128xbf16> to vector<8x128xbf16>
    %144 = vector.shape_cast %141 : vector<8x128xbf16> to vector<1x8x128xbf16>
    tpu.vector_store %arg10[%c1_135, %c0_136, %c0_137], %144 {strides = array<i32>} : memref<2x8x128xbf16, #tpu.memory_space<vmem>>, vector<1x8x128xbf16>,
    return
  }
  func.func @transform_0(%arg0: i32) -> (i32, i32) {
    %c0_i32 = arith.constant 0 : i32
    %c0_i32_0 = arith.constant 0 : i32
    %c0_i32_1 = arith.constant 0 : i32
    return %c0_i32, %c0_i32_0 : i32, i32
  }
  func.func @transform_1(%arg0: i32) -> (i32, i32) {
    %c0_i32 = arith.constant 0 : i32
    %c0_i32_0 = arith.constant 0 : i32
    %c0_i32_1 = arith.constant 0 : i32
    return %c0_i32, %c0_i32_0 : i32, i32
  }
  func.func @transform_2(%arg0: i32) -> (i32, i32, i32) {
    %c0_i32 = arith.constant 0 : i32
    %c0_i32_0 = arith.constant 0 : i32
    %c0_i32_1 = arith.constant 0 : i32
    %c0_i32_2 = arith.constant 0 : i32
    return %c0_i32, %c0_i32_0, %c0_i32_1 : i32, i32, i32
  }
  func.func @transform_3(%arg0: i32) -> (i32, i32) {
    %c0_i32 = arith.constant 0 : i32
    %c0_i32_0 = arith.constant 0 : i32
    %c0_i32_1 = arith.constant 0 : i32
    return %c0_i32, %c0_i32_0 : i32, i32
  }
  func.func @transform_4(%arg0: i32) -> (i32, i32, i32) {
    %c0_i32 = arith.constant 0 : i32
    %c0_i32_0 = arith.constant 0 : i32
    %c0_i32_1 = arith.constant 0 : i32
    %c0_i32_2 = arith.constant 0 : i32
    return %c0_i32, %c0_i32_0, %c0_i32_1 : i32, i32, i32
  }
  func.func @transform_5(%arg0: i32) -> (i32, i32) {
    %c0_i32 = arith.constant 0 : i32
    %c0_i32_0 = arith.constant 0 : i32
    %c0_i32_1 = arith.constant 0 : i32
    return %c0_i32, %c0_i32_0 : i32, i32
  }
  func.func @transform_6(%arg0: i32) -> (i32, i32, i32) {
    %c0_i32 = arith.constant 0 : i32
    %c0_i32_0 = arith.constant 0 : i32
    %c0_i32_1 = arith.constant 0 : i32
    %c0_i32_2 = arith.constant 0 : i32
    return %c0_i32, %c0_i32_0, %c0_i32_1 : i32, i32, i32
  }
  func.func @transform_7(%arg0: i32) -> (i32, i32) {
    %c0_i32 = arith.constant 0 : i32
    %c0_i32_0 = arith.constant 0 : i32
    %c0_i32_1 = arith.constant 0 : i32
    return %c0_i32, %c0_i32_0 : i32, i32
  }
  func.func @transform_8(%arg0: i32) -> (i32, i32) {
    %c0_i32 = arith.constant 0 : i32
    %c0_i32_0 = arith.constant 0 : i32
    %c0_i32_1 = arith.constant 0 : i32
    return %c0_i32, %c0_i32_0 : i32, i32
  }
  func.func @transform_9(%arg0: i32) -> (i32, i32, i32) {
    %c0_i32 = arith.constant 0 : i32
    %c0_i32_0 = arith.constant 0 : i32
    %c0_i32_1 = arith.constant 0 : i32
    %c0_i32_2 = arith.constant 0 : i32
    return %c0_i32, %c0_i32_0, %c0_i32_1 : i32, i32, i32
  }
}

module attributes {stable_mosaic.version = 11 : i64} {
  func.func @_block_kernel(%arg0: i32, %arg1: memref<10x128xbf16, #tpu.memory_space<vmem>>, %arg2: memref<8x128xbf16, #tpu.memory_space<vmem>>, %arg3: memref<3x128x128xbf16, #tpu.memory_space<vmem>>, %arg4: memref<1x128xf32, #tpu.memory_space<vmem>>, %arg5: memref<3x128x128xbf16, #tpu.memory_space<vmem>>, %arg6: memref<1x128xf32, #tpu.memory_space<vmem>>, %arg7: memref<3x128x128xbf16, #tpu.memory_space<vmem>>, %arg8: memref<128x128xbf16, #tpu.memory_space<vmem>>, %arg9: memref<1x128xf32, #tpu.memory_space<vmem>>, %arg10: memref<2x4x128xbf16, #tpu.memory_space<vmem>>, %arg11: memref<12x128xf32, #tpu.memory_space<vmem>>) attributes {dimension_semantics = [#tpu.dimension_semantics<arbitrary>], iteration_bounds = array<i64: 1>, scalar_prefetch = 0 : i64, scratch_operands = 1 : i64, tpu.core_type = #tpu.core_type<tc>, window_params = [{pipeline_mode = #tpu.pipeline_mode<synchronous>, transform_indices = @transform_0, window_bounds = array<i64: 10, 128>}, {pipeline_mode = #tpu.pipeline_mode<synchronous>, transform_indices = @transform_1, window_bounds = array<i64: 8, 128>}, {pipeline_mode = #tpu.pipeline_mode<synchronous>, transform_indices = @transform_2, window_bounds = array<i64: 3, 128, 128>}, {pipeline_mode = #tpu.pipeline_mode<synchronous>, transform_indices = @transform_3, window_bounds = array<i64: 1, 128>}, {pipeline_mode = #tpu.pipeline_mode<synchronous>, transform_indices = @transform_4, window_bounds = array<i64: 3, 128, 128>}, {pipeline_mode = #tpu.pipeline_mode<synchronous>, transform_indices = @transform_5, window_bounds = array<i64: 1, 128>}, {pipeline_mode = #tpu.pipeline_mode<synchronous>, transform_indices = @transform_6, window_bounds = array<i64: 3, 128, 128>}, {pipeline_mode = #tpu.pipeline_mode<synchronous>, transform_indices = @transform_7, window_bounds = array<i64: 128, 128>}, {pipeline_mode = #tpu.pipeline_mode<synchronous>, transform_indices = @transform_8, window_bounds = array<i64: 1, 128>}, {pipeline_mode = #tpu.pipeline_mode<synchronous>, transform_indices = @transform_9, window_bounds = array<i64: 2, 4, 128>}]} {
    %cst = arith.constant 0.000000e+00 : f32
    %0 = vector.broadcast %cst : f32 to vector<12x128xf32>
    %c0 = arith.constant 0 : index
    %c0_0 = arith.constant 0 : index
    %1 = vector.load %arg11[%c0, %c0_0] : memref<12x128xf32, #tpu.memory_space<vmem>>, vector<12x128xf32>
    tpu.vector_store %arg11[%c0, %c0_0], %0 {strides = array<i32>} : memref<12x128xf32, #tpu.memory_space<vmem>>, vector<12x128xf32>,
    %c0_1 = arith.constant 0 : index
    %c0_2 = arith.constant 0 : index
    %2 = vector.load %arg4[%c0_1, %c0_2] : memref<1x128xf32, #tpu.memory_space<vmem>>, vector<1x128xf32>
    %c0_3 = arith.constant 0 : index
    %c0_4 = arith.constant 0 : index
    %3 = vector.load %arg1[%c0_3, %c0_4] : memref<10x128xbf16, #tpu.memory_space<vmem>>, vector<4x128xbf16>
    %c0_5 = arith.constant 0 : index
    %c0_6 = arith.constant 0 : index
    %c0_7 = arith.constant 0 : index
    %4 = vector.load %arg3[%c0_5, %c0_6, %c0_7] : memref<3x128x128xbf16, #tpu.memory_space<vmem>>, vector<1x128x128xbf16>
    %5 = vector.shape_cast %4 : vector<1x128x128xbf16> to vector<128x128xbf16>
    %cst_8 = arith.constant dense<0.000000e+00> : vector<4x128xf32>
    %6 = tpu.matmul %3, %5, %cst_8 {dimension_numbers = #tpu.dot_dimension_numbers<[1], [0], [0], [1], [0, 0, 1, 1], [], []>} : vector<4x128xbf16>, vector<128x128xbf16>, vector<4x128xf32> -> vector<4x128xf32>
    %c0_9 = arith.constant 0 : index
    %c0_10 = arith.constant 0 : index
    %7 = vector.load %arg2[%c0_9, %c0_10] : memref<8x128xbf16, #tpu.memory_space<vmem>>, vector<4x128xbf16>
    %c1 = arith.constant 1 : index
    %c0_11 = arith.constant 0 : index
    %c0_12 = arith.constant 0 : index
    %8 = vector.load %arg3[%c1, %c0_11, %c0_12] : memref<3x128x128xbf16, #tpu.memory_space<vmem>>, vector<1x128x128xbf16>
    %9 = vector.shape_cast %8 : vector<1x128x128xbf16> to vector<128x128xbf16>
    %cst_13 = arith.constant dense<0.000000e+00> : vector<4x128xf32>
    %10 = tpu.matmul %7, %9, %cst_13 {dimension_numbers = #tpu.dot_dimension_numbers<[1], [0], [0], [1], [0, 0, 1, 1], [], []>} : vector<4x128xbf16>, vector<128x128xbf16>, vector<4x128xf32> -> vector<4x128xf32>
    %11 = arith.addf %6, %10 : vector<4x128xf32>
    %c1_14 = arith.constant 1 : index
    %c0_15 = arith.constant 0 : index
    %12 = vector.load %arg1[%c1_14, %c0_15] : memref<10x128xbf16, #tpu.memory_space<vmem>>, vector<4x128xbf16>
    %c2 = arith.constant 2 : index
    %c0_16 = arith.constant 0 : index
    %c0_17 = arith.constant 0 : index
    %13 = vector.load %arg3[%c2, %c0_16, %c0_17] : memref<3x128x128xbf16, #tpu.memory_space<vmem>>, vector<1x128x128xbf16>
    %14 = vector.shape_cast %13 : vector<1x128x128xbf16> to vector<128x128xbf16>
    %cst_18 = arith.constant dense<0.000000e+00> : vector<4x128xf32>
    %15 = tpu.matmul %12, %14, %cst_18 {dimension_numbers = #tpu.dot_dimension_numbers<[1], [0], [0], [1], [0, 0, 1, 1], [], []>} : vector<4x128xbf16>, vector<128x128xbf16>, vector<4x128xf32> -> vector<4x128xf32>
    %16 = arith.addf %11, %15 : vector<4x128xf32>
    %17 = vector.broadcast %2 : vector<1x128xf32> to vector<4x128xf32>
    %18 = arith.addf %16, %17 : vector<4x128xf32>
    %cst_19 = arith.constant 0.000000e+00 : f32
    %19 = vector.broadcast %cst_19 : f32 to vector<4x128xf32>
    %20 = arith.maximumf %18, %19 : vector<4x128xf32>
    %c1_20 = arith.constant 1 : index
    %c0_21 = arith.constant 0 : index
    %21 = vector.load %arg11[%c1_20, %c0_21] : memref<12x128xf32, #tpu.memory_space<vmem>>, vector<4x128xf32>
    tpu.vector_store %arg11[%c1_20, %c0_21], %20 {strides = array<i32>} : memref<12x128xf32, #tpu.memory_space<vmem>>, vector<4x128xf32>,
    %c5 = arith.constant 5 : index
    %c0_22 = arith.constant 0 : index
    %22 = vector.load %arg1[%c5, %c0_22] : memref<10x128xbf16, #tpu.memory_space<vmem>>, vector<4x128xbf16>
    %c0_23 = arith.constant 0 : index
    %c0_24 = arith.constant 0 : index
    %c0_25 = arith.constant 0 : index
    %23 = vector.load %arg3[%c0_23, %c0_24, %c0_25] : memref<3x128x128xbf16, #tpu.memory_space<vmem>>, vector<1x128x128xbf16>
    %24 = vector.shape_cast %23 : vector<1x128x128xbf16> to vector<128x128xbf16>
    %cst_26 = arith.constant dense<0.000000e+00> : vector<4x128xf32>
    %25 = tpu.matmul %22, %24, %cst_26 {dimension_numbers = #tpu.dot_dimension_numbers<[1], [0], [0], [1], [0, 0, 1, 1], [], []>} : vector<4x128xbf16>, vector<128x128xbf16>, vector<4x128xf32> -> vector<4x128xf32>
    %c4 = arith.constant 4 : index
    %c0_27 = arith.constant 0 : index
    %26 = vector.load %arg2[%c4, %c0_27] : memref<8x128xbf16, #tpu.memory_space<vmem>>, vector<4x128xbf16>
    %c1_28 = arith.constant 1 : index
    %c0_29 = arith.constant 0 : index
    %c0_30 = arith.constant 0 : index
    %27 = vector.load %arg3[%c1_28, %c0_29, %c0_30] : memref<3x128x128xbf16, #tpu.memory_space<vmem>>, vector<1x128x128xbf16>
    %28 = vector.shape_cast %27 : vector<1x128x128xbf16> to vector<128x128xbf16>
    %cst_31 = arith.constant dense<0.000000e+00> : vector<4x128xf32>
    %29 = tpu.matmul %26, %28, %cst_31 {dimension_numbers = #tpu.dot_dimension_numbers<[1], [0], [0], [1], [0, 0, 1, 1], [], []>} : vector<4x128xbf16>, vector<128x128xbf16>, vector<4x128xf32> -> vector<4x128xf32>
    %30 = arith.addf %25, %29 : vector<4x128xf32>
    %c6 = arith.constant 6 : index
    %c0_32 = arith.constant 0 : index
    %31 = vector.load %arg1[%c6, %c0_32] : memref<10x128xbf16, #tpu.memory_space<vmem>>, vector<4x128xbf16>
    %c2_33 = arith.constant 2 : index
    %c0_34 = arith.constant 0 : index
    %c0_35 = arith.constant 0 : index
    %32 = vector.load %arg3[%c2_33, %c0_34, %c0_35] : memref<3x128x128xbf16, #tpu.memory_space<vmem>>, vector<1x128x128xbf16>
    %33 = vector.shape_cast %32 : vector<1x128x128xbf16> to vector<128x128xbf16>
    %cst_36 = arith.constant dense<0.000000e+00> : vector<4x128xf32>
    %34 = tpu.matmul %31, %33, %cst_36 {dimension_numbers = #tpu.dot_dimension_numbers<[1], [0], [0], [1], [0, 0, 1, 1], [], []>} : vector<4x128xbf16>, vector<128x128xbf16>, vector<4x128xf32> -> vector<4x128xf32>
    %35 = arith.addf %30, %34 : vector<4x128xf32>
    %36 = vector.broadcast %2 : vector<1x128xf32> to vector<4x128xf32>
    %37 = arith.addf %35, %36 : vector<4x128xf32>
    %cst_37 = arith.constant 0.000000e+00 : f32
    %38 = vector.broadcast %cst_37 : f32 to vector<4x128xf32>
    %39 = arith.maximumf %37, %38 : vector<4x128xf32>
    %c7 = arith.constant 7 : index
    %c0_38 = arith.constant 0 : index
    %40 = vector.load %arg11[%c7, %c0_38] : memref<12x128xf32, #tpu.memory_space<vmem>>, vector<4x128xf32>
    tpu.vector_store %arg11[%c7, %c0_38], %39 {strides = array<i32>} : memref<12x128xf32, #tpu.memory_space<vmem>>, vector<4x128xf32>,
    %c0_39 = arith.constant 0 : index
    %c0_40 = arith.constant 0 : index
    %41 = vector.load %arg6[%c0_39, %c0_40] : memref<1x128xf32, #tpu.memory_space<vmem>>, vector<1x128xf32>
    %c0_41 = arith.constant 0 : index
    %c0_42 = arith.constant 0 : index
    %42 = vector.load %arg11[%c0_41, %c0_42] : memref<12x128xf32, #tpu.memory_space<vmem>>, vector<4x128xf32>
    %43 = arith.truncf %42 : vector<4x128xf32> to vector<4x128xbf16>
    %c0_43 = arith.constant 0 : index
    %c0_44 = arith.constant 0 : index
    %c0_45 = arith.constant 0 : index
    %44 = vector.load %arg5[%c0_43, %c0_44, %c0_45] : memref<3x128x128xbf16, #tpu.memory_space<vmem>>, vector<1x128x128xbf16>
    %45 = vector.shape_cast %44 : vector<1x128x128xbf16> to vector<128x128xbf16>
    %cst_46 = arith.constant dense<0.000000e+00> : vector<4x128xf32>
    %46 = tpu.matmul %43, %45, %cst_46 {dimension_numbers = #tpu.dot_dimension_numbers<[1], [0], [0], [1], [0, 0, 1, 1], [], []>} : vector<4x128xbf16>, vector<128x128xbf16>, vector<4x128xf32> -> vector<4x128xf32>
    %c1_47 = arith.constant 1 : index
    %c0_48 = arith.constant 0 : index
    %47 = vector.load %arg11[%c1_47, %c0_48] : memref<12x128xf32, #tpu.memory_space<vmem>>, vector<4x128xf32>
    %48 = arith.truncf %47 : vector<4x128xf32> to vector<4x128xbf16>
    %c1_49 = arith.constant 1 : index
    %c0_50 = arith.constant 0 : index
    %c0_51 = arith.constant 0 : index
    %49 = vector.load %arg5[%c1_49, %c0_50, %c0_51] : memref<3x128x128xbf16, #tpu.memory_space<vmem>>, vector<1x128x128xbf16>
    %50 = vector.shape_cast %49 : vector<1x128x128xbf16> to vector<128x128xbf16>
    %cst_52 = arith.constant dense<0.000000e+00> : vector<4x128xf32>
    %51 = tpu.matmul %48, %50, %cst_52 {dimension_numbers = #tpu.dot_dimension_numbers<[1], [0], [0], [1], [0, 0, 1, 1], [], []>} : vector<4x128xbf16>, vector<128x128xbf16>, vector<4x128xf32> -> vector<4x128xf32>
    %52 = arith.addf %46, %51 : vector<4x128xf32>
    %c2_53 = arith.constant 2 : index
    %c0_54 = arith.constant 0 : index
    %53 = vector.load %arg11[%c2_53, %c0_54] : memref<12x128xf32, #tpu.memory_space<vmem>>, vector<4x128xf32>
    %54 = arith.truncf %53 : vector<4x128xf32> to vector<4x128xbf16>
    %c2_55 = arith.constant 2 : index
    %c0_56 = arith.constant 0 : index
    %c0_57 = arith.constant 0 : index
    %55 = vector.load %arg5[%c2_55, %c0_56, %c0_57] : memref<3x128x128xbf16, #tpu.memory_space<vmem>>, vector<1x128x128xbf16>
    %56 = vector.shape_cast %55 : vector<1x128x128xbf16> to vector<128x128xbf16>
    %cst_58 = arith.constant dense<0.000000e+00> : vector<4x128xf32>
    %57 = tpu.matmul %54, %56, %cst_58 {dimension_numbers = #tpu.dot_dimension_numbers<[1], [0], [0], [1], [0, 0, 1, 1], [], []>} : vector<4x128xbf16>, vector<128x128xbf16>, vector<4x128xf32> -> vector<4x128xf32>
    %58 = arith.addf %52, %57 : vector<4x128xf32>
    %59 = vector.broadcast %41 : vector<1x128xf32> to vector<4x128xf32>
    %60 = arith.addf %58, %59 : vector<4x128xf32>
    %cst_59 = arith.constant 0.000000e+00 : f32
    %61 = vector.broadcast %cst_59 : f32 to vector<4x128xf32>
    %62 = arith.maximumf %60, %61 : vector<4x128xf32>
    %c6_60 = arith.constant 6 : index
    %c0_61 = arith.constant 0 : index
    %63 = vector.load %arg11[%c6_60, %c0_61] : memref<12x128xf32, #tpu.memory_space<vmem>>, vector<4x128xf32>
    %64 = arith.truncf %63 : vector<4x128xf32> to vector<4x128xbf16>
    %c0_62 = arith.constant 0 : index
    %c0_63 = arith.constant 0 : index
    %c0_64 = arith.constant 0 : index
    %65 = vector.load %arg5[%c0_62, %c0_63, %c0_64] : memref<3x128x128xbf16, #tpu.memory_space<vmem>>, vector<1x128x128xbf16>
    %66 = vector.shape_cast %65 : vector<1x128x128xbf16> to vector<128x128xbf16>
    %cst_65 = arith.constant dense<0.000000e+00> : vector<4x128xf32>
    %67 = tpu.matmul %64, %66, %cst_65 {dimension_numbers = #tpu.dot_dimension_numbers<[1], [0], [0], [1], [0, 0, 1, 1], [], []>} : vector<4x128xbf16>, vector<128x128xbf16>, vector<4x128xf32> -> vector<4x128xf32>
    %c7_66 = arith.constant 7 : index
    %c0_67 = arith.constant 0 : index
    %68 = vector.load %arg11[%c7_66, %c0_67] : memref<12x128xf32, #tpu.memory_space<vmem>>, vector<4x128xf32>
    %69 = arith.truncf %68 : vector<4x128xf32> to vector<4x128xbf16>
    %c1_68 = arith.constant 1 : index
    %c0_69 = arith.constant 0 : index
    %c0_70 = arith.constant 0 : index
    %70 = vector.load %arg5[%c1_68, %c0_69, %c0_70] : memref<3x128x128xbf16, #tpu.memory_space<vmem>>, vector<1x128x128xbf16>
    %71 = vector.shape_cast %70 : vector<1x128x128xbf16> to vector<128x128xbf16>
    %cst_71 = arith.constant dense<0.000000e+00> : vector<4x128xf32>
    %72 = tpu.matmul %69, %71, %cst_71 {dimension_numbers = #tpu.dot_dimension_numbers<[1], [0], [0], [1], [0, 0, 1, 1], [], []>} : vector<4x128xbf16>, vector<128x128xbf16>, vector<4x128xf32> -> vector<4x128xf32>
    %73 = arith.addf %67, %72 : vector<4x128xf32>
    %c8 = arith.constant 8 : index
    %c0_72 = arith.constant 0 : index
    %74 = vector.load %arg11[%c8, %c0_72] : memref<12x128xf32, #tpu.memory_space<vmem>>, vector<4x128xf32>
    %75 = arith.truncf %74 : vector<4x128xf32> to vector<4x128xbf16>
    %c2_73 = arith.constant 2 : index
    %c0_74 = arith.constant 0 : index
    %c0_75 = arith.constant 0 : index
    %76 = vector.load %arg5[%c2_73, %c0_74, %c0_75] : memref<3x128x128xbf16, #tpu.memory_space<vmem>>, vector<1x128x128xbf16>
    %77 = vector.shape_cast %76 : vector<1x128x128xbf16> to vector<128x128xbf16>
    %cst_76 = arith.constant dense<0.000000e+00> : vector<4x128xf32>
    %78 = tpu.matmul %75, %77, %cst_76 {dimension_numbers = #tpu.dot_dimension_numbers<[1], [0], [0], [1], [0, 0, 1, 1], [], []>} : vector<4x128xbf16>, vector<128x128xbf16>, vector<4x128xf32> -> vector<4x128xf32>
    %79 = arith.addf %73, %78 : vector<4x128xf32>
    %80 = vector.broadcast %41 : vector<1x128xf32> to vector<4x128xf32>
    %81 = arith.addf %79, %80 : vector<4x128xf32>
    %cst_77 = arith.constant 0.000000e+00 : f32
    %82 = vector.broadcast %cst_77 : f32 to vector<4x128xf32>
    %83 = arith.maximumf %81, %82 : vector<4x128xf32>
    %c1_78 = arith.constant 1 : index
    %c0_79 = arith.constant 0 : index
    %84 = vector.load %arg11[%c1_78, %c0_79] : memref<12x128xf32, #tpu.memory_space<vmem>>, vector<4x128xf32>
    tpu.vector_store %arg11[%c1_78, %c0_79], %62 {strides = array<i32>} : memref<12x128xf32, #tpu.memory_space<vmem>>, vector<4x128xf32>,
    %c7_80 = arith.constant 7 : index
    %c0_81 = arith.constant 0 : index
    %85 = vector.load %arg11[%c7_80, %c0_81] : memref<12x128xf32, #tpu.memory_space<vmem>>, vector<4x128xf32>
    tpu.vector_store %arg11[%c7_80, %c0_81], %83 {strides = array<i32>} : memref<12x128xf32, #tpu.memory_space<vmem>>, vector<4x128xf32>,
    %c0_82 = arith.constant 0 : index
    %c0_83 = arith.constant 0 : index
    %86 = vector.load %arg9[%c0_82, %c0_83] : memref<1x128xf32, #tpu.memory_space<vmem>>, vector<1x128xf32>
    %c0_84 = arith.constant 0 : index
    %c0_85 = arith.constant 0 : index
    %87 = vector.load %arg11[%c0_84, %c0_85] : memref<12x128xf32, #tpu.memory_space<vmem>>, vector<4x128xf32>
    %88 = arith.truncf %87 : vector<4x128xf32> to vector<4x128xbf16>
    %c0_86 = arith.constant 0 : index
    %c0_87 = arith.constant 0 : index
    %c0_88 = arith.constant 0 : index
    %89 = vector.load %arg7[%c0_86, %c0_87, %c0_88] : memref<3x128x128xbf16, #tpu.memory_space<vmem>>, vector<1x128x128xbf16>
    %90 = vector.shape_cast %89 : vector<1x128x128xbf16> to vector<128x128xbf16>
    %cst_89 = arith.constant dense<0.000000e+00> : vector<4x128xf32>
    %91 = tpu.matmul %88, %90, %cst_89 {dimension_numbers = #tpu.dot_dimension_numbers<[1], [0], [0], [1], [0, 0, 1, 1], [], []>} : vector<4x128xbf16>, vector<128x128xbf16>, vector<4x128xf32> -> vector<4x128xf32>
    %c1_90 = arith.constant 1 : index
    %c0_91 = arith.constant 0 : index
    %92 = vector.load %arg11[%c1_90, %c0_91] : memref<12x128xf32, #tpu.memory_space<vmem>>, vector<4x128xf32>
    %93 = arith.truncf %92 : vector<4x128xf32> to vector<4x128xbf16>
    %c1_92 = arith.constant 1 : index
    %c0_93 = arith.constant 0 : index
    %c0_94 = arith.constant 0 : index
    %94 = vector.load %arg7[%c1_92, %c0_93, %c0_94] : memref<3x128x128xbf16, #tpu.memory_space<vmem>>, vector<1x128x128xbf16>
    %95 = vector.shape_cast %94 : vector<1x128x128xbf16> to vector<128x128xbf16>
    %cst_95 = arith.constant dense<0.000000e+00> : vector<4x128xf32>
    %96 = tpu.matmul %93, %95, %cst_95 {dimension_numbers = #tpu.dot_dimension_numbers<[1], [0], [0], [1], [0, 0, 1, 1], [], []>} : vector<4x128xbf16>, vector<128x128xbf16>, vector<4x128xf32> -> vector<4x128xf32>
    %97 = arith.addf %91, %96 : vector<4x128xf32>
    %c2_96 = arith.constant 2 : index
    %c0_97 = arith.constant 0 : index
    %98 = vector.load %arg11[%c2_96, %c0_97] : memref<12x128xf32, #tpu.memory_space<vmem>>, vector<4x128xf32>
    %99 = arith.truncf %98 : vector<4x128xf32> to vector<4x128xbf16>
    %c2_98 = arith.constant 2 : index
    %c0_99 = arith.constant 0 : index
    %c0_100 = arith.constant 0 : index
    %100 = vector.load %arg7[%c2_98, %c0_99, %c0_100] : memref<3x128x128xbf16, #tpu.memory_space<vmem>>, vector<1x128x128xbf16>
    %101 = vector.shape_cast %100 : vector<1x128x128xbf16> to vector<128x128xbf16>
    %cst_101 = arith.constant dense<0.000000e+00> : vector<4x128xf32>
    %102 = tpu.matmul %99, %101, %cst_101 {dimension_numbers = #tpu.dot_dimension_numbers<[1], [0], [0], [1], [0, 0, 1, 1], [], []>} : vector<4x128xbf16>, vector<128x128xbf16>, vector<4x128xf32> -> vector<4x128xf32>
    %103 = arith.addf %97, %102 : vector<4x128xf32>
    %c0_102 = arith.constant 0 : index
    %c0_103 = arith.constant 0 : index
    %104 = vector.load %arg2[%c0_102, %c0_103] : memref<8x128xbf16, #tpu.memory_space<vmem>>, vector<4x128xbf16>
    %c0_104 = arith.constant 0 : index
    %c0_105 = arith.constant 0 : index
    %105 = vector.load %arg8[%c0_104, %c0_105] : memref<128x128xbf16, #tpu.memory_space<vmem>>, vector<128x128xbf16>
    %cst_106 = arith.constant dense<0.000000e+00> : vector<4x128xf32>
    %106 = tpu.matmul %104, %105, %cst_106 {dimension_numbers = #tpu.dot_dimension_numbers<[1], [0], [0], [1], [0, 0, 1, 1], [], []>} : vector<4x128xbf16>, vector<128x128xbf16>, vector<4x128xf32> -> vector<4x128xf32>
    %107 = arith.addf %103, %106 : vector<4x128xf32>
    %108 = vector.broadcast %86 : vector<1x128xf32> to vector<4x128xf32>
    %109 = arith.addf %107, %108 : vector<4x128xf32>
    %cst_107 = arith.constant 0.000000e+00 : f32
    %110 = vector.broadcast %cst_107 : f32 to vector<4x128xf32>
    %111 = arith.maximumf %109, %110 : vector<4x128xf32>
    %112 = arith.truncf %111 : vector<4x128xf32> to vector<4x128xbf16>
    %c0_108 = arith.constant 0 : index
    %c0_109 = arith.constant 0 : index
    %c0_110 = arith.constant 0 : index
    %113 = vector.load %arg10[%c0_108, %c0_109, %c0_110] : memref<2x4x128xbf16, #tpu.memory_space<vmem>>, vector<1x4x128xbf16>
    %114 = vector.shape_cast %113 : vector<1x4x128xbf16> to vector<4x128xbf16>
    %115 = vector.shape_cast %112 : vector<4x128xbf16> to vector<1x4x128xbf16>
    tpu.vector_store %arg10[%c0_108, %c0_109, %c0_110], %115 {strides = array<i32>} : memref<2x4x128xbf16, #tpu.memory_space<vmem>>, vector<1x4x128xbf16>,
    %c6_111 = arith.constant 6 : index
    %c0_112 = arith.constant 0 : index
    %116 = vector.load %arg11[%c6_111, %c0_112] : memref<12x128xf32, #tpu.memory_space<vmem>>, vector<4x128xf32>
    %117 = arith.truncf %116 : vector<4x128xf32> to vector<4x128xbf16>
    %c0_113 = arith.constant 0 : index
    %c0_114 = arith.constant 0 : index
    %c0_115 = arith.constant 0 : index
    %118 = vector.load %arg7[%c0_113, %c0_114, %c0_115] : memref<3x128x128xbf16, #tpu.memory_space<vmem>>, vector<1x128x128xbf16>
    %119 = vector.shape_cast %118 : vector<1x128x128xbf16> to vector<128x128xbf16>
    %cst_116 = arith.constant dense<0.000000e+00> : vector<4x128xf32>
    %120 = tpu.matmul %117, %119, %cst_116 {dimension_numbers = #tpu.dot_dimension_numbers<[1], [0], [0], [1], [0, 0, 1, 1], [], []>} : vector<4x128xbf16>, vector<128x128xbf16>, vector<4x128xf32> -> vector<4x128xf32>
    %c7_117 = arith.constant 7 : index
    %c0_118 = arith.constant 0 : index
    %121 = vector.load %arg11[%c7_117, %c0_118] : memref<12x128xf32, #tpu.memory_space<vmem>>, vector<4x128xf32>
    %122 = arith.truncf %121 : vector<4x128xf32> to vector<4x128xbf16>
    %c1_119 = arith.constant 1 : index
    %c0_120 = arith.constant 0 : index
    %c0_121 = arith.constant 0 : index
    %123 = vector.load %arg7[%c1_119, %c0_120, %c0_121] : memref<3x128x128xbf16, #tpu.memory_space<vmem>>, vector<1x128x128xbf16>
    %124 = vector.shape_cast %123 : vector<1x128x128xbf16> to vector<128x128xbf16>
    %cst_122 = arith.constant dense<0.000000e+00> : vector<4x128xf32>
    %125 = tpu.matmul %122, %124, %cst_122 {dimension_numbers = #tpu.dot_dimension_numbers<[1], [0], [0], [1], [0, 0, 1, 1], [], []>} : vector<4x128xbf16>, vector<128x128xbf16>, vector<4x128xf32> -> vector<4x128xf32>
    %126 = arith.addf %120, %125 : vector<4x128xf32>
    %c8_123 = arith.constant 8 : index
    %c0_124 = arith.constant 0 : index
    %127 = vector.load %arg11[%c8_123, %c0_124] : memref<12x128xf32, #tpu.memory_space<vmem>>, vector<4x128xf32>
    %128 = arith.truncf %127 : vector<4x128xf32> to vector<4x128xbf16>
    %c2_125 = arith.constant 2 : index
    %c0_126 = arith.constant 0 : index
    %c0_127 = arith.constant 0 : index
    %129 = vector.load %arg7[%c2_125, %c0_126, %c0_127] : memref<3x128x128xbf16, #tpu.memory_space<vmem>>, vector<1x128x128xbf16>
    %130 = vector.shape_cast %129 : vector<1x128x128xbf16> to vector<128x128xbf16>
    %cst_128 = arith.constant dense<0.000000e+00> : vector<4x128xf32>
    %131 = tpu.matmul %128, %130, %cst_128 {dimension_numbers = #tpu.dot_dimension_numbers<[1], [0], [0], [1], [0, 0, 1, 1], [], []>} : vector<4x128xbf16>, vector<128x128xbf16>, vector<4x128xf32> -> vector<4x128xf32>
    %132 = arith.addf %126, %131 : vector<4x128xf32>
    %c4_129 = arith.constant 4 : index
    %c0_130 = arith.constant 0 : index
    %133 = vector.load %arg2[%c4_129, %c0_130] : memref<8x128xbf16, #tpu.memory_space<vmem>>, vector<4x128xbf16>
    %c0_131 = arith.constant 0 : index
    %c0_132 = arith.constant 0 : index
    %134 = vector.load %arg8[%c0_131, %c0_132] : memref<128x128xbf16, #tpu.memory_space<vmem>>, vector<128x128xbf16>
    %cst_133 = arith.constant dense<0.000000e+00> : vector<4x128xf32>
    %135 = tpu.matmul %133, %134, %cst_133 {dimension_numbers = #tpu.dot_dimension_numbers<[1], [0], [0], [1], [0, 0, 1, 1], [], []>} : vector<4x128xbf16>, vector<128x128xbf16>, vector<4x128xf32> -> vector<4x128xf32>
    %136 = arith.addf %132, %135 : vector<4x128xf32>
    %137 = vector.broadcast %86 : vector<1x128xf32> to vector<4x128xf32>
    %138 = arith.addf %136, %137 : vector<4x128xf32>
    %cst_134 = arith.constant 0.000000e+00 : f32
    %139 = vector.broadcast %cst_134 : f32 to vector<4x128xf32>
    %140 = arith.maximumf %138, %139 : vector<4x128xf32>
    %141 = arith.truncf %140 : vector<4x128xf32> to vector<4x128xbf16>
    %c1_135 = arith.constant 1 : index
    %c0_136 = arith.constant 0 : index
    %c0_137 = arith.constant 0 : index
    %142 = vector.load %arg10[%c1_135, %c0_136, %c0_137] : memref<2x4x128xbf16, #tpu.memory_space<vmem>>, vector<1x4x128xbf16>
    %143 = vector.shape_cast %142 : vector<1x4x128xbf16> to vector<4x128xbf16>
    %144 = vector.shape_cast %141 : vector<4x128xbf16> to vector<1x4x128xbf16>
    tpu.vector_store %arg10[%c1_135, %c0_136, %c0_137], %144 {strides = array<i32>} : memref<2x4x128xbf16, #tpu.memory_space<vmem>>, vector<1x4x128xbf16>,
    return
  }
  func.func @transform_0(%arg0: i32) -> (i32, i32) {
    %c0_i32 = arith.constant 0 : i32
    %c0_i32_0 = arith.constant 0 : i32
    %c0_i32_1 = arith.constant 0 : i32
    return %c0_i32, %c0_i32_0 : i32, i32
  }
  func.func @transform_1(%arg0: i32) -> (i32, i32) {
    %c0_i32 = arith.constant 0 : i32
    %c0_i32_0 = arith.constant 0 : i32
    %c0_i32_1 = arith.constant 0 : i32
    return %c0_i32, %c0_i32_0 : i32, i32
  }
  func.func @transform_2(%arg0: i32) -> (i32, i32, i32) {
    %c0_i32 = arith.constant 0 : i32
    %c0_i32_0 = arith.constant 0 : i32
    %c0_i32_1 = arith.constant 0 : i32
    %c0_i32_2 = arith.constant 0 : i32
    return %c0_i32, %c0_i32_0, %c0_i32_1 : i32, i32, i32
  }
  func.func @transform_3(%arg0: i32) -> (i32, i32) {
    %c0_i32 = arith.constant 0 : i32
    %c0_i32_0 = arith.constant 0 : i32
    %c0_i32_1 = arith.constant 0 : i32
    return %c0_i32, %c0_i32_0 : i32, i32
  }
  func.func @transform_4(%arg0: i32) -> (i32, i32, i32) {
    %c0_i32 = arith.constant 0 : i32
    %c0_i32_0 = arith.constant 0 : i32
    %c0_i32_1 = arith.constant 0 : i32
    %c0_i32_2 = arith.constant 0 : i32
    return %c0_i32, %c0_i32_0, %c0_i32_1 : i32, i32, i32
  }
  func.func @transform_5(%arg0: i32) -> (i32, i32) {
    %c0_i32 = arith.constant 0 : i32
    %c0_i32_0 = arith.constant 0 : i32
    %c0_i32_1 = arith.constant 0 : i32
    return %c0_i32, %c0_i32_0 : i32, i32
  }
  func.func @transform_6(%arg0: i32) -> (i32, i32, i32) {
    %c0_i32 = arith.constant 0 : i32
    %c0_i32_0 = arith.constant 0 : i32
    %c0_i32_1 = arith.constant 0 : i32
    %c0_i32_2 = arith.constant 0 : i32
    return %c0_i32, %c0_i32_0, %c0_i32_1 : i32, i32, i32
  }
  func.func @transform_7(%arg0: i32) -> (i32, i32) {
    %c0_i32 = arith.constant 0 : i32
    %c0_i32_0 = arith.constant 0 : i32
    %c0_i32_1 = arith.constant 0 : i32
    return %c0_i32, %c0_i32_0 : i32, i32
  }
  func.func @transform_8(%arg0: i32) -> (i32, i32) {
    %c0_i32 = arith.constant 0 : i32
    %c0_i32_0 = arith.constant 0 : i32
    %c0_i32_1 = arith.constant 0 : i32
    return %c0_i32, %c0_i32_0 : i32, i32
  }
  func.func @transform_9(%arg0: i32) -> (i32, i32, i32) {
    %c0_i32 = arith.constant 0 : i32
    %c0_i32_0 = arith.constant 0 : i32
    %c0_i32_1 = arith.constant 0 : i32
    %c0_i32_2 = arith.constant 0 : i32
    return %c0_i32, %c0_i32_0, %c0_i32_1 : i32, i32, i32
  }
}

module attributes {stable_mosaic.version = 11 : i64} {
  func.func @_block_kernel(%arg0: i32, %arg1: memref<4x128xbf16, #tpu.memory_space<vmem>>, %arg2: memref<2x128xbf16, #tpu.memory_space<vmem>>, %arg3: memref<3x128x128xbf16, #tpu.memory_space<vmem>>, %arg4: memref<1x128xf32, #tpu.memory_space<vmem>>, %arg5: memref<3x128x128xbf16, #tpu.memory_space<vmem>>, %arg6: memref<1x128xf32, #tpu.memory_space<vmem>>, %arg7: memref<3x128x128xbf16, #tpu.memory_space<vmem>>, %arg8: memref<128x128xbf16, #tpu.memory_space<vmem>>, %arg9: memref<1x128xf32, #tpu.memory_space<vmem>>, %arg10: memref<128x1xbf16, #tpu.memory_space<vmem>>, %arg11: memref<1x1xf32, #tpu.memory_space<vmem>>, %arg12: memref<2x1xf32, #tpu.memory_space<vmem>>, %arg13: memref<6x128xf32, #tpu.memory_space<vmem>>) attributes {dimension_semantics = [#tpu.dimension_semantics<arbitrary>], iteration_bounds = array<i64: 1>, scalar_prefetch = 0 : i64, scratch_operands = 1 : i64, tpu.core_type = #tpu.core_type<tc>, window_params = [{pipeline_mode = #tpu.pipeline_mode<synchronous>, transform_indices = @transform_0, window_bounds = array<i64: 4, 128>}, {pipeline_mode = #tpu.pipeline_mode<synchronous>, transform_indices = @transform_1, window_bounds = array<i64: 2, 128>}, {pipeline_mode = #tpu.pipeline_mode<synchronous>, transform_indices = @transform_2, window_bounds = array<i64: 3, 128, 128>}, {pipeline_mode = #tpu.pipeline_mode<synchronous>, transform_indices = @transform_3, window_bounds = array<i64: 1, 128>}, {pipeline_mode = #tpu.pipeline_mode<synchronous>, transform_indices = @transform_4, window_bounds = array<i64: 3, 128, 128>}, {pipeline_mode = #tpu.pipeline_mode<synchronous>, transform_indices = @transform_5, window_bounds = array<i64: 1, 128>}, {pipeline_mode = #tpu.pipeline_mode<synchronous>, transform_indices = @transform_6, window_bounds = array<i64: 3, 128, 128>}, {pipeline_mode = #tpu.pipeline_mode<synchronous>, transform_indices = @transform_7, window_bounds = array<i64: 128, 128>}, {pipeline_mode = #tpu.pipeline_mode<synchronous>, transform_indices = @transform_8, window_bounds = array<i64: 1, 128>}, {pipeline_mode = #tpu.pipeline_mode<synchronous>, transform_indices = @transform_9, window_bounds = array<i64: 128, 1>}, {pipeline_mode = #tpu.pipeline_mode<synchronous>, transform_indices = @transform_10, window_bounds = array<i64: 1, 1>}, {pipeline_mode = #tpu.pipeline_mode<synchronous>, transform_indices = @transform_11, window_bounds = array<i64: 2, 1>}]} {
    %cst = arith.constant 0.000000e+00 : f32
    %0 = vector.broadcast %cst : f32 to vector<6x128xf32>
    %c0 = arith.constant 0 : index
    %c0_0 = arith.constant 0 : index
    %1 = vector.load %arg13[%c0, %c0_0] : memref<6x128xf32, #tpu.memory_space<vmem>>, vector<6x128xf32>
    tpu.vector_store %arg13[%c0, %c0_0], %0 {strides = array<i32>} : memref<6x128xf32, #tpu.memory_space<vmem>>, vector<6x128xf32>,
    %c0_1 = arith.constant 0 : index
    %c0_2 = arith.constant 0 : index
    %2 = vector.load %arg4[%c0_1, %c0_2] : memref<1x128xf32, #tpu.memory_space<vmem>>, vector<1x128xf32>
    %c0_3 = arith.constant 0 : index
    %c0_4 = arith.constant 0 : index
    %3 = vector.load %arg1[%c0_3, %c0_4] : memref<4x128xbf16, #tpu.memory_space<vmem>>, vector<1x128xbf16>
    %c0_5 = arith.constant 0 : index
    %c0_6 = arith.constant 0 : index
    %c0_7 = arith.constant 0 : index
    %4 = vector.load %arg3[%c0_5, %c0_6, %c0_7] : memref<3x128x128xbf16, #tpu.memory_space<vmem>>, vector<1x128x128xbf16>
    %5 = vector.shape_cast %4 : vector<1x128x128xbf16> to vector<128x128xbf16>
    %cst_8 = arith.constant dense<0.000000e+00> : vector<1x128xf32>
    %6 = tpu.matmul %3, %5, %cst_8 {dimension_numbers = #tpu.dot_dimension_numbers<[1], [0], [0], [1], [0, 0, 1, 1], [], []>} : vector<1x128xbf16>, vector<128x128xbf16>, vector<1x128xf32> -> vector<1x128xf32>
    %c0_9 = arith.constant 0 : index
    %c0_10 = arith.constant 0 : index
    %7 = vector.load %arg2[%c0_9, %c0_10] : memref<2x128xbf16, #tpu.memory_space<vmem>>, vector<1x128xbf16>
    %c1 = arith.constant 1 : index
    %c0_11 = arith.constant 0 : index
    %c0_12 = arith.constant 0 : index
    %8 = vector.load %arg3[%c1, %c0_11, %c0_12] : memref<3x128x128xbf16, #tpu.memory_space<vmem>>, vector<1x128x128xbf16>
    %9 = vector.shape_cast %8 : vector<1x128x128xbf16> to vector<128x128xbf16>
    %cst_13 = arith.constant dense<0.000000e+00> : vector<1x128xf32>
    %10 = tpu.matmul %7, %9, %cst_13 {dimension_numbers = #tpu.dot_dimension_numbers<[1], [0], [0], [1], [0, 0, 1, 1], [], []>} : vector<1x128xbf16>, vector<128x128xbf16>, vector<1x128xf32> -> vector<1x128xf32>
    %11 = arith.addf %6, %10 : vector<1x128xf32>
    %c1_14 = arith.constant 1 : index
    %c0_15 = arith.constant 0 : index
    %12 = vector.load %arg1[%c1_14, %c0_15] : memref<4x128xbf16, #tpu.memory_space<vmem>>, vector<1x128xbf16>
    %c2 = arith.constant 2 : index
    %c0_16 = arith.constant 0 : index
    %c0_17 = arith.constant 0 : index
    %13 = vector.load %arg3[%c2, %c0_16, %c0_17] : memref<3x128x128xbf16, #tpu.memory_space<vmem>>, vector<1x128x128xbf16>
    %14 = vector.shape_cast %13 : vector<1x128x128xbf16> to vector<128x128xbf16>
    %cst_18 = arith.constant dense<0.000000e+00> : vector<1x128xf32>
    %15 = tpu.matmul %12, %14, %cst_18 {dimension_numbers = #tpu.dot_dimension_numbers<[1], [0], [0], [1], [0, 0, 1, 1], [], []>} : vector<1x128xbf16>, vector<128x128xbf16>, vector<1x128xf32> -> vector<1x128xf32>
    %16 = arith.addf %11, %15 : vector<1x128xf32>
    %17 = arith.addf %16, %2 : vector<1x128xf32>
    %cst_19 = arith.constant 0.000000e+00 : f32
    %18 = vector.broadcast %cst_19 : f32 to vector<1x128xf32>
    %19 = arith.maximumf %17, %18 : vector<1x128xf32>
    %c1_20 = arith.constant 1 : index
    %c0_21 = arith.constant 0 : index
    %20 = vector.load %arg13[%c1_20, %c0_21] : memref<6x128xf32, #tpu.memory_space<vmem>>, vector<1x128xf32>
    tpu.vector_store %arg13[%c1_20, %c0_21], %19 {strides = array<i32>} : memref<6x128xf32, #tpu.memory_space<vmem>>, vector<1x128xf32>,
    %c2_22 = arith.constant 2 : index
    %c0_23 = arith.constant 0 : index
    %21 = vector.load %arg1[%c2_22, %c0_23] : memref<4x128xbf16, #tpu.memory_space<vmem>>, vector<1x128xbf16>
    %c0_24 = arith.constant 0 : index
    %c0_25 = arith.constant 0 : index
    %c0_26 = arith.constant 0 : index
    %22 = vector.load %arg3[%c0_24, %c0_25, %c0_26] : memref<3x128x128xbf16, #tpu.memory_space<vmem>>, vector<1x128x128xbf16>
    %23 = vector.shape_cast %22 : vector<1x128x128xbf16> to vector<128x128xbf16>
    %cst_27 = arith.constant dense<0.000000e+00> : vector<1x128xf32>
    %24 = tpu.matmul %21, %23, %cst_27 {dimension_numbers = #tpu.dot_dimension_numbers<[1], [0], [0], [1], [0, 0, 1, 1], [], []>} : vector<1x128xbf16>, vector<128x128xbf16>, vector<1x128xf32> -> vector<1x128xf32>
    %c1_28 = arith.constant 1 : index
    %c0_29 = arith.constant 0 : index
    %25 = vector.load %arg2[%c1_28, %c0_29] : memref<2x128xbf16, #tpu.memory_space<vmem>>, vector<1x128xbf16>
    %c1_30 = arith.constant 1 : index
    %c0_31 = arith.constant 0 : index
    %c0_32 = arith.constant 0 : index
    %26 = vector.load %arg3[%c1_30, %c0_31, %c0_32] : memref<3x128x128xbf16, #tpu.memory_space<vmem>>, vector<1x128x128xbf16>
    %27 = vector.shape_cast %26 : vector<1x128x128xbf16> to vector<128x128xbf16>
    %cst_33 = arith.constant dense<0.000000e+00> : vector<1x128xf32>
    %28 = tpu.matmul %25, %27, %cst_33 {dimension_numbers = #tpu.dot_dimension_numbers<[1], [0], [0], [1], [0, 0, 1, 1], [], []>} : vector<1x128xbf16>, vector<128x128xbf16>, vector<1x128xf32> -> vector<1x128xf32>
    %29 = arith.addf %24, %28 : vector<1x128xf32>
    %c3 = arith.constant 3 : index
    %c0_34 = arith.constant 0 : index
    %30 = vector.load %arg1[%c3, %c0_34] : memref<4x128xbf16, #tpu.memory_space<vmem>>, vector<1x128xbf16>
    %c2_35 = arith.constant 2 : index
    %c0_36 = arith.constant 0 : index
    %c0_37 = arith.constant 0 : index
    %31 = vector.load %arg3[%c2_35, %c0_36, %c0_37] : memref<3x128x128xbf16, #tpu.memory_space<vmem>>, vector<1x128x128xbf16>
    %32 = vector.shape_cast %31 : vector<1x128x128xbf16> to vector<128x128xbf16>
    %cst_38 = arith.constant dense<0.000000e+00> : vector<1x128xf32>
    %33 = tpu.matmul %30, %32, %cst_38 {dimension_numbers = #tpu.dot_dimension_numbers<[1], [0], [0], [1], [0, 0, 1, 1], [], []>} : vector<1x128xbf16>, vector<128x128xbf16>, vector<1x128xf32> -> vector<1x128xf32>
    %34 = arith.addf %29, %33 : vector<1x128xf32>
    %35 = arith.addf %34, %2 : vector<1x128xf32>
    %cst_39 = arith.constant 0.000000e+00 : f32
    %36 = vector.broadcast %cst_39 : f32 to vector<1x128xf32>
    %37 = arith.maximumf %35, %36 : vector<1x128xf32>
    %c4 = arith.constant 4 : index
    %c0_40 = arith.constant 0 : index
    %38 = vector.load %arg13[%c4, %c0_40] : memref<6x128xf32, #tpu.memory_space<vmem>>, vector<1x128xf32>
    tpu.vector_store %arg13[%c4, %c0_40], %37 {strides = array<i32>} : memref<6x128xf32, #tpu.memory_space<vmem>>, vector<1x128xf32>,
    %c0_41 = arith.constant 0 : index
    %c0_42 = arith.constant 0 : index
    %39 = vector.load %arg6[%c0_41, %c0_42] : memref<1x128xf32, #tpu.memory_space<vmem>>, vector<1x128xf32>
    %c0_43 = arith.constant 0 : index
    %c0_44 = arith.constant 0 : index
    %40 = vector.load %arg13[%c0_43, %c0_44] : memref<6x128xf32, #tpu.memory_space<vmem>>, vector<1x128xf32>
    %41 = arith.truncf %40 : vector<1x128xf32> to vector<1x128xbf16>
    %c0_45 = arith.constant 0 : index
    %c0_46 = arith.constant 0 : index
    %c0_47 = arith.constant 0 : index
    %42 = vector.load %arg5[%c0_45, %c0_46, %c0_47] : memref<3x128x128xbf16, #tpu.memory_space<vmem>>, vector<1x128x128xbf16>
    %43 = vector.shape_cast %42 : vector<1x128x128xbf16> to vector<128x128xbf16>
    %cst_48 = arith.constant dense<0.000000e+00> : vector<1x128xf32>
    %44 = tpu.matmul %41, %43, %cst_48 {dimension_numbers = #tpu.dot_dimension_numbers<[1], [0], [0], [1], [0, 0, 1, 1], [], []>} : vector<1x128xbf16>, vector<128x128xbf16>, vector<1x128xf32> -> vector<1x128xf32>
    %c1_49 = arith.constant 1 : index
    %c0_50 = arith.constant 0 : index
    %45 = vector.load %arg13[%c1_49, %c0_50] : memref<6x128xf32, #tpu.memory_space<vmem>>, vector<1x128xf32>
    %46 = arith.truncf %45 : vector<1x128xf32> to vector<1x128xbf16>
    %c1_51 = arith.constant 1 : index
    %c0_52 = arith.constant 0 : index
    %c0_53 = arith.constant 0 : index
    %47 = vector.load %arg5[%c1_51, %c0_52, %c0_53] : memref<3x128x128xbf16, #tpu.memory_space<vmem>>, vector<1x128x128xbf16>
    %48 = vector.shape_cast %47 : vector<1x128x128xbf16> to vector<128x128xbf16>
    %cst_54 = arith.constant dense<0.000000e+00> : vector<1x128xf32>
    %49 = tpu.matmul %46, %48, %cst_54 {dimension_numbers = #tpu.dot_dimension_numbers<[1], [0], [0], [1], [0, 0, 1, 1], [], []>} : vector<1x128xbf16>, vector<128x128xbf16>, vector<1x128xf32> -> vector<1x128xf32>
    %50 = arith.addf %44, %49 : vector<1x128xf32>
    %c2_55 = arith.constant 2 : index
    %c0_56 = arith.constant 0 : index
    %51 = vector.load %arg13[%c2_55, %c0_56] : memref<6x128xf32, #tpu.memory_space<vmem>>, vector<1x128xf32>
    %52 = arith.truncf %51 : vector<1x128xf32> to vector<1x128xbf16>
    %c2_57 = arith.constant 2 : index
    %c0_58 = arith.constant 0 : index
    %c0_59 = arith.constant 0 : index
    %53 = vector.load %arg5[%c2_57, %c0_58, %c0_59] : memref<3x128x128xbf16, #tpu.memory_space<vmem>>, vector<1x128x128xbf16>
    %54 = vector.shape_cast %53 : vector<1x128x128xbf16> to vector<128x128xbf16>
    %cst_60 = arith.constant dense<0.000000e+00> : vector<1x128xf32>
    %55 = tpu.matmul %52, %54, %cst_60 {dimension_numbers = #tpu.dot_dimension_numbers<[1], [0], [0], [1], [0, 0, 1, 1], [], []>} : vector<1x128xbf16>, vector<128x128xbf16>, vector<1x128xf32> -> vector<1x128xf32>
    %56 = arith.addf %50, %55 : vector<1x128xf32>
    %57 = arith.addf %56, %39 : vector<1x128xf32>
    %cst_61 = arith.constant 0.000000e+00 : f32
    %58 = vector.broadcast %cst_61 : f32 to vector<1x128xf32>
    %59 = arith.maximumf %57, %58 : vector<1x128xf32>
    %c3_62 = arith.constant 3 : index
    %c0_63 = arith.constant 0 : index
    %60 = vector.load %arg13[%c3_62, %c0_63] : memref<6x128xf32, #tpu.memory_space<vmem>>, vector<1x128xf32>
    %61 = arith.truncf %60 : vector<1x128xf32> to vector<1x128xbf16>
    %c0_64 = arith.constant 0 : index
    %c0_65 = arith.constant 0 : index
    %c0_66 = arith.constant 0 : index
    %62 = vector.load %arg5[%c0_64, %c0_65, %c0_66] : memref<3x128x128xbf16, #tpu.memory_space<vmem>>, vector<1x128x128xbf16>
    %63 = vector.shape_cast %62 : vector<1x128x128xbf16> to vector<128x128xbf16>
    %cst_67 = arith.constant dense<0.000000e+00> : vector<1x128xf32>
    %64 = tpu.matmul %61, %63, %cst_67 {dimension_numbers = #tpu.dot_dimension_numbers<[1], [0], [0], [1], [0, 0, 1, 1], [], []>} : vector<1x128xbf16>, vector<128x128xbf16>, vector<1x128xf32> -> vector<1x128xf32>
    %c4_68 = arith.constant 4 : index
    %c0_69 = arith.constant 0 : index
    %65 = vector.load %arg13[%c4_68, %c0_69] : memref<6x128xf32, #tpu.memory_space<vmem>>, vector<1x128xf32>
    %66 = arith.truncf %65 : vector<1x128xf32> to vector<1x128xbf16>
    %c1_70 = arith.constant 1 : index
    %c0_71 = arith.constant 0 : index
    %c0_72 = arith.constant 0 : index
    %67 = vector.load %arg5[%c1_70, %c0_71, %c0_72] : memref<3x128x128xbf16, #tpu.memory_space<vmem>>, vector<1x128x128xbf16>
    %68 = vector.shape_cast %67 : vector<1x128x128xbf16> to vector<128x128xbf16>
    %cst_73 = arith.constant dense<0.000000e+00> : vector<1x128xf32>
    %69 = tpu.matmul %66, %68, %cst_73 {dimension_numbers = #tpu.dot_dimension_numbers<[1], [0], [0], [1], [0, 0, 1, 1], [], []>} : vector<1x128xbf16>, vector<128x128xbf16>, vector<1x128xf32> -> vector<1x128xf32>
    %70 = arith.addf %64, %69 : vector<1x128xf32>
    %c5 = arith.constant 5 : index
    %c0_74 = arith.constant 0 : index
    %71 = vector.load %arg13[%c5, %c0_74] : memref<6x128xf32, #tpu.memory_space<vmem>>, vector<1x128xf32>
    %72 = arith.truncf %71 : vector<1x128xf32> to vector<1x128xbf16>
    %c2_75 = arith.constant 2 : index
    %c0_76 = arith.constant 0 : index
    %c0_77 = arith.constant 0 : index
    %73 = vector.load %arg5[%c2_75, %c0_76, %c0_77] : memref<3x128x128xbf16, #tpu.memory_space<vmem>>, vector<1x128x128xbf16>
    %74 = vector.shape_cast %73 : vector<1x128x128xbf16> to vector<128x128xbf16>
    %cst_78 = arith.constant dense<0.000000e+00> : vector<1x128xf32>
    %75 = tpu.matmul %72, %74, %cst_78 {dimension_numbers = #tpu.dot_dimension_numbers<[1], [0], [0], [1], [0, 0, 1, 1], [], []>} : vector<1x128xbf16>, vector<128x128xbf16>, vector<1x128xf32> -> vector<1x128xf32>
    %76 = arith.addf %70, %75 : vector<1x128xf32>
    %77 = arith.addf %76, %39 : vector<1x128xf32>
    %cst_79 = arith.constant 0.000000e+00 : f32
    %78 = vector.broadcast %cst_79 : f32 to vector<1x128xf32>
    %79 = arith.maximumf %77, %78 : vector<1x128xf32>
    %c1_80 = arith.constant 1 : index
    %c0_81 = arith.constant 0 : index
    %80 = vector.load %arg13[%c1_80, %c0_81] : memref<6x128xf32, #tpu.memory_space<vmem>>, vector<1x128xf32>
    tpu.vector_store %arg13[%c1_80, %c0_81], %59 {strides = array<i32>} : memref<6x128xf32, #tpu.memory_space<vmem>>, vector<1x128xf32>,
    %c4_82 = arith.constant 4 : index
    %c0_83 = arith.constant 0 : index
    %81 = vector.load %arg13[%c4_82, %c0_83] : memref<6x128xf32, #tpu.memory_space<vmem>>, vector<1x128xf32>
    tpu.vector_store %arg13[%c4_82, %c0_83], %79 {strides = array<i32>} : memref<6x128xf32, #tpu.memory_space<vmem>>, vector<1x128xf32>,
    %c0_84 = arith.constant 0 : index
    %c0_85 = arith.constant 0 : index
    %82 = vector.load %arg9[%c0_84, %c0_85] : memref<1x128xf32, #tpu.memory_space<vmem>>, vector<1x128xf32>
    %c0_86 = arith.constant 0 : index
    %c0_87 = arith.constant 0 : index
    %83 = vector.load %arg13[%c0_86, %c0_87] : memref<6x128xf32, #tpu.memory_space<vmem>>, vector<1x128xf32>
    %84 = arith.truncf %83 : vector<1x128xf32> to vector<1x128xbf16>
    %c0_88 = arith.constant 0 : index
    %c0_89 = arith.constant 0 : index
    %c0_90 = arith.constant 0 : index
    %85 = vector.load %arg7[%c0_88, %c0_89, %c0_90] : memref<3x128x128xbf16, #tpu.memory_space<vmem>>, vector<1x128x128xbf16>
    %86 = vector.shape_cast %85 : vector<1x128x128xbf16> to vector<128x128xbf16>
    %cst_91 = arith.constant dense<0.000000e+00> : vector<1x128xf32>
    %87 = tpu.matmul %84, %86, %cst_91 {dimension_numbers = #tpu.dot_dimension_numbers<[1], [0], [0], [1], [0, 0, 1, 1], [], []>} : vector<1x128xbf16>, vector<128x128xbf16>, vector<1x128xf32> -> vector<1x128xf32>
    %c1_92 = arith.constant 1 : index
    %c0_93 = arith.constant 0 : index
    %88 = vector.load %arg13[%c1_92, %c0_93] : memref<6x128xf32, #tpu.memory_space<vmem>>, vector<1x128xf32>
    %89 = arith.truncf %88 : vector<1x128xf32> to vector<1x128xbf16>
    %c1_94 = arith.constant 1 : index
    %c0_95 = arith.constant 0 : index
    %c0_96 = arith.constant 0 : index
    %90 = vector.load %arg7[%c1_94, %c0_95, %c0_96] : memref<3x128x128xbf16, #tpu.memory_space<vmem>>, vector<1x128x128xbf16>
    %91 = vector.shape_cast %90 : vector<1x128x128xbf16> to vector<128x128xbf16>
    %cst_97 = arith.constant dense<0.000000e+00> : vector<1x128xf32>
    %92 = tpu.matmul %89, %91, %cst_97 {dimension_numbers = #tpu.dot_dimension_numbers<[1], [0], [0], [1], [0, 0, 1, 1], [], []>} : vector<1x128xbf16>, vector<128x128xbf16>, vector<1x128xf32> -> vector<1x128xf32>
    %93 = arith.addf %87, %92 : vector<1x128xf32>
    %c2_98 = arith.constant 2 : index
    %c0_99 = arith.constant 0 : index
    %94 = vector.load %arg13[%c2_98, %c0_99] : memref<6x128xf32, #tpu.memory_space<vmem>>, vector<1x128xf32>
    %95 = arith.truncf %94 : vector<1x128xf32> to vector<1x128xbf16>
    %c2_100 = arith.constant 2 : index
    %c0_101 = arith.constant 0 : index
    %c0_102 = arith.constant 0 : index
    %96 = vector.load %arg7[%c2_100, %c0_101, %c0_102] : memref<3x128x128xbf16, #tpu.memory_space<vmem>>, vector<1x128x128xbf16>
    %97 = vector.shape_cast %96 : vector<1x128x128xbf16> to vector<128x128xbf16>
    %cst_103 = arith.constant dense<0.000000e+00> : vector<1x128xf32>
    %98 = tpu.matmul %95, %97, %cst_103 {dimension_numbers = #tpu.dot_dimension_numbers<[1], [0], [0], [1], [0, 0, 1, 1], [], []>} : vector<1x128xbf16>, vector<128x128xbf16>, vector<1x128xf32> -> vector<1x128xf32>
    %99 = arith.addf %93, %98 : vector<1x128xf32>
    %c0_104 = arith.constant 0 : index
    %c0_105 = arith.constant 0 : index
    %100 = vector.load %arg2[%c0_104, %c0_105] : memref<2x128xbf16, #tpu.memory_space<vmem>>, vector<1x128xbf16>
    %c0_106 = arith.constant 0 : index
    %c0_107 = arith.constant 0 : index
    %101 = vector.load %arg8[%c0_106, %c0_107] : memref<128x128xbf16, #tpu.memory_space<vmem>>, vector<128x128xbf16>
    %cst_108 = arith.constant dense<0.000000e+00> : vector<1x128xf32>
    %102 = tpu.matmul %100, %101, %cst_108 {dimension_numbers = #tpu.dot_dimension_numbers<[1], [0], [0], [1], [0, 0, 1, 1], [], []>} : vector<1x128xbf16>, vector<128x128xbf16>, vector<1x128xf32> -> vector<1x128xf32>
    %103 = arith.addf %99, %102 : vector<1x128xf32>
    %104 = arith.addf %103, %82 : vector<1x128xf32>
    %cst_109 = arith.constant 0.000000e+00 : f32
    %105 = vector.broadcast %cst_109 : f32 to vector<1x128xf32>
    %106 = arith.maximumf %104, %105 : vector<1x128xf32>
    %cst_110 = arith.constant dense<0.000000e+00> : vector<128xf32>
    %107 = vector.multi_reduction <add>, %106, %cst_110 [0] : vector<1x128xf32> to vector<128xf32>
    %108 = vector.shape_cast %107 : vector<128xf32> to vector<1x128xf32>
    %cst_111 = arith.constant 1.000000e+00 : f32
    %109 = vector.broadcast %cst_111 : f32 to vector<1x128xf32>
    %110 = arith.mulf %108, %109 : vector<1x128xf32>
    %111 = arith.truncf %110 : vector<1x128xf32> to vector<1x128xbf16>
    %c0_112 = arith.constant 0 : index
    %c0_113 = arith.constant 0 : index
    %112 = vector.load %arg10[%c0_112, %c0_113] : memref<128x1xbf16, #tpu.memory_space<vmem>>, vector<128x1xbf16>
    %cst_114 = arith.constant dense<0.000000e+00> : vector<1x1xf32>
    %113 = tpu.matmul %111, %112, %cst_114 {dimension_numbers = #tpu.dot_dimension_numbers<[1], [0], [0], [1], [0, 0, 1, 1], [], []>} : vector<1x128xbf16>, vector<128x1xbf16>, vector<1x1xf32> -> vector<1x1xf32>
    %c0_115 = arith.constant 0 : index
    %c0_116 = arith.constant 0 : index
    %114 = vector.load %arg11[%c0_115, %c0_116] : memref<1x1xf32, #tpu.memory_space<vmem>>, vector<1x1xf32>
    %115 = arith.addf %113, %114 : vector<1x1xf32>
    %cst_117 = arith.constant 0.000000e+00 : f32
    %116 = vector.broadcast %cst_117 : f32 to vector<1x1xf32>
    %117 = arith.subf %116, %115 : vector<1x1xf32>
    %118 = math.exp %117 : vector<1x1xf32>
    %cst_118 = arith.constant 1.000000e+00 : f32
    %119 = vector.broadcast %cst_118 : f32 to vector<1x1xf32>
    %120 = arith.addf %119, %118 : vector<1x1xf32>
    %cst_119 = arith.constant 1.000000e+00 : f32
    %121 = vector.broadcast %cst_119 : f32 to vector<1x1xf32>
    %122 = arith.divf %121, %120 : vector<1x1xf32>
    %c0_120 = arith.constant 0 : index
    %c0_121 = arith.constant 0 : index
    %123 = vector.load %arg12[%c0_120, %c0_121] : memref<2x1xf32, #tpu.memory_space<vmem>>, vector<1x1xf32>
    tpu.vector_store %arg12[%c0_120, %c0_121], %122 {strides = array<i32>} : memref<2x1xf32, #tpu.memory_space<vmem>>, vector<1x1xf32>,
    %c3_122 = arith.constant 3 : index
    %c0_123 = arith.constant 0 : index
    %124 = vector.load %arg13[%c3_122, %c0_123] : memref<6x128xf32, #tpu.memory_space<vmem>>, vector<1x128xf32>
    %125 = arith.truncf %124 : vector<1x128xf32> to vector<1x128xbf16>
    %c0_124 = arith.constant 0 : index
    %c0_125 = arith.constant 0 : index
    %c0_126 = arith.constant 0 : index
    %126 = vector.load %arg7[%c0_124, %c0_125, %c0_126] : memref<3x128x128xbf16, #tpu.memory_space<vmem>>, vector<1x128x128xbf16>
    %127 = vector.shape_cast %126 : vector<1x128x128xbf16> to vector<128x128xbf16>
    %cst_127 = arith.constant dense<0.000000e+00> : vector<1x128xf32>
    %128 = tpu.matmul %125, %127, %cst_127 {dimension_numbers = #tpu.dot_dimension_numbers<[1], [0], [0], [1], [0, 0, 1, 1], [], []>} : vector<1x128xbf16>, vector<128x128xbf16>, vector<1x128xf32> -> vector<1x128xf32>
    %c4_128 = arith.constant 4 : index
    %c0_129 = arith.constant 0 : index
    %129 = vector.load %arg13[%c4_128, %c0_129] : memref<6x128xf32, #tpu.memory_space<vmem>>, vector<1x128xf32>
    %130 = arith.truncf %129 : vector<1x128xf32> to vector<1x128xbf16>
    %c1_130 = arith.constant 1 : index
    %c0_131 = arith.constant 0 : index
    %c0_132 = arith.constant 0 : index
    %131 = vector.load %arg7[%c1_130, %c0_131, %c0_132] : memref<3x128x128xbf16, #tpu.memory_space<vmem>>, vector<1x128x128xbf16>
    %132 = vector.shape_cast %131 : vector<1x128x128xbf16> to vector<128x128xbf16>
    %cst_133 = arith.constant dense<0.000000e+00> : vector<1x128xf32>
    %133 = tpu.matmul %130, %132, %cst_133 {dimension_numbers = #tpu.dot_dimension_numbers<[1], [0], [0], [1], [0, 0, 1, 1], [], []>} : vector<1x128xbf16>, vector<128x128xbf16>, vector<1x128xf32> -> vector<1x128xf32>
    %134 = arith.addf %128, %133 : vector<1x128xf32>
    %c5_134 = arith.constant 5 : index
    %c0_135 = arith.constant 0 : index
    %135 = vector.load %arg13[%c5_134, %c0_135] : memref<6x128xf32, #tpu.memory_space<vmem>>, vector<1x128xf32>
    %136 = arith.truncf %135 : vector<1x128xf32> to vector<1x128xbf16>
    %c2_136 = arith.constant 2 : index
    %c0_137 = arith.constant 0 : index
    %c0_138 = arith.constant 0 : index
    %137 = vector.load %arg7[%c2_136, %c0_137, %c0_138] : memref<3x128x128xbf16, #tpu.memory_space<vmem>>, vector<1x128x128xbf16>
    %138 = vector.shape_cast %137 : vector<1x128x128xbf16> to vector<128x128xbf16>
    %cst_139 = arith.constant dense<0.000000e+00> : vector<1x128xf32>
    %139 = tpu.matmul %136, %138, %cst_139 {dimension_numbers = #tpu.dot_dimension_numbers<[1], [0], [0], [1], [0, 0, 1, 1], [], []>} : vector<1x128xbf16>, vector<128x128xbf16>, vector<1x128xf32> -> vector<1x128xf32>
    %140 = arith.addf %134, %139 : vector<1x128xf32>
    %c1_140 = arith.constant 1 : index
    %c0_141 = arith.constant 0 : index
    %141 = vector.load %arg2[%c1_140, %c0_141] : memref<2x128xbf16, #tpu.memory_space<vmem>>, vector<1x128xbf16>
    %c0_142 = arith.constant 0 : index
    %c0_143 = arith.constant 0 : index
    %142 = vector.load %arg8[%c0_142, %c0_143] : memref<128x128xbf16, #tpu.memory_space<vmem>>, vector<128x128xbf16>
    %cst_144 = arith.constant dense<0.000000e+00> : vector<1x128xf32>
    %143 = tpu.matmul %141, %142, %cst_144 {dimension_numbers = #tpu.dot_dimension_numbers<[1], [0], [0], [1], [0, 0, 1, 1], [], []>} : vector<1x128xbf16>, vector<128x128xbf16>, vector<1x128xf32> -> vector<1x128xf32>
    %144 = arith.addf %140, %143 : vector<1x128xf32>
    %145 = arith.addf %144, %82 : vector<1x128xf32>
    %cst_145 = arith.constant 0.000000e+00 : f32
    %146 = vector.broadcast %cst_145 : f32 to vector<1x128xf32>
    %147 = arith.maximumf %145, %146 : vector<1x128xf32>
    %cst_146 = arith.constant dense<0.000000e+00> : vector<128xf32>
    %148 = vector.multi_reduction <add>, %147, %cst_146 [0] : vector<1x128xf32> to vector<128xf32>
    %149 = vector.shape_cast %148 : vector<128xf32> to vector<1x128xf32>
    %cst_147 = arith.constant 1.000000e+00 : f32
    %150 = vector.broadcast %cst_147 : f32 to vector<1x128xf32>
    %151 = arith.mulf %149, %150 : vector<1x128xf32>
    %152 = arith.truncf %151 : vector<1x128xf32> to vector<1x128xbf16>
    %c0_148 = arith.constant 0 : index
    %c0_149 = arith.constant 0 : index
    %153 = vector.load %arg10[%c0_148, %c0_149] : memref<128x1xbf16, #tpu.memory_space<vmem>>, vector<128x1xbf16>
    %cst_150 = arith.constant dense<0.000000e+00> : vector<1x1xf32>
    %154 = tpu.matmul %152, %153, %cst_150 {dimension_numbers = #tpu.dot_dimension_numbers<[1], [0], [0], [1], [0, 0, 1, 1], [], []>} : vector<1x128xbf16>, vector<128x1xbf16>, vector<1x1xf32> -> vector<1x1xf32>
    %c0_151 = arith.constant 0 : index
    %c0_152 = arith.constant 0 : index
    %155 = vector.load %arg11[%c0_151, %c0_152] : memref<1x1xf32, #tpu.memory_space<vmem>>, vector<1x1xf32>
    %156 = arith.addf %154, %155 : vector<1x1xf32>
    %cst_153 = arith.constant 0.000000e+00 : f32
    %157 = vector.broadcast %cst_153 : f32 to vector<1x1xf32>
    %158 = arith.subf %157, %156 : vector<1x1xf32>
    %159 = math.exp %158 : vector<1x1xf32>
    %cst_154 = arith.constant 1.000000e+00 : f32
    %160 = vector.broadcast %cst_154 : f32 to vector<1x1xf32>
    %161 = arith.addf %160, %159 : vector<1x1xf32>
    %cst_155 = arith.constant 1.000000e+00 : f32
    %162 = vector.broadcast %cst_155 : f32 to vector<1x1xf32>
    %163 = arith.divf %162, %161 : vector<1x1xf32>
    %c1_156 = arith.constant 1 : index
    %c0_157 = arith.constant 0 : index
    %164 = vector.load %arg12[%c1_156, %c0_157] : memref<2x1xf32, #tpu.memory_space<vmem>>, vector<1x1xf32>
    tpu.vector_store %arg12[%c1_156, %c0_157], %163 {strides = array<i32>} : memref<2x1xf32, #tpu.memory_space<vmem>>, vector<1x1xf32>,
    return
  }
  func.func @transform_0(%arg0: i32) -> (i32, i32) {
    %c0_i32 = arith.constant 0 : i32
    %c0_i32_0 = arith.constant 0 : i32
    %c0_i32_1 = arith.constant 0 : i32
    return %c0_i32, %c0_i32_0 : i32, i32
  }
  func.func @transform_1(%arg0: i32) -> (i32, i32) {
    %c0_i32 = arith.constant 0 : i32
    %c0_i32_0 = arith.constant 0 : i32
    %c0_i32_1 = arith.constant 0 : i32
    return %c0_i32, %c0_i32_0 : i32, i32
  }
  func.func @transform_2(%arg0: i32) -> (i32, i32, i32) {
    %c0_i32 = arith.constant 0 : i32
    %c0_i32_0 = arith.constant 0 : i32
    %c0_i32_1 = arith.constant 0 : i32
    %c0_i32_2 = arith.constant 0 : i32
    return %c0_i32, %c0_i32_0, %c0_i32_1 : i32, i32, i32
  }
  func.func @transform_3(%arg0: i32) -> (i32, i32) {
    %c0_i32 = arith.constant 0 : i32
    %c0_i32_0 = arith.constant 0 : i32
    %c0_i32_1 = arith.constant 0 : i32
    return %c0_i32, %c0_i32_0 : i32, i32
  }
  func.func @transform_4(%arg0: i32) -> (i32, i32, i32) {
    %c0_i32 = arith.constant 0 : i32
    %c0_i32_0 = arith.constant 0 : i32
    %c0_i32_1 = arith.constant 0 : i32
    %c0_i32_2 = arith.constant 0 : i32
    return %c0_i32, %c0_i32_0, %c0_i32_1 : i32, i32, i32
  }
  func.func @transform_5(%arg0: i32) -> (i32, i32) {
    %c0_i32 = arith.constant 0 : i32
    %c0_i32_0 = arith.constant 0 : i32
    %c0_i32_1 = arith.constant 0 : i32
    return %c0_i32, %c0_i32_0 : i32, i32
  }
  func.func @transform_6(%arg0: i32) -> (i32, i32, i32) {
    %c0_i32 = arith.constant 0 : i32
    %c0_i32_0 = arith.constant 0 : i32
    %c0_i32_1 = arith.constant 0 : i32
    %c0_i32_2 = arith.constant 0 : i32
    return %c0_i32, %c0_i32_0, %c0_i32_1 : i32, i32, i32
  }
  func.func @transform_7(%arg0: i32) -> (i32, i32) {
    %c0_i32 = arith.constant 0 : i32
    %c0_i32_0 = arith.constant 0 : i32
    %c0_i32_1 = arith.constant 0 : i32
    return %c0_i32, %c0_i32_0 : i32, i32
  }
  func.func @transform_8(%arg0: i32) -> (i32, i32) {
    %c0_i32 = arith.constant 0 : i32
    %c0_i32_0 = arith.constant 0 : i32
    %c0_i32_1 = arith.constant 0 : i32
    return %c0_i32, %c0_i32_0 : i32, i32
  }
  func.func @transform_9(%arg0: i32) -> (i32, i32) {
    %c0_i32 = arith.constant 0 : i32
    %c0_i32_0 = arith.constant 0 : i32
    %c0_i32_1 = arith.constant 0 : i32
    return %c0_i32, %c0_i32_0 : i32, i32
  }
  func.func @transform_10(%arg0: i32) -> (i32, i32) {
    %c0_i32 = arith.constant 0 : i32
    %c0_i32_0 = arith.constant 0 : i32
    %c0_i32_1 = arith.constant 0 : i32
    return %c0_i32, %c0_i32_0 : i32, i32
  }
  func.func @transform_11(%arg0: i32) -> (i32, i32) {
    %c0_i32 = arith.constant 0 : i32
    %c0_i32_0 = arith.constant 0 : i32
    %c0_i32_1 = arith.constant 0 : i32
    return %c0_i32, %c0_i32_0 : i32, i32
  }
}

</mosaic_0001>

<bundles_post_ra>
// kernel: detector_forward.5
= control target key start
LH: loop header
LB: loop body
LE: loop exit
PB: predicated region body
PF: predicated region fallthrough
CT: control target
= control target key end

     0   :  { %14 = vsyncpa [#allocation4], 0  ;;  %s2660_s0 = inlined_call_operand.vmem [shape: bf16[10,128], index: 0, kind: input, shape index: {}]   ;;  %s2661_s1 = inlined_call_operand.vmem [shape: bf16[8,128], index: 1, kind: input, shape index: {}]   ;;  %s2662_s2 = inlined_call_operand.vmem [shape: bf16[3,128,128], index: 2, kind: input, shape index: {}]   ;;  %s2663_s3 = inlined_call_operand.vmem [shape: f32[1,128], index: 3, kind: input, shape index: {}]   ;;  %s2664_s4 = inlined_call_operand.hbm [shape: bf16[3,128,128], index: 4, kind: input, shape index: {}]   ;;  %s2665_s5 = inlined_call_operand.vmem [shape: f32[1,128], index: 5, kind: input, shape index: {}]   ;;  %s2666_s6 = inlined_call_operand.hbm [shape: bf16[3,128,128], index: 6, kind: input, shape index: {}]   ;;  %s2667_s7 = inlined_call_operand.vmem [shape: bf16[128,128], index: 7, kind: input, shape index: {}]   ;;  %s2668_s8 = inlined_call_operand.vmem [shape: f32[1,128], index: 8, kind: input, shape index: {}]   ;;  %s2669_s9 = inlined_call_operand.vmem [shape: bf16[2,4,128], index: 9, kind: output, shape index: {}]  }
   0x1   :  { %s28_s11 = sshll.u32 %s2664_s4, 4  ;;  %s29_s11 = int_to_ptr.hbm [resolvable:$true] %s28_s11 }
   0x2   :  { %15 = vsyncpa [#allocation6], 0  ;;  %s2345_s12 = smov [#allocation3]   ;;  %s43_s16 = sshll.u32 %s2666_s6, 4  ;;  %s44_s16 = int_to_ptr.hbm [resolvable:$true] %s43_s16 }
   0x3   :  { %s30_s13 = sshll.u32 %s2345_s12, 4  ;;  %s2346_s17 = smov 64   ;;  %s31_s13 = int_to_ptr.vmem [resolvable:$true] %s30_s13 }
   0x4   :  { %s2347_s18 = smov 4   ;;  %s2348_s19 = smov [#allocation5]  }
   0x5   :  { %36 = dma.hbm_to_vmem [thread:$0]  %s29_s11, 3072, %s31_s13, [#allocation4], %s2346_s17, %s2346_s17, %s2347_s18  }
   0x6   :  { %s45_s20 = sshll.u32 %s2348_s19, 4  ;;  %s46_s20 = int_to_ptr.vmem [resolvable:$true] %s45_s20 }
   0x7   :  { %51 = dma.hbm_to_vmem [thread:$0]  %s44_s16, 3072, %s46_s20, [#allocation6], %s2346_s17, %s2346_s17, %s2347_s18  }
   0x8   :  { %2341 = dma.done.wait [#allocation4], 3072  }
   0x9   :  { %2342 = vsyncadd [#allocation4], 4294964224 }
   0xa   :  { %2343 = dma.done.wait [#allocation6], 3072  }
   0xb   :  { %2344 = vsyncadd [#allocation6], 4294964224  ;;  %v2164_v0 = vld [vmem:[%s2662_s2 + $0x78] sm:$0xff]  ;;  %v2163_v3 = vld [vmem:[%s2662_s2 + $0x70] sm:$0xff] }
   0xc   :  { %v2156_v1 = vld [vmem:[%s2662_s2 + $0x38] sm:$0xff]  ;;  %150 = vmatpush.bf16.msra.mxu0 %v2164_v0  ;;  %v2155_v4 = vld [vmem:[%s2662_s2 + $0x30] sm:$0xff]  ;;  %v2162_v7 = vld [vmem:[%s2662_s2 + $0x68] sm:$0xff] }
   0xd   :  { %v2172_v2 = vld [vmem:[%s2662_s2 + $0xb8] sm:$0xff]  ;;  %211 = vmatpush.bf16.msra.mxu1 %v2156_v1  ;;  %v2171_v5 = vld [vmem:[%s2662_s2 + $0xb0] sm:$0xff]  ;;  %v2154_v8 = vld [vmem:[%s2662_s2 + $0x28] sm:$0xff] }
   0xe   :  { %301 = vmatpush.bf16.msra.mxu2 %v2172_v2  ;;  %v2188_v6 = vld [vmem:[%s2662_s2 + $0x78] sm:$0xff]  ;;  %v2170_v9 = vld [vmem:[%s2662_s2 + $0xa8] sm:$0xff]  ;;  %v2187_v10 = vld [vmem:[%s2662_s2 + $0x70] sm:$0xff] }
   0xf   :  { %409 = vmatpush.bf16.msra.mxu3 %v2188_v6  ;;  %v2161_v11 = vld [vmem:[%s2662_s2 + $0x60] sm:$0xff]  ;;  %v2186_v14 = vld [vmem:[%s2662_s2 + $0x68] sm:$0xff]  ;;  %v2160_v16 = vld [vmem:[%s2662_s2 + $0x58] sm:$0xff] }
  0x10   :  { %151 = vmatpush.bf16.msra.mxu0 %v2163_v3  ;;  %v2153_v12 = vld [vmem:[%s2662_s2 + $0x20] sm:$0xff]  ;;  %v2152_v17 = vld [vmem:[%s2662_s2 + $0x18] sm:$0xff]  ;;  %v2159_v21 = vld [vmem:[%s2662_s2 + $0x50] sm:$0xff] }
  0x11   :  { %212 = vmatpush.bf16.msra.mxu1 %v2155_v4  ;;  %v2169_v13 = vld [vmem:[%s2662_s2 + $0xa0] sm:$0xff]  ;;  %v2168_v19 = vld [vmem:[%s2662_s2 + $0x98] sm:$0xff]  ;;  %v2151_v22 = vld [vmem:[%s2662_s2 + $0x10] sm:$0xff] }
  0x12   :  { %302 = vmatpush.bf16.msra.mxu2 %v2171_v5  ;;  %v224_v15 = vld [vmem:[%s2660_s0] sm:$0x7]  ;;  %v2167_v24 = vld [vmem:[%s2662_s2 + $0x90] sm:$0xff]  ;;  %v2184_v25 = vld [vmem:[%s2662_s2 + $0x58] sm:$0xff] }
  0x13   :  { %410 = vmatpush.bf16.msra.mxu3 %v2187_v10  ;;  %v243_v18 = vunpack.c.l.b16 %v224_v15  ;;  %v2185_v20 = vld [vmem:[%s2662_s2 + $0x60] sm:$0xff]  ;;  %v2158_v26 = vld [vmem:[%s2662_s2 + $0x48] sm:$0xff]  ;;  %v2183_v30 = vld [vmem:[%s2662_s2 + $0x50] sm:$0xff] }
  0x14   :  { %152 = vmatpush.bf16.msra.mxu0 %v2162_v7  ;;  %v2150_v27 = vld [vmem:[%s2662_s2 + $0x8] sm:$0xff]  ;;  %v339_v31 = vld [vmem:[%s2661_s1] sm:$0xc]  ;;  %v2180_v37 = vld [vmem:[%s2662_s2 + $0x38] sm:$0xff] }
  0x15   :  { %213 = vmatpush.bf16.msra.mxu1 %v2154_v8  ;;  %v244_v23 = vpack.c.b16 %v243_v18, %v243_v18  ;;  %v2166_v29 = vld [vmem:[%s2662_s2 + $0x88] sm:$0xff]  ;;  %v2157_v32 = vld [vmem:[%s2662_s2 + $0x40] sm:$0xff]  ;;  %v357_v38 = vunpack.c.l.b16 %v339_v31  ;;  %v2196_v39 = vld [vmem:[%s2662_s2 + $0xb8] sm:$0xff] }
  0x16   :  { %303 = vmatpush.bf16.msra.mxu2 %v2170_v9  ;;  %v2149_v33 = vld [vmem:[%s2662_s2] sm:$0xff]  ;;  %v2182_v40 = vld [vmem:[%s2662_s2 + $0x48] sm:$0xff]  ;;  %v2179_v44 = vld [vmem:[%s2662_s2 + $0x30] sm:$0xff] }
  0x17   :  { %411 = vmatpush.bf16.msra.mxu3 %v2186_v14  ;;  %v248_v28 = vshll.u32 %v244_v23, 16  ;;  %v246_v34 = vshrl.u32 %v244_v23, 16  ;;  %v2165_v36 = vld [vmem:[%s2662_s2 + $0x80] sm:$0xff]  ;;  %v358_v45 = vpack.c.b16 %v357_v38, %v357_v38  ;;  %v2520_v46 = vld [vmem:[#allocation3 + $0x78] sm:$0xff]  ;;  %v2195_v47 = vld [vmem:[%s2662_s2 + $0xb0] sm:$0xff] }
  0x18   :  { %153 = vmatpush.bf16.msra.mxu0 %v2161_v11  ;;  %v84_v42 = vld [vmem:[%s2661_s1] sm:$0x3]  ;;  %v2528_v49 = vld [vmem:[#allocation3 + $0x38] sm:$0xff]  ;;  %v321_v56 = vld [vmem:[%s2660_s0] sm:$0xc] }
  0x19   :  { %214 = vmatpush.bf16.msra.mxu1 %v2153_v12  ;;  %v250_v35 = vrot.slane %v248_v28, 1  ;;  %v67_v43 = vld [vmem:[%s2660_s0] sm:$0x3]  ;;  %v2178_v50 = vld [vmem:[%s2662_s2 + $0x28] sm:$0xff]  ;;  %v359_v51 = vrot.slane %v358_v45, 2  ;;  %v2210_v59 = vld [vmem:[#allocation3 + $0x68] sm:$0xff]  ;;  %v424_v61 = vunpack.c.l.b16 %v321_v56 }
  0x1a   :  { %304 = vmatpush.bf16.msra.mxu2 %v2169_v13  ;;  %v2181_v48 = vld [vmem:[%s2662_s2 + $0x40] sm:$0xff]  ;;  %v2194_v52 = vld [vmem:[%s2662_s2 + $0xa8] sm:$0xff]  ;;  %v2553_v60 = vld [vmem:[#allocation3 + $0x28] sm:$0xff] }
  0x1b   :  { %412 = vmatpush.bf16.msra.mxu3 %v2185_v20  ;;  %v251_v41 = vor.u32 %v250_v35, %v246_v34  ;;  %v2211_v53 = vld [vmem:[#allocation3 + $0x70] sm:$0xff]  ;;  %v2176_v63 = vld [vmem:[%s2662_s2 + $0x18] sm:$0xff]  ;;  %v2209_v1 = vld [vmem:[#allocation3 + $0x60] sm:$0xff] }
  0x1c   :  { %154 = vmatpush.bf16.msra.mxu0 %v2160_v16  ;;  %v2538_v54 = vld [vmem:[#allocation3 + $0x30] sm:$0xff]  ;;  %v2192_v0 = vld [vmem:[%s2662_s2 + $0x98] sm:$0xff]  ;;  %v2562_v2 = vld [vmem:[#allocation3 + $0x20] sm:$0xff] }
  0x1d   :  { %215 = vmatpush.bf16.msra.mxu1 %v2152_v17  ;;  %v2177_v55 = vld [vmem:[%s2662_s2 + $0x20] sm:$0xff]  ;;  %v2175_v4 = vld [vmem:[%s2662_s2 + $0x10] sm:$0xff]  ;;  %v2174_v9 = vld [vmem:[%s2662_s2 + $0x8] sm:$0xff] }
  0x1e   :  { %305 = vmatpush.bf16.msra.mxu2 %v2168_v19  ;;  %v322_v57 = vld [vmem:[%s2660_s0 + $0x4] sm:$0x1]  ;;  %v2191_v5 = vld [vmem:[%s2662_s2 + $0x90] sm:$0xff]  ;;  %v497_v6 = vld [vmem:[%s2660_s0] sm:$0x8] }
  0x1f   :  { %413 = vmatpush.bf16.msra.mxu3 %v2184_v25  ;;  %v2193_v58 = vld [vmem:[%s2662_s2 + $0xa0] sm:$0xff]  ;;  %v425_v62 = vunpack.c.l.b16 %v322_v57  ;;  %v515_v10 = vunpack.c.l.b16 %v497_v6  ;;  %v2190_v11 = vld [vmem:[%s2662_s2 + $0x88] sm:$0xff]  ;;  %v2349_v25 = vmov 0.0   ;;  %v2214_v34 = vld [vmem:[#allocation3 + $0x88] sm:$0xff] }
  0x20   :  { %155 = vmatpush.bf16.msra.mxu0 %v2159_v21  ;;  %v2173_v14 = vld [vmem:[%s2662_s2] sm:$0xff]  ;;  %v2220_v17 = vld [vmem:[#allocation3 + $0xb8] sm:$0xff]  ;;  %v2218_v21 = vld [vmem:[#allocation3 + $0xa8] sm:$0xff]  ;;  %64 = vst [vmem:[#allocation2] sm:$0xff] %v2349_v25 }
  0x21   :  { %216 = vmatpush.bf16.msra.mxu1 %v2151_v22  ;;  %v426_v3 = vpack.c.b16 %v425_v62, %v424_v61  ;;  %v516_v15 = vpack.c.b16 %v425_v62, %v515_v10  ;;  %v2189_v16 = vld [vmem:[%s2662_s2 + $0x80] sm:$0xff]  ;;  %v2208_v22 = vld [vmem:[#allocation3 + $0x58] sm:$0xff]  ;;  %65 = vst [vmem:[#allocation2 + $0x8] sm:$0xf] %v2349_v25  ;;  %v2213_v35 = vld [vmem:[#allocation3 + $0x80] sm:$0xff] }
  0x22   :  { %306 = vmatpush.bf16.msra.mxu2 %v2167_v24  ;;  %v2219_v20 = vld [vmem:[#allocation3 + $0xb0] sm:$0xff]  ;;  %v2200_v23 = vld [vmem:[#allocation3 + $0x18] sm:$0xff]  ;;  %v2217_v24 = vld [vmem:[#allocation3 + $0xa0] sm:$0xff] }
  0x23   :  { %414 = vmatpush.bf16.msra.mxu3 %v2183_v30  ;;  %v428_v7 = vshrl.u32 %v426_v3, 16  ;;  %v431_v8 = vshll.u32 %v426_v3, 16  ;;  %v517_v19 = vrot.slane %v516_v15, 3  ;;  %v2216_v28 = vld [vmem:[#allocation3 + $0x98] sm:$0xff]  ;;  %v2198_v30 = vld [vmem:[#allocation3 + $0x8] sm:$0xff]  ;;  %v2215_v31 = vld [vmem:[#allocation3 + $0x90] sm:$0xff] }
  0x24   :  { %156 = vmatpush.bf16.msra.mxu0 %v2158_v26  ;;  %v2207_v26 = vld [vmem:[#allocation3 + $0x50] sm:$0xff]  ;;  %v2234_v61 = vld [vmem:[#allocation5 + $0x68] sm:$0xff]  ;;  %v2251_v62 = vld [vmem:[%s2667_s7 + $0x30] sm:$0xff] }
  0x25   :  { %217 = vmatpush.bf16.msra.mxu1 %v2150_v27  ;;  %v430_v12 = vrot.slane %v428_v7, 2  ;;  %v433_v13 = vrot.slane %v431_v8, 3  ;;  %v2199_v27 = vld [vmem:[#allocation3 + $0x10] sm:$0xff]  ;;  %v2240_v25 = vld [vmem:[#allocation5 + $0x98] sm:$0xff] }
  0x26   :  { %307 = vmatpush.bf16.msra.mxu2 %v2166_v29  ;;  %v2206_v29 = vld [vmem:[#allocation3 + $0x48] sm:$0xff]  ;;  %v2249_v7 = vld [vmem:[%s2667_s7 + $0x20] sm:$0xff] }
  0x27   :  { %415 = vmatpush.bf16.msra.mxu3 %v2182_v40  ;;  %v434_v18 = vor.u32 %v433_v13, %v430_v12 }
  0x28   :  { %157 = vmatpush.bf16.msra.mxu0 %v2157_v32  ;;  %v2205_v32 = vld [vmem:[#allocation3 + $0x40] sm:$0xff] }
  0x29   :  { %218 = vmatpush.bf16.msra.mxu1 %v2149_v33  ;;  %v2197_v33 = vld [vmem:[#allocation3] sm:$0xff] }
  0x2a   :  { %308 = vmatpush.bf16.msra.mxu2 %v2165_v36 }
  0x2b   :  { %158 = vmatmul.bf16.vlgmr.msra.gmra.mxu0 %v84_v42  ;;  %416 = vmatpush.bf16.msra.mxu3 %v2181_v48  ;;  %v2236_v48 = vld [vmem:[#allocation5 + $0x78] sm:$0xff] }
  0x2c   :  { %484 = vmatpush.bf16.msrb.mxu0 %v2180_v37  ;;  %219 = vmatmul.bf16.vlgmr.msra.gmra.mxu1 %v67_v43 }
  0x2d   :  { %567 = vmatpush.bf16.msrb.mxu1 %v2196_v39  ;;  %309 = vmatmul.bf16.vlgmr.msra.gmra.mxu2 %v251_v41  ;;  %v2290_v39 = vld [vmem:[%s2663_s3] ss:$0 sm:$0xff] }
  0x2e   :  { %670 = vmatpush.bf16.msrb.mxu2 %v2520_v46  ;;  %417 = vmatmul.bf16.vlgmr.msra.gmra.mxu3 %v359_v51 }
  0x2f   :  { %731 = vmatpush.bf16.msrb.mxu3 %v2528_v49 }
  0x30   :  { %485 = vmatpush.bf16.msrb.mxu0 %v2179_v44 }
  0x31   :  { %568 = vmatpush.bf16.msrb.mxu1 %v2195_v47 }
  0x32   :  { %671 = vmatpush.bf16.msrb.mxu2 %v2211_v53 }
  0x33   :  { %732 = vmatpush.bf16.msrb.mxu3 %v2538_v54 }
  0x34   :  { %486 = vmatpush.bf16.msrb.mxu0 %v2178_v50  ;;  %v2235_v50 = vld [vmem:[#allocation5 + $0x70] sm:$0xff] }
  0x35   :  { %569 = vmatpush.bf16.msrb.mxu1 %v2194_v52  ;;  %v2252_v52 = vld [vmem:[%s2667_s7 + $0x38] sm:$0xff] }
  0x36   :  { %672 = vmatpush.bf16.msrb.mxu2 %v2210_v59 }
  0x37   :  { %733 = vmatpush.bf16.msrb.mxu3 %v2553_v60 }
  0x38   :  { %487 = vmatpush.bf16.msrb.mxu0 %v2177_v55 }
  0x39   :  { %570 = vmatpush.bf16.msrb.mxu1 %v2193_v58 }
  0x3a   :  { %673 = vmatpush.bf16.msrb.mxu2 %v2209_v1 }
  0x3b   :  { %734 = vmatpush.bf16.msrb.mxu3 %v2562_v2 }
  0x3c   :  { %488 = vmatpush.bf16.msrb.mxu0 %v2176_v63  ;;  %v2243_v63 = vld [vmem:[#allocation5 + $0xb0] sm:$0xff] }
  0x3d   :  { %571 = vmatpush.bf16.msrb.mxu1 %v2192_v0  ;;  %v2226_v0 = vld [vmem:[#allocation5 + $0x28] sm:$0xff] }
  0x3e   :  { %674 = vmatpush.bf16.msrb.mxu2 %v2208_v22 }
  0x3f   :  { %735 = vmatpush.bf16.msrb.mxu3 %v2200_v23 }
  0x40   :  { %489 = vmatpush.bf16.msrb.mxu0 %v2175_v4 }
  0x41   :  { %572 = vmatpush.bf16.msrb.mxu1 %v2191_v5  ;;  %v2242_v5 = vld [vmem:[#allocation5 + $0xa8] sm:$0xff] }
  0x42   :  { %675 = vmatpush.bf16.msrb.mxu2 %v2207_v26 }
  0x43   :  { %736 = vmatpush.bf16.msrb.mxu3 %v2199_v27 }
  0x44   :  { %490 = vmatpush.bf16.msrb.mxu0 %v2174_v9 }
  0x45   :  { %573 = vmatpush.bf16.msrb.mxu1 %v2190_v11  ;;  %v2248_v11 = vld [vmem:[%s2667_s7 + $0x18] sm:$0xff] }
  0x46   :  { %676 = vmatpush.bf16.msrb.mxu2 %v2206_v29 }
  0x47   :  { %737 = vmatpush.bf16.msrb.mxu3 %v2198_v30 }
  0x48   :  { %491 = vmatpush.bf16.msrb.mxu0 %v2173_v14 }
  0x49   :  { %574 = vmatpush.bf16.msrb.mxu1 %v2189_v16 }
  0x4a   :  { %677 = vmatpush.bf16.msrb.mxu2 %v2205_v32 }
  0x4b   :  { %492 = vmatmul.bf16.vlgmr.msrb.gmra.mxu0 %v434_v18  ;;  %738 = vmatpush.bf16.msrb.mxu3 %v2197_v33 }
  0x4c   :  { %811 = vmatpush.bf16.msra.mxu0 %v2220_v17  ;;  %575 = vmatmul.bf16.vlgmr.msrb.gmra.mxu1 %v517_v19  ;;  %v2233_v19 = vld [vmem:[#allocation5 + $0x60] sm:$0xff] }
  0x4d   :  { %834 = vmatpush.bf16.msra.mxu1 %v2520_v46 }
  0x4e   :  { %847 = vmatpush.bf16.msra.mxu2 %v2528_v49  ;;  %v2228_v49 = vld [vmem:[#allocation5 + $0x38] sm:$0xff] }
  0x4f   :  { %862 = vmatpush.bf16.msra.mxu3 %v2220_v17 }
  0x50   :  { %812 = vmatpush.bf16.msra.mxu0 %v2219_v20 }
  0x51   :  { %835 = vmatpush.bf16.msra.mxu1 %v2211_v53 }
  0x52   :  { %848 = vmatpush.bf16.msra.mxu2 %v2538_v54 }
  0x53   :  { %863 = vmatpush.bf16.msra.mxu3 %v2219_v20  ;;  %v2225_v20 = vld [vmem:[#allocation5 + $0x20] sm:$0xff] }
  0x54   :  { %813 = vmatpush.bf16.msra.mxu0 %v2218_v21 }
  0x55   :  { %836 = vmatpush.bf16.msra.mxu1 %v2210_v59  ;;  %v2244_v59 = vld [vmem:[#allocation5 + $0xb8] sm:$0xff] }
  0x56   :  { %849 = vmatpush.bf16.msra.mxu2 %v2553_v60  ;;  %v2227_v60 = vld [vmem:[#allocation5 + $0x30] sm:$0xff] }
  0x57   :  { %864 = vmatpush.bf16.msra.mxu3 %v2218_v21  ;;  %v2241_v21 = vld [vmem:[#allocation5 + $0xa0] sm:$0xff] }
  0x58   :  { %814 = vmatpush.bf16.msra.mxu0 %v2217_v24 }
  0x59   :  { %837 = vmatpush.bf16.msra.mxu1 %v2209_v1 }
  0x5a   :  { %850 = vmatpush.bf16.msra.mxu2 %v2562_v2  ;;  %v2250_v2 = vld [vmem:[%s2667_s7 + $0x28] sm:$0xff] }
  0x5b   :  { %865 = vmatpush.bf16.msra.mxu3 %v2217_v24  ;;  %v2224_v24 = vld [vmem:[#allocation5 + $0x18] sm:$0xff] }
  0x5c   :  { %815 = vmatpush.bf16.msra.mxu0 %v2216_v28 }
  0x5d   :  { %838 = vmatpush.bf16.msra.mxu1 %v2208_v22  ;;  %v2247_v22 = vld [vmem:[%s2667_s7 + $0x10] sm:$0xff] }
  0x5e   :  { %851 = vmatpush.bf16.msra.mxu2 %v2200_v23  ;;  %v2232_v23 = vld [vmem:[#allocation5 + $0x58] sm:$0xff] }
  0x5f   :  { %866 = vmatpush.bf16.msra.mxu3 %v2216_v28  ;;  %v2223_v28 = vld [vmem:[#allocation5 + $0x10] sm:$0xff] }
  0x60   :  { %816 = vmatpush.bf16.msra.mxu0 %v2215_v31 }
  0x61   :  { %839 = vmatpush.bf16.msra.mxu1 %v2207_v26  ;;  %v2246_v26 = vld [vmem:[%s2667_s7 + $0x8] sm:$0xff] }
  0x62   :  { %852 = vmatpush.bf16.msra.mxu2 %v2199_v27  ;;  %v2231_v27 = vld [vmem:[#allocation5 + $0x50] sm:$0xff] }
  0x63   :  { %867 = vmatpush.bf16.msra.mxu3 %v2215_v31  ;;  %v2284_v31 = vld [vmem:[%s2667_s7 + $0x38] sm:$0xff] }
  0x64   :  { %817 = vmatpush.bf16.msra.mxu0 %v2214_v34 }
  0x65   :  { %840 = vmatpush.bf16.msra.mxu1 %v2206_v29  ;;  %v2239_v29 = vld [vmem:[#allocation5 + $0x90] sm:$0xff] }
  0x66   :  { %853 = vmatpush.bf16.msra.mxu2 %v2198_v30  ;;  %v2245_v30 = vld [vmem:[%s2667_s7] sm:$0xff] }
  0x67   :  { %868 = vmatpush.bf16.msra.mxu3 %v2214_v34  ;;  %v2238_v34 = vld [vmem:[#allocation5 + $0x88] sm:$0xff] }
  0x68   :  { %818 = vmatpush.bf16.msra.mxu0 %v2213_v35 }
  0x69   :  { %841 = vmatpush.bf16.msra.mxu1 %v2205_v32  ;;  %v2230_v32 = vld [vmem:[#allocation5 + $0x48] sm:$0xff] }
  0x6a   :  { %854 = vmatpush.bf16.msra.mxu2 %v2197_v33  ;;  %v2222_v33 = vld [vmem:[#allocation5 + $0x8] sm:$0xff] }
  0x6b   :  { %869 = vmatpush.bf16.msra.mxu3 %v2213_v35  ;;  %v2283_v35 = vld [vmem:[%s2667_s7 + $0x30] sm:$0xff] }
  0x6c   :  { %966 = vmatpush.bf16.msrb.mxu0 %v2236_v48  ;;  %v2266_v48 = vld [vmem:[#allocation5 + $0x68] sm:$0xff] }
  0x6d   :  { %1027 = vmatpush.bf16.msrb.mxu1 %v2228_v49  ;;  %v2258_v49 = vld [vmem:[#allocation5 + $0x28] sm:$0xff] }
  0x70   :  { %967 = vmatpush.bf16.msrb.mxu0 %v2235_v50  ;;  %v2274_v50 = vld [vmem:[#allocation5 + $0xa8] sm:$0xff] }
  0x71   :  { %1028 = vmatpush.bf16.msrb.mxu1 %v2227_v60  ;;  %v2278_v60 = vld [vmem:[%s2667_s7 + $0x8] sm:$0xff] }
  0x74   :  { %968 = vmatpush.bf16.msrb.mxu0 %v2234_v61 }
  0x75   :  { %1029 = vmatpush.bf16.msrb.mxu1 %v2226_v0  ;;  %v2255_v0 = vld [vmem:[#allocation5 + $0x10] sm:$0xff] }
  0x78   :  { %969 = vmatpush.bf16.msrb.mxu0 %v2233_v19 }
  0x79   :  { %1030 = vmatpush.bf16.msrb.mxu1 %v2225_v20 }
  0x7c   :  { %970 = vmatpush.bf16.msrb.mxu0 %v2232_v23 }
  0x7d   :  { %1031 = vmatpush.bf16.msrb.mxu1 %v2224_v24 }
  0x80   :  { %971 = vmatpush.bf16.msrb.mxu0 %v2231_v27 }
  0x81   :  { %1032 = vmatpush.bf16.msrb.mxu1 %v2223_v28 }
  0x84   :  { %972 = vmatpush.bf16.msrb.mxu0 %v2230_v32 }
  0x85   :  { %1033 = vmatpush.bf16.msrb.mxu1 %v2222_v33 }
  0xa8   :  { %v159_v36 = vpop.f32.mrf.mxu0 }
  0xa9   :  { %v220_v37 = vpop.f32.mrf.mxu1 }
  0xaa   :  { %v221_v38 = vadd.f32 %v220_v37, %v159_v36  ;;  %v2229_v36 = vld [vmem:[#allocation5 + $0x40] sm:$0xff] }
  0xab   :  { %v2221_v37 = vld [vmem:[#allocation5] sm:$0xff]  ;;  %973 = vmatpush.bf16.msrb.mxu0 %v2229_v36 }
  0xac   :  { %1034 = vmatpush.bf16.msrb.mxu1 %v2221_v37 }
  0xb0   :  { %v310_v40 = vpop.f32.mrf.mxu2  ;;  %v161_v42 = vpop.f32.mrf.mxu0 }
  0xb1   :  { %v314_v41 = vadd.f32 %v310_v40, %v221_v38  ;;  %v222_v43 = vpop.f32.mrf.mxu1  ;;  %v418_v46 = vpop.f32.mrf.mxu3  ;;  %v2237_v38 = vld [vmem:[#allocation5 + $0x80] sm:$0xff]  ;;  %v2260_v40 = vld [vmem:[#allocation5 + $0x38] sm:$0xff] }
  0xb2   :  { %v2282_v42 = vld [vmem:[%s2667_s7 + $0x28] sm:$0xff]  ;;  %v2267_v43 = vld [vmem:[#allocation5 + $0x70] sm:$0xff] }
  0xb3   :  { %v318_v44 = vadd.f32 %v2290_v39, %v314_v41  ;;  %v2276_v41 = vld [vmem:[#allocation5 + $0xb8] sm:$0xff] }
  0xb5   :  { %v319_v45 = vmax.f32 %v318_v44, 0.0  ;;  %v2259_v44 = vld [vmem:[#allocation5 + $0x30] sm:$0xff] }
  0xb7   :  { %320 = vst [vmem:[#allocation2 + $0x1] sm:$0xf] %v319_v45  ;;  %v2275_v45 = vld [vmem:[#allocation5 + $0xb0] sm:$0xff] }
  0xb8   :  { %v312_v47 = vpop.f32.mrf.mxu2 }
  0xb9   :  { %v420_v51 = vpop.f32.mrf.mxu3  ;;  %v1121_v47 = vld [vmem:[%s2661_s1] sm:$0x3] }
  0xba   :  { %v2280_v51 = vld [vmem:[%s2667_s7 + $0x18] sm:$0xff] }
  0xbe   :  { %v603_v53 = vld [vmem:[#allocation2 + $0x1] sm:$0xf] }
  0xbf   :  { %v585_v54 = vld [vmem:[#allocation2] sm:$0xf]  ;;  %v604_v56 = vpack.c.bf16 %v603_v53, %v603_v53  ;;  %v2257_v53 = vld [vmem:[#allocation5 + $0x20] sm:$0xff] }
  0xc0   :  { %v744_v55 = vld [vmem:[#allocation2 + $0x2] sm:$0xf]  ;;  %v586_v57 = vpack.c.bf16 %v585_v54, %v585_v54  ;;  %v2273_v54 = vld [vmem:[#allocation5 + $0xa0] sm:$0xff] }
  0xc1   :  { %v745_v58 = vpack.c.bf16 %v744_v55, %v744_v55  ;;  %678 = vmatmul.bf16.vlgmr.msrb.gmra.mxu2 %v604_v56  ;;  %v2279_v55 = vld [vmem:[%s2667_s7 + $0x10] sm:$0xff] }
  0xc2   :  { %739 = vmatmul.bf16.vlgmr.msrb.gmra.mxu3 %v586_v57  ;;  %1107 = vmatpush.bf16.msrb.mxu2 %v2244_v59  ;;  %v2264_v57 = vld [vmem:[#allocation5 + $0x58] sm:$0xff] }
  0xc3   :  { %819 = vmatmul.bf16.vlgmr.msra.gmra.mxu0 %v745_v58  ;;  %1186 = vmatpush.bf16.msrb.mxu3 %v2252_v52  ;;  %v2265_v52 = vld [vmem:[#allocation5 + $0x60] sm:$0xff]  ;;  %v2256_v58 = vld [vmem:[#allocation5 + $0x18] sm:$0xff] }
  0xc4   :  { %v2272_v59 = vld [vmem:[#allocation5 + $0x98] sm:$0xff] }
  0xc6   :  { %1108 = vmatpush.bf16.msrb.mxu2 %v2243_v63  ;;  %v2263_v63 = vld [vmem:[#allocation5 + $0x50] sm:$0xff] }
  0xc7   :  { %1187 = vmatpush.bf16.msrb.mxu3 %v2251_v62 }
  0xc8   :  { %v493_v1 = vpop.f32.mrf.mxu0 }
  0xc9   :  { %v494_v3 = vadd.f32 %v493_v1, %v418_v46  ;;  %v576_v4 = vpop.f32.mrf.mxu1  ;;  %v2281_v46 = vld [vmem:[%s2667_s7 + $0x20] sm:$0xff] }
  0xca   :  { %1109 = vmatpush.bf16.msrb.mxu2 %v2242_v5  ;;  %v2271_v1 = vld [vmem:[#allocation5 + $0x90] sm:$0xff]  ;;  %v2262_v5 = vld [vmem:[#allocation5 + $0x48] sm:$0xff] }
  0xcb   :  { %v580_v6 = vadd.f32 %v576_v4, %v494_v3  ;;  %1188 = vmatpush.bf16.msrb.mxu3 %v2250_v2  ;;  %v2291_v3 = vld [vmem:[%s2665_s5] ss:$0 sm:$0xff] }
  0xcc   :  { %v2277_v4 = vld [vmem:[%s2667_s7] sm:$0xff] }
  0xcd   :  { %v581_v8 = vadd.f32 %v2290_v39, %v580_v6  ;;  %v2268_v39 = vld [vmem:[#allocation5 + $0x78] sm:$0xff]  ;;  %v2254_v6 = vld [vmem:[#allocation5 + $0x8] sm:$0xff] }
  0xce   :  { %1110 = vmatpush.bf16.msrb.mxu2 %v2241_v21  ;;  %1291 = vmatpush.bf16.msra.mxu0 %v2268_v39 }
  0xcf   :  { %v582_v9 = vmax.f32 %v581_v8, 0.0  ;;  %1189 = vmatpush.bf16.msrb.mxu3 %v2249_v7  ;;  %v1445_v7 = vld [vmem:[%s2661_s1] sm:$0xc] }
  0xd0   :  { %v495_v10 = vpop.f32.mrf.mxu0 }
  0xd1   :  { %583 = vst [vmem:[#allocation2 + $0x7] sm:$0xf] %v582_v9  ;;  %v578_v12 = vpop.f32.mrf.mxu1  ;;  %v2270_v10 = vld [vmem:[#allocation5 + $0x88] sm:$0xff] }
  0xd2   :  { %1111 = vmatpush.bf16.msrb.mxu2 %v2240_v25  ;;  %1292 = vmatpush.bf16.msra.mxu0 %v2267_v43 }
  0xd3   :  { %1190 = vmatpush.bf16.msrb.mxu3 %v2248_v11  ;;  %v1463_v11 = vunpack.c.l.b16 %v1445_v7 }
  0xd6   :  { %1112 = vmatpush.bf16.msrb.mxu2 %v2239_v29  ;;  %1293 = vmatpush.bf16.msra.mxu0 %v2266_v48 }
  0xd7   :  { %1191 = vmatpush.bf16.msrb.mxu3 %v2247_v22 }
  0xd8   :  { %v832_v13 = vld [vmem:[#allocation2 + $0x7] sm:$0xf] }
  0xd9   :  { %v830_v14 = vld [vmem:[#allocation2 + $0x6] sm:$0xf]  ;;  %v833_v16 = vpack.c.bf16 %v832_v13, %v832_v13  ;;  %v1464_v13 = vpack.c.b16 %v1463_v11, %v1463_v11 }
  0xda   :  { %v860_v15 = vld [vmem:[#allocation2 + $0x8] sm:$0xf]  ;;  %v831_v17 = vpack.c.bf16 %v830_v14, %v830_v14  ;;  %1113 = vmatpush.bf16.msrb.mxu2 %v2238_v34  ;;  %1294 = vmatpush.bf16.msra.mxu0 %v2265_v52  ;;  %v2261_v14 = vld [vmem:[#allocation5 + $0x40] sm:$0xff] }
  0xdb   :  { %v861_v18 = vpack.c.bf16 %v860_v15, %v860_v15  ;;  %842 = vmatmul.bf16.vlgmr.msra.gmra.mxu1 %v833_v16  ;;  %1192 = vmatpush.bf16.msrb.mxu3 %v2246_v26  ;;  %v2253_v15 = vld [vmem:[#allocation5] sm:$0xff] }
  0xdc   :  { %855 = vmatmul.bf16.vlgmr.msra.gmra.mxu2 %v831_v17  ;;  %1352 = vmatpush.bf16.msra.mxu1 %v2260_v40  ;;  %v1465_v17 = vrot.slane %v1464_v13, 2 }
  0xdd   :  { %870 = vmatmul.bf16.vlgmr.msra.gmra.mxu3 %v861_v18  ;;  %v2269_v18 = vld [vmem:[#allocation5 + $0x80] sm:$0xff] }
  0xde   :  { %1114 = vmatpush.bf16.msrb.mxu2 %v2237_v38  ;;  %1295 = vmatpush.bf16.msra.mxu0 %v2264_v57 }
  0xdf   :  { %1193 = vmatpush.bf16.msrb.mxu3 %v2245_v30 }
  0xe0   :  { %1353 = vmatpush.bf16.msra.mxu1 %v2259_v44 }
  0xe2   :  { %1431 = vmatpush.bf16.msra.mxu2 %v2276_v41  ;;  %1296 = vmatpush.bf16.msra.mxu0 %v2263_v63 }
  0xe3   :  { %1515 = vmatpush.bf16.msra.mxu3 %v2284_v31 }
  0xe4   :  { %1354 = vmatpush.bf16.msra.mxu1 %v2258_v49 }
  0xe6   :  { %1432 = vmatpush.bf16.msra.mxu2 %v2275_v45  ;;  %1297 = vmatpush.bf16.msra.mxu0 %v2262_v5 }
  0xe7   :  { %1516 = vmatpush.bf16.msra.mxu3 %v2283_v35 }
  0xe8   :  { %1355 = vmatpush.bf16.msra.mxu1 %v2257_v53 }
  0xea   :  { %1433 = vmatpush.bf16.msra.mxu2 %v2274_v50  ;;  %1298 = vmatpush.bf16.msra.mxu0 %v2261_v14 }
  0xeb   :  { %1517 = vmatpush.bf16.msra.mxu3 %v2282_v42 }
  0xec   :  { %1356 = vmatpush.bf16.msra.mxu1 %v2256_v58 }
  0xed   :  { %1194 = vmatmul.bf16.vlgmr.msrb.gmra.mxu3 %v1121_v47 }
  0xee   :  { %1434 = vmatpush.bf16.msra.mxu2 %v2273_v54  ;;  %v2292_v54 = vld [vmem:[%s2668_s8] ss:$0 sm:$0xff] }
  0xef   :  { %1518 = vmatpush.bf16.msra.mxu3 %v2281_v46 }
  0xf0   :  { %1357 = vmatpush.bf16.msra.mxu1 %v2255_v0 }
  0xf2   :  { %1435 = vmatpush.bf16.msra.mxu2 %v2272_v59 }
  0xf3   :  { %1519 = vmatpush.bf16.msra.mxu3 %v2280_v51 }
  0xf4   :  { %1358 = vmatpush.bf16.msra.mxu1 %v2254_v6 }
  0xf6   :  { %1436 = vmatpush.bf16.msra.mxu2 %v2271_v1 }
  0xf7   :  { %1520 = vmatpush.bf16.msra.mxu3 %v2279_v55 }
  0xf8   :  { %1359 = vmatpush.bf16.msra.mxu1 %v2253_v15 }
  0xfa   :  { %1437 = vmatpush.bf16.msra.mxu2 %v2270_v10 }
  0xfb   :  { %1521 = vmatpush.bf16.msra.mxu3 %v2278_v60 }
  0xfe   :  { %1438 = vmatpush.bf16.msra.mxu2 %v2269_v18 }
  0xff   :  { %1522 = vmatpush.bf16.msra.mxu3 %v2277_v4 }
 0x102   :  { %1523 = vmatmul.bf16.vlgmr.msra.gmra.mxu3 %v1465_v17 }
 0x140   :  { %v820_v56 = vpop.f32.mrf.mxu0 }
 0x144   :  { %v679_v61 = vpop.f32.mrf.mxu2 }
 0x145   :  { %v740_v62 = vpop.f32.mrf.mxu3 }
 0x146   :  { %v741_v2 = vadd.f32 %v740_v62, %v679_v61 }
 0x148   :  { %v824_v8 = vadd.f32 %v820_v56, %v741_v2  ;;  %v822_v9 = vpop.f32.mrf.mxu0 }
 0x14a   :  { %v828_v12 = vadd.f32 %v2291_v3, %v824_v8 }
 0x14c   :  { %v829_v16 = vmax.f32 %v828_v12, 0.0  ;;  %v681_v19 = vpop.f32.mrf.mxu2 }
 0x14d   :  { %v742_v20 = vpop.f32.mrf.mxu3 }
 0x14e   :  { %878 = vst [vmem:[#allocation2 + $0x1] sm:$0xf] %v829_v16 }
 0x155   :  { %v899_v21 = vld [vmem:[#allocation2 + $0x1] sm:$0xf] }
 0x156   :  { %v881_v22 = vld [vmem:[#allocation2] sm:$0xf]  ;;  %v900_v24 = vpack.c.bf16 %v899_v21, %v899_v21 }
 0x157   :  { %v1040_v23 = vld [vmem:[#allocation2 + $0x2] sm:$0xf]  ;;  %v882_v25 = vpack.c.bf16 %v881_v22, %v881_v22 }
 0x158   :  { %v1041_v26 = vpack.c.bf16 %v1040_v23, %v1040_v23  ;;  %v843_v27 = vpop.f32.mrf.mxu1  ;;  %974 = vmatmul.bf16.vlgmr.msrb.gmra.mxu0 %v900_v24 }
 0x159   :  { %1035 = vmatmul.bf16.vlgmr.msrb.gmra.mxu1 %v882_v25 }
 0x15a   :  { %1115 = vmatmul.bf16.vlgmr.msrb.gmra.mxu2 %v1041_v26 }
 0x15f   :  { %v856_v28 = vpop.f32.mrf.mxu2 }
 0x160   :  { %v857_v29 = vadd.f32 %v856_v28, %v843_v27  ;;  %v871_v30 = vpop.f32.mrf.mxu3  ;;  %v845_v31 = vpop.f32.mrf.mxu1 }
 0x162   :  { %v875_v32 = vadd.f32 %v871_v30, %v857_v29 }
 0x164   :  { %v876_v33 = vadd.f32 %v2291_v3, %v875_v32 }
 0x166   :  { %v877_v34 = vmax.f32 %v876_v33, 0.0 }
 0x167   :  { %v858_v35 = vpop.f32.mrf.mxu2 }
 0x168   :  { %879 = vst [vmem:[#allocation2 + $0x7] sm:$0xf] %v877_v34  ;;  %v873_v36 = vpop.f32.mrf.mxu3 }
 0x16f   :  { %v1225_v37 = vld [vmem:[#allocation2 + $0x7] sm:$0xf] }
 0x170   :  { %v1207_v38 = vld [vmem:[#allocation2 + $0x6] sm:$0xf]  ;;  %v1226_v40 = vpack.c.bf16 %v1225_v37, %v1225_v37  ;;  %v1195_v43 = vpop.f32.mrf.mxu3 }
 0x171   :  { %v1365_v39 = vld [vmem:[#allocation2 + $0x8] sm:$0xf]  ;;  %v1208_v41 = vpack.c.bf16 %v1207_v38, %v1207_v38 }
 0x172   :  { %v1366_v42 = vpack.c.bf16 %v1365_v39, %v1365_v39  ;;  %1299 = vmatmul.bf16.vlgmr.msra.gmra.mxu0 %v1226_v40 }
 0x173   :  { %1360 = vmatmul.bf16.vlgmr.msra.gmra.mxu1 %v1208_v41 }
 0x174   :  { %1439 = vmatmul.bf16.vlgmr.msra.gmra.mxu2 %v1366_v42 }
 0x178   :  { %v1197_v44 = vpop.f32.mrf.mxu3 }
 0x185   :  { %v1524_v45 = vpop.f32.mrf.mxu3 }
 0x18d   :  { %v1526_v48 = vpop.f32.mrf.mxu3 }
 0x1d5   :  { %v975_v46 = vpop.f32.mrf.mxu0 }
 0x1d6   :  { %v1036_v47 = vpop.f32.mrf.mxu1 }
 0x1d7   :  { %v1037_v49 = vadd.f32 %v1036_v47, %v975_v46 }
 0x1dd   :  { %v1116_v50 = vpop.f32.mrf.mxu2  ;;  %v977_v52 = vpop.f32.mrf.mxu0 }
 0x1de   :  { %v1120_v51 = vadd.f32 %v1116_v50, %v1037_v49  ;;  %v1038_v53 = vpop.f32.mrf.mxu1 }
 0x1e0   :  { %v1199_v55 = vadd.f32 %v1195_v43, %v1120_v51 }
 0x1e2   :  { %v1203_v56 = vadd.f32 %v2292_v54, %v1199_v55 }
 0x1e4   :  { %v1204_v57 = vmax.f32 %v1203_v56, 0.0 }
 0x1e5   :  { %v1118_v58 = vpop.f32.mrf.mxu2 }
 0x1e6   :  { %v1205_v59 = vpack.c.bf16 %v1204_v57, %v1204_v57 }
 0x1e8   :  { %1206 = vst [vmem:[%s2669_s9] sm:$0x3] %v1205_v59 }
 0x1ef   :  { %v1300_v60 = vpop.f32.mrf.mxu0 }
 0x1f0   :  { %v1361_v61 = vpop.f32.mrf.mxu1 }
 0x1f1   :  { %v1362_v62 = vadd.f32 %v1361_v61, %v1300_v60 }
 0x1f7   :  { %v1440_v63 = vpop.f32.mrf.mxu2  ;;  %v1302_v1 = vpop.f32.mrf.mxu0 }
 0x1f8   :  { %v1444_v0 = vadd.f32 %v1440_v63, %v1362_v62  ;;  %v1363_v2 = vpop.f32.mrf.mxu1 }
 0x1fa   :  { %v1528_v3 = vadd.f32 %v1524_v45, %v1444_v0 }
 0x1fc   :  { %v1529_v4 = vadd.f32 %v2292_v54, %v1528_v3 }
 0x1fe   :  { %v1530_v5 = vmax.f32 %v1529_v4, 0.0 }
 0x1ff   :  { %v1442_v6 = vpop.f32.mrf.mxu2 }
 0x200   :  { %v1531_v7 = vpack.c.bf16 %v1530_v5, %v1530_v5 }
 0x202   :  { %2148 = vst [vmem:[%s2669_s9 + $0x2] sm:$0x3] %v1531_v7 }
 0x203   :  { %1538 = vsyncpa [#allocation4], 1 }
 0x204   :  { %1539 = vsyncpa [#allocation6], 1 }

// kernel: detector_forward.6
= control target key start
LH: loop header
LB: loop body
LE: loop exit
PB: predicated region body
PF: predicated region fallthrough
CT: control target
= control target key end

     0   :  { %14 = vsyncpa [#allocation4], 0  ;;  %s2491_s0 = inlined_call_operand.vmem [shape: bf16[6,128], index: 0, kind: input, shape index: {}]   ;;  %s2492_s1 = inlined_call_operand.vmem [shape: bf16[4,128], index: 1, kind: input, shape index: {}]   ;;  %s2493_s2 = inlined_call_operand.hbm [shape: bf16[3,128,128], index: 2, kind: input, shape index: {}]   ;;  %s2494_s3 = inlined_call_operand.vmem [shape: f32[1,128], index: 3, kind: input, shape index: {}]   ;;  %s2495_s4 = inlined_call_operand.hbm [shape: bf16[3,128,128], index: 4, kind: input, shape index: {}]   ;;  %s2496_s5 = inlined_call_operand.vmem [shape: f32[1,128], index: 5, kind: input, shape index: {}]   ;;  %s2497_s6 = inlined_call_operand.hbm [shape: bf16[3,128,128], index: 6, kind: input, shape index: {}]   ;;  %s2498_s7 = inlined_call_operand.vmem [shape: bf16[128,128], index: 7, kind: input, shape index: {}]   ;;  %s2499_s8 = inlined_call_operand.vmem [shape: f32[1,128], index: 8, kind: input, shape index: {}]   ;;  %s2500_s9 = inlined_call_operand.vmem [shape: bf16[2,2,128], index: 9, kind: output, shape index: {}]  }
   0x1   :  { %15 = vsyncpa [#allocation6], 0  ;;  %s39_s11 = sshll.u32 %s2495_s4, 4  ;;  %s2319_s12 = smov [#allocation5]   ;;  %s40_s11 = int_to_ptr.hbm [resolvable:$true] %s39_s11 }
   0x2   :  { %s41_s13 = sshll.u32 %s2319_s12, 4  ;;  %s24_s16 = sshll.u32 %s2493_s2, 4  ;;  %s42_s13 = int_to_ptr.vmem [resolvable:$true] %s41_s13  ;;  %s25_s16 = int_to_ptr.hbm [resolvable:$true] %s24_s16 }
   0x3   :  { %s2320_s17 = smov 64   ;;  %s2321_s18 = smov 4  }
   0x4   :  { %47 = dma.hbm_to_vmem [thread:$0]  %s40_s11, 3072, %s42_s13, [#allocation6], %s2320_s17, %s2320_s17, %s2321_s18  }
   0x5   :  { %s2322_s19 = smov [#allocation3]   ;;  %s54_s23 = sshll.u32 %s2497_s6, 4  ;;  %s55_s23 = int_to_ptr.hbm [resolvable:$true] %s54_s23 }
   0x6   :  { %s26_s20 = sshll.u32 %s2322_s19, 4  ;;  %s2323_s4 = smov [#allocation7]   ;;  %s27_s20 = int_to_ptr.vmem [resolvable:$true] %s26_s20 }
   0x7   :  { %32 = dma.hbm_to_vmem [thread:$0]  %s25_s16, 3072, %s27_s20, [#allocation4], %s2320_s17, %s2320_s17, %s2321_s18  }
   0x8   :  { %s56_s24 = sshll.u32 %s2323_s4, 4  ;;  %s57_s24 = int_to_ptr.vmem [resolvable:$true] %s56_s24 }
   0x9   :  { %62 = dma.hbm_to_vmem [thread:$0]  %s55_s23, 3072, %s57_s24, [#allocation6], %s2320_s17, %s2320_s17, %s2321_s18  }
   0xa   :  { %2315 = dma.done.wait [#allocation4], 3072  }
   0xb   :  { %2316 = vsyncadd [#allocation4], 4294964224 }
   0xc   :  { %2317 = dma.done.wait [#allocation6], 6144  }
   0xd   :  { %2318 = vsyncadd [#allocation6], 4294961152  ;;  %v2113_v0 = vld [vmem:[#allocation3 + $0x78] sm:$0xff]  ;;  %v2112_v3 = vld [vmem:[#allocation3 + $0x70] sm:$0xff] }
   0xe   :  { %v2105_v1 = vld [vmem:[#allocation3 + $0x38] sm:$0xff]  ;;  %164 = vmatpush.bf16.msra.mxu0 %v2113_v0  ;;  %v2104_v4 = vld [vmem:[#allocation3 + $0x30] sm:$0xff]  ;;  %v2111_v7 = vld [vmem:[#allocation3 + $0x68] sm:$0xff] }
   0xf   :  { %v2121_v2 = vld [vmem:[#allocation3 + $0xb8] sm:$0xff]  ;;  %225 = vmatpush.bf16.msra.mxu1 %v2105_v1  ;;  %v2120_v5 = vld [vmem:[#allocation3 + $0xb0] sm:$0xff]  ;;  %v2103_v8 = vld [vmem:[#allocation3 + $0x28] sm:$0xff] }
  0x10   :  { %315 = vmatpush.bf16.msra.mxu2 %v2121_v2  ;;  %v2137_v6 = vld [vmem:[#allocation3 + $0x78] sm:$0xff]  ;;  %v2119_v9 = vld [vmem:[#allocation3 + $0xa8] sm:$0xff]  ;;  %v2136_v10 = vld [vmem:[#allocation3 + $0x70] sm:$0xff] }
  0x11   :  { %423 = vmatpush.bf16.msra.mxu3 %v2137_v6  ;;  %v2110_v11 = vld [vmem:[#allocation3 + $0x60] sm:$0xff]  ;;  %v2135_v14 = vld [vmem:[#allocation3 + $0x68] sm:$0xff]  ;;  %v238_v15 = vld [vmem:[%s2491_s0] sm:$0x3] }
  0x12   :  { %165 = vmatpush.bf16.msra.mxu0 %v2112_v3  ;;  %v2102_v12 = vld [vmem:[#allocation3 + $0x20] sm:$0xff]  ;;  %v2109_v16 = vld [vmem:[#allocation3 + $0x58] sm:$0xff]  ;;  %v257_v19 = vunpack.c.l.b16 %v238_v15  ;;  %v352_v21 = vld [vmem:[%s2492_s1] sm:$0x2] }
  0x13   :  { %226 = vmatpush.bf16.msra.mxu1 %v2104_v4  ;;  %v2118_v13 = vld [vmem:[#allocation3 + $0xa0] sm:$0xff]  ;;  %v2101_v17 = vld [vmem:[#allocation3 + $0x18] sm:$0xff]  ;;  %370 = vst [vmem:[#allocation1] ss:$4 sm:$0xff] %v352_v21  ;;  %v2108_v22 = vld [vmem:[#allocation3 + $0x50] sm:$0xff] }
  0x14   :  { %316 = vmatpush.bf16.msra.mxu2 %v2120_v5  ;;  %v2117_v18 = vld [vmem:[#allocation3 + $0x98] sm:$0xff]  ;;  %v2134_v20 = vld [vmem:[#allocation3 + $0x60] sm:$0xff]  ;;  %v2100_v23 = vld [vmem:[#allocation3 + $0x10] sm:$0xff]  ;;  %v258_v24 = vpack.c.b16 %v257_v19, %v257_v19 }
  0x15   :  { %424 = vmatpush.bf16.msra.mxu3 %v2136_v10  ;;  %v2116_v25 = vld [vmem:[#allocation3 + $0x90] sm:$0xff]  ;;  %v2133_v26 = vld [vmem:[#allocation3 + $0x58] sm:$0xff]  ;;  %v2107_v28 = vld [vmem:[#allocation3 + $0x48] sm:$0xff] }
  0x16   :  { %166 = vmatpush.bf16.msra.mxu0 %v2111_v7  ;;  %v1457_v27 = vld [vmem:[%s2492_s1] sm:$0x2]  ;;  %v2099_v29 = vld [vmem:[#allocation3 + $0x8] sm:$0xff]  ;;  %v262_v30 = vshll.u32 %v258_v24, 16  ;;  %v2106_v34 = vld [vmem:[#allocation3 + $0x40] sm:$0xff]  ;;  %v260_v36 = vshrl.u32 %v258_v24, 16 }
  0x17   :  { %227 = vmatpush.bf16.msra.mxu1 %v2103_v8  ;;  %v2115_v31 = vld [vmem:[#allocation3 + $0x88] sm:$0xff]  ;;  %v2132_v32 = vld [vmem:[#allocation3 + $0x50] sm:$0xff]  ;;  %v2098_v35 = vld [vmem:[#allocation3] sm:$0xff] }
  0x18   :  { %317 = vmatpush.bf16.msra.mxu2 %v2119_v9  ;;  %v264_v37 = vrot.slane %v262_v30, 1  ;;  %v2114_v38 = vld [vmem:[#allocation3 + $0x80] sm:$0xff]  ;;  %v2129_v39 = vld [vmem:[#allocation3 + $0x38] sm:$0xff]  ;;  %v2131_v41 = vld [vmem:[#allocation3 + $0x48] sm:$0xff] }
  0x19   :  { %425 = vmatpush.bf16.msra.mxu3 %v2135_v14  ;;  %v2145_v40 = vld [vmem:[#allocation3 + $0xb8] sm:$0xff]  ;;  %v98_v43 = vld [vmem:[%s2492_s1] sm:$0x1]  ;;  %v2130_v48 = vld [vmem:[#allocation3 + $0x40] sm:$0xff] }
  0x1a   :  { %167 = vmatpush.bf16.msra.mxu0 %v2110_v11  ;;  %v371_v33 = vld.sshfl [vmem:[#allocation1] sm:$0xff pattern:$0x73625140]  ;;  %v265_v42 = vor.u32 %v264_v37, %v260_v36  ;;  %v2399_v46 = vld [vmem:[#allocation5 + $0x78] sm:$0xff]  ;;  %v2127_v50 = vld [vmem:[#allocation3 + $0x28] sm:$0xff] }
  0x1b   :  { %228 = vmatpush.bf16.msra.mxu1 %v2102_v12  ;;  %1475 = vst [vmem:[#allocation1] ss:$4 sm:$0xff] %v1457_v27  ;;  %v81_v44 = vld [vmem:[%s2491_s0] sm:$0x1]  ;;  %v2401_v49 = vld [vmem:[#allocation5 + $0x38] sm:$0xff]  ;;  %v373_v51 = vrot.slane %v371_v33, 1 }
  0x1c   :  { %318 = vmatpush.bf16.msra.mxu2 %v2118_v13  ;;  %v2128_v45 = vld [vmem:[#allocation3 + $0x30] sm:$0xff]  ;;  %v2143_v52 = vld [vmem:[#allocation3 + $0xa8] sm:$0xff]  ;;  %v2126_v55 = vld [vmem:[#allocation3 + $0x20] sm:$0xff] }
  0x1d   :  { %426 = vmatpush.bf16.msra.mxu3 %v2134_v20  ;;  %v2144_v47 = vld [vmem:[#allocation3 + $0xb0] sm:$0xff]  ;;  %v2142_v57 = vld [vmem:[#allocation3 + $0xa0] sm:$0xff]  ;;  %v2159_v58 = vld [vmem:[#allocation5 + $0x68] sm:$0xff] }
  0x1e   :  { %168 = vmatpush.bf16.msra.mxu0 %v2109_v16  ;;  %v2160_v53 = vld [vmem:[#allocation5 + $0x70] sm:$0xff]  ;;  %v2411_v59 = vld [vmem:[#allocation5 + $0x28] sm:$0xff]  ;;  %v2125_v61 = vld [vmem:[#allocation3 + $0x18] sm:$0xff] }
  0x1f   :  { %229 = vmatpush.bf16.msra.mxu1 %v2101_v17  ;;  %v2405_v54 = vld [vmem:[#allocation5 + $0x30] sm:$0xff]  ;;  %v2141_v62 = vld [vmem:[#allocation3 + $0x98] sm:$0xff]  ;;  %v2158_v63 = vld [vmem:[#allocation5 + $0x60] sm:$0xff] }
  0x20   :  { %319 = vmatpush.bf16.msra.mxu2 %v2117_v18  ;;  %v335_v56 = vld [vmem:[%s2491_s0] sm:$0x6]  ;;  %v2414_v0 = vld [vmem:[#allocation5 + $0x20] sm:$0xff]  ;;  %v2123_v7 = vld [vmem:[#allocation3 + $0x8] sm:$0xff] }
  0x21   :  { %427 = vmatpush.bf16.msra.mxu3 %v2133_v26  ;;  %v437_v60 = vunpack.c.l.b16 %v335_v56  ;;  %v2124_v2 = vld [vmem:[#allocation3 + $0x10] sm:$0xff]  ;;  %v2139_v9 = vld [vmem:[#allocation3 + $0x88] sm:$0xff]  ;;  %v2122_v12 = vld [vmem:[#allocation3] sm:$0xff] }
  0x22   :  { %169 = vmatpush.bf16.msra.mxu0 %v2108_v22  ;;  %v2140_v3 = vld [vmem:[#allocation3 + $0x90] sm:$0xff]  ;;  %v2138_v14 = vld [vmem:[#allocation3 + $0x80] sm:$0xff]  ;;  %v2169_v15 = vld [vmem:[#allocation5 + $0xb8] sm:$0xff] }
  0x23   :  { %230 = vmatpush.bf16.msra.mxu1 %v2100_v23  ;;  %v438_v1 = vpack.c.b16 %v437_v60, %v437_v60  ;;  %v509_v4 = vld [vmem:[%s2491_s0] sm:$0x4]  ;;  %v2167_v19 = vld [vmem:[#allocation5 + $0xa8] sm:$0xff]  ;;  %v2157_v20 = vld [vmem:[#allocation5 + $0x58] sm:$0xff]  ;;  %v2324_v23 = vmov 0.0  }
  0x24   :  { %320 = vmatpush.bf16.msra.mxu2 %v2116_v25  ;;  %v527_v8 = vunpack.c.l.b16 %v509_v4  ;;  %v2168_v18 = vld [vmem:[#allocation5 + $0xb0] sm:$0xff]  ;;  %v2149_v21 = vld [vmem:[#allocation5 + $0x18] sm:$0xff]  ;;  %v2166_v22 = vld [vmem:[#allocation5 + $0xa0] sm:$0xff]  ;;  %79 = vst [vmem:[#allocation2] sm:$0xff] %v2324_v23 }
  0x25   :  { %428 = vmatpush.bf16.msra.mxu3 %v2132_v32  ;;  %v440_v5 = vshrl.u32 %v438_v1, 16  ;;  %v443_v6 = vshll.u32 %v438_v1, 16  ;;  %v2156_v24 = vld [vmem:[#allocation5 + $0x50] sm:$0xff]  ;;  %v2165_v26 = vld [vmem:[#allocation5 + $0x98] sm:$0xff]  ;;  %v2155_v27 = vld [vmem:[#allocation5 + $0x48] sm:$0xff] }
  0x26   :  { %170 = vmatpush.bf16.msra.mxu0 %v2107_v28  ;;  %v528_v13 = vpack.c.b16 %v527_v8, %v527_v8  ;;  %v2148_v25 = vld [vmem:[#allocation5 + $0x10] sm:$0xff]  ;;  %v2147_v28 = vld [vmem:[#allocation5 + $0x8] sm:$0xff]  ;;  %v2154_v30 = vld [vmem:[#allocation5 + $0x40] sm:$0xff] }
  0x27   :  { %231 = vmatpush.bf16.msra.mxu1 %v2099_v29  ;;  %v442_v10 = vrot.slane %v440_v5, 1  ;;  %v445_v11 = vrot.slane %v443_v6, 2  ;;  %v2164_v29 = vld [vmem:[#allocation5 + $0x90] sm:$0xff]  ;;  %v2163_v32 = vld [vmem:[#allocation5 + $0x88] sm:$0xff]  ;;  %v2162_v33 = vld [vmem:[#allocation5 + $0x80] sm:$0xff] }
  0x28   :  { %321 = vmatpush.bf16.msra.mxu2 %v2115_v31  ;;  %v529_v17 = vrot.slane %v528_v13, 2  ;;  %v2146_v31 = vld [vmem:[#allocation5] sm:$0xff]  ;;  %v2240_v37 = vld [vmem:[%s2494_s3] ss:$0 sm:$0xff]  ;;  %v2189_v23 = vld [vmem:[#allocation7 + $0x98] sm:$0xff] }
  0x29   :  { %429 = vmatpush.bf16.msra.mxu3 %v2131_v41  ;;  %v446_v16 = vor.u32 %v445_v11, %v442_v10  ;;  %v2200_v60 = vld [vmem:[%s2498_s7 + $0x30] sm:$0xff]  ;;  %v2198_v5 = vld [vmem:[%s2498_s7 + $0x20] sm:$0xff] }
  0x2a   :  { %171 = vmatpush.bf16.msra.mxu0 %v2106_v34 }
  0x2b   :  { %232 = vmatpush.bf16.msra.mxu1 %v2098_v35 }
  0x2c   :  { %322 = vmatpush.bf16.msra.mxu2 %v2114_v38 }
  0x2d   :  { %172 = vmatmul.bf16.vlgmr.msra.gmra.mxu0 %v98_v43  ;;  %430 = vmatpush.bf16.msra.mxu3 %v2130_v48  ;;  %v2184_v48 = vld [vmem:[#allocation7 + $0x70] sm:$0xff] }
  0x2e   :  { %496 = vmatpush.bf16.msrb.mxu0 %v2129_v39  ;;  %233 = vmatmul.bf16.vlgmr.msra.gmra.mxu1 %v81_v44 }
  0x2f   :  { %579 = vmatpush.bf16.msrb.mxu1 %v2145_v40  ;;  %323 = vmatmul.bf16.vlgmr.msra.gmra.mxu2 %v265_v42 }
  0x30   :  { %682 = vmatpush.bf16.msrb.mxu2 %v2399_v46  ;;  %431 = vmatmul.bf16.vlgmr.msra.gmra.mxu3 %v373_v51 }
  0x31   :  { %743 = vmatpush.bf16.msrb.mxu3 %v2401_v49 }
  0x32   :  { %497 = vmatpush.bf16.msrb.mxu0 %v2128_v45 }
  0x33   :  { %580 = vmatpush.bf16.msrb.mxu1 %v2144_v47  ;;  %v2177_v47 = vld [vmem:[#allocation7 + $0x38] sm:$0xff] }
  0x34   :  { %683 = vmatpush.bf16.msrb.mxu2 %v2160_v53 }
  0x35   :  { %744 = vmatpush.bf16.msrb.mxu3 %v2405_v54 }
  0x36   :  { %498 = vmatpush.bf16.msrb.mxu0 %v2127_v50  ;;  %v2201_v50 = vld [vmem:[%s2498_s7 + $0x38] sm:$0xff] }
  0x37   :  { %581 = vmatpush.bf16.msrb.mxu1 %v2143_v52 }
  0x38   :  { %684 = vmatpush.bf16.msrb.mxu2 %v2159_v58 }
  0x39   :  { %745 = vmatpush.bf16.msrb.mxu3 %v2411_v59 }
  0x3a   :  { %499 = vmatpush.bf16.msrb.mxu0 %v2126_v55 }
  0x3b   :  { %582 = vmatpush.bf16.msrb.mxu1 %v2142_v57  ;;  %v2193_v57 = vld [vmem:[#allocation7 + $0xb8] sm:$0xff] }
  0x3c   :  { %685 = vmatpush.bf16.msrb.mxu2 %v2158_v63 }
  0x3d   :  { %746 = vmatpush.bf16.msrb.mxu3 %v2414_v0 }
  0x3e   :  { %500 = vmatpush.bf16.msrb.mxu0 %v2125_v61  ;;  %v2192_v61 = vld [vmem:[#allocation7 + $0xb0] sm:$0xff] }
  0x3f   :  { %583 = vmatpush.bf16.msrb.mxu1 %v2141_v62  ;;  %v2175_v62 = vld [vmem:[#allocation7 + $0x28] sm:$0xff] }
  0x40   :  { %686 = vmatpush.bf16.msrb.mxu2 %v2157_v20 }
  0x41   :  { %747 = vmatpush.bf16.msrb.mxu3 %v2149_v21 }
  0x42   :  { %501 = vmatpush.bf16.msrb.mxu0 %v2124_v2 }
  0x43   :  { %584 = vmatpush.bf16.msrb.mxu1 %v2140_v3  ;;  %v2191_v3 = vld [vmem:[#allocation7 + $0xa8] sm:$0xff] }
  0x44   :  { %687 = vmatpush.bf16.msrb.mxu2 %v2156_v24 }
  0x45   :  { %748 = vmatpush.bf16.msrb.mxu3 %v2148_v25 }
  0x46   :  { %502 = vmatpush.bf16.msrb.mxu0 %v2123_v7 }
  0x47   :  { %585 = vmatpush.bf16.msrb.mxu1 %v2139_v9  ;;  %v2197_v9 = vld [vmem:[%s2498_s7 + $0x18] sm:$0xff] }
  0x48   :  { %688 = vmatpush.bf16.msrb.mxu2 %v2155_v27 }
  0x49   :  { %749 = vmatpush.bf16.msrb.mxu3 %v2147_v28 }
  0x4a   :  { %503 = vmatpush.bf16.msrb.mxu0 %v2122_v12 }
  0x4b   :  { %586 = vmatpush.bf16.msrb.mxu1 %v2138_v14 }
  0x4c   :  { %689 = vmatpush.bf16.msrb.mxu2 %v2154_v30 }
  0x4d   :  { %504 = vmatmul.bf16.vlgmr.msrb.gmra.mxu0 %v446_v16  ;;  %750 = vmatpush.bf16.msrb.mxu3 %v2146_v31 }
  0x4e   :  { %823 = vmatpush.bf16.msra.mxu0 %v2169_v15  ;;  %587 = vmatmul.bf16.vlgmr.msrb.gmra.mxu1 %v529_v17  ;;  %v2182_v17 = vld [vmem:[#allocation7 + $0x60] sm:$0xff] }
  0x4f   :  { %846 = vmatpush.bf16.msra.mxu1 %v2399_v46  ;;  %v2185_v46 = vld [vmem:[#allocation7 + $0x78] sm:$0xff] }
  0x50   :  { %859 = vmatpush.bf16.msra.mxu2 %v2401_v49 }
  0x51   :  { %874 = vmatpush.bf16.msra.mxu3 %v2169_v15 }
  0x52   :  { %824 = vmatpush.bf16.msra.mxu0 %v2168_v18 }
  0x53   :  { %847 = vmatpush.bf16.msra.mxu1 %v2160_v53 }
  0x54   :  { %860 = vmatpush.bf16.msra.mxu2 %v2405_v54 }
  0x55   :  { %875 = vmatpush.bf16.msra.mxu3 %v2168_v18  ;;  %v2174_v18 = vld [vmem:[#allocation7 + $0x20] sm:$0xff] }
  0x56   :  { %825 = vmatpush.bf16.msra.mxu0 %v2167_v19 }
  0x57   :  { %848 = vmatpush.bf16.msra.mxu1 %v2159_v58  ;;  %v2176_v58 = vld [vmem:[#allocation7 + $0x30] sm:$0xff] }
  0x58   :  { %861 = vmatpush.bf16.msra.mxu2 %v2411_v59  ;;  %v2183_v59 = vld [vmem:[#allocation7 + $0x68] sm:$0xff] }
  0x59   :  { %876 = vmatpush.bf16.msra.mxu3 %v2167_v19  ;;  %v2190_v19 = vld [vmem:[#allocation7 + $0xa0] sm:$0xff] }
  0x5a   :  { %826 = vmatpush.bf16.msra.mxu0 %v2166_v22 }
  0x5b   :  { %849 = vmatpush.bf16.msra.mxu1 %v2158_v63 }
  0x5c   :  { %862 = vmatpush.bf16.msra.mxu2 %v2414_v0  ;;  %v2199_v0 = vld [vmem:[%s2498_s7 + $0x28] sm:$0xff] }
  0x5d   :  { %877 = vmatpush.bf16.msra.mxu3 %v2166_v22  ;;  %v2173_v22 = vld [vmem:[#allocation7 + $0x18] sm:$0xff] }
  0x5e   :  { %827 = vmatpush.bf16.msra.mxu0 %v2165_v26 }
  0x5f   :  { %850 = vmatpush.bf16.msra.mxu1 %v2157_v20  ;;  %v2196_v20 = vld [vmem:[%s2498_s7 + $0x10] sm:$0xff] }
  0x60   :  { %863 = vmatpush.bf16.msra.mxu2 %v2149_v21  ;;  %v2181_v21 = vld [vmem:[#allocation7 + $0x58] sm:$0xff] }
  0x61   :  { %878 = vmatpush.bf16.msra.mxu3 %v2165_v26  ;;  %v2172_v26 = vld [vmem:[#allocation7 + $0x10] sm:$0xff] }
  0x62   :  { %828 = vmatpush.bf16.msra.mxu0 %v2164_v29 }
  0x63   :  { %851 = vmatpush.bf16.msra.mxu1 %v2156_v24  ;;  %v2195_v24 = vld [vmem:[%s2498_s7 + $0x8] sm:$0xff] }
  0x64   :  { %864 = vmatpush.bf16.msra.mxu2 %v2148_v25  ;;  %v2180_v25 = vld [vmem:[#allocation7 + $0x50] sm:$0xff] }
  0x65   :  { %879 = vmatpush.bf16.msra.mxu3 %v2164_v29  ;;  %v2233_v29 = vld [vmem:[%s2498_s7 + $0x38] sm:$0xff] }
  0x66   :  { %829 = vmatpush.bf16.msra.mxu0 %v2163_v32 }
  0x67   :  { %852 = vmatpush.bf16.msra.mxu1 %v2155_v27  ;;  %v2188_v27 = vld [vmem:[#allocation7 + $0x90] sm:$0xff] }
  0x68   :  { %865 = vmatpush.bf16.msra.mxu2 %v2147_v28  ;;  %v2194_v28 = vld [vmem:[%s2498_s7] sm:$0xff] }
  0x69   :  { %880 = vmatpush.bf16.msra.mxu3 %v2163_v32  ;;  %v2187_v32 = vld [vmem:[#allocation7 + $0x88] sm:$0xff] }
  0x6a   :  { %830 = vmatpush.bf16.msra.mxu0 %v2162_v33 }
  0x6b   :  { %853 = vmatpush.bf16.msra.mxu1 %v2154_v30  ;;  %v2179_v30 = vld [vmem:[#allocation7 + $0x48] sm:$0xff] }
  0x6c   :  { %866 = vmatpush.bf16.msra.mxu2 %v2146_v31  ;;  %v2171_v31 = vld [vmem:[#allocation7 + $0x8] sm:$0xff] }
  0x6d   :  { %881 = vmatpush.bf16.msra.mxu3 %v2162_v33  ;;  %v2232_v33 = vld [vmem:[%s2498_s7 + $0x30] sm:$0xff] }
  0x6e   :  { %978 = vmatpush.bf16.msrb.mxu0 %v2185_v46  ;;  %v2215_v46 = vld [vmem:[#allocation7 + $0x68] sm:$0xff] }
  0x6f   :  { %1039 = vmatpush.bf16.msrb.mxu1 %v2177_v47  ;;  %v2207_v47 = vld [vmem:[#allocation7 + $0x28] sm:$0xff] }
  0x72   :  { %979 = vmatpush.bf16.msrb.mxu0 %v2184_v48  ;;  %v2223_v48 = vld [vmem:[#allocation7 + $0xa8] sm:$0xff] }
  0x73   :  { %1040 = vmatpush.bf16.msrb.mxu1 %v2176_v58  ;;  %v2227_v58 = vld [vmem:[%s2498_s7 + $0x8] sm:$0xff] }
  0x76   :  { %980 = vmatpush.bf16.msrb.mxu0 %v2183_v59 }
  0x77   :  { %1041 = vmatpush.bf16.msrb.mxu1 %v2175_v62  ;;  %v2204_v62 = vld [vmem:[#allocation7 + $0x10] sm:$0xff] }
  0x7a   :  { %981 = vmatpush.bf16.msrb.mxu0 %v2182_v17 }
  0x7b   :  { %1042 = vmatpush.bf16.msrb.mxu1 %v2174_v18 }
  0x7e   :  { %982 = vmatpush.bf16.msrb.mxu0 %v2181_v21 }
  0x7f   :  { %1043 = vmatpush.bf16.msrb.mxu1 %v2173_v22 }
  0x82   :  { %983 = vmatpush.bf16.msrb.mxu0 %v2180_v25 }
  0x83   :  { %1044 = vmatpush.bf16.msrb.mxu1 %v2172_v26 }
  0x86   :  { %984 = vmatpush.bf16.msrb.mxu0 %v2179_v30 }
  0x87   :  { %1045 = vmatpush.bf16.msrb.mxu1 %v2171_v31 }
  0xaa   :  { %v173_v34 = vpop.f32.mrf.mxu0 }
  0xab   :  { %v234_v35 = vpop.f32.mrf.mxu1 }
  0xac   :  { %v235_v36 = vadd.f32 %v234_v35, %v173_v34  ;;  %v2178_v34 = vld [vmem:[#allocation7 + $0x40] sm:$0xff] }
  0xad   :  { %v2170_v35 = vld [vmem:[#allocation7] sm:$0xff]  ;;  %985 = vmatpush.bf16.msrb.mxu0 %v2178_v34 }
  0xae   :  { %1046 = vmatpush.bf16.msrb.mxu1 %v2170_v35 }
  0xb2   :  { %v324_v38 = vpop.f32.mrf.mxu2  ;;  %v175_v40 = vpop.f32.mrf.mxu0 }
  0xb3   :  { %v328_v39 = vadd.f32 %v324_v38, %v235_v36  ;;  %v236_v41 = vpop.f32.mrf.mxu1  ;;  %v432_v44 = vpop.f32.mrf.mxu3  ;;  %v2186_v36 = vld [vmem:[#allocation7 + $0x80] sm:$0xff]  ;;  %v2209_v38 = vld [vmem:[#allocation7 + $0x38] sm:$0xff] }
  0xb4   :  { %v2231_v40 = vld [vmem:[%s2498_s7 + $0x28] sm:$0xff]  ;;  %v2216_v41 = vld [vmem:[#allocation7 + $0x70] sm:$0xff] }
  0xb5   :  { %v332_v42 = vadd.f32 %v2240_v37, %v328_v39  ;;  %v2225_v39 = vld [vmem:[#allocation7 + $0xb8] sm:$0xff] }
  0xb7   :  { %v333_v43 = vmax.f32 %v332_v42, 0.0  ;;  %v2208_v42 = vld [vmem:[#allocation7 + $0x30] sm:$0xff] }
  0xb9   :  { %334 = vst [vmem:[#allocation2 + $0x1] sm:$0x3] %v333_v43  ;;  %v2224_v43 = vld [vmem:[#allocation7 + $0xb0] sm:$0xff] }
  0xba   :  { %v326_v45 = vpop.f32.mrf.mxu2 }
  0xbb   :  { %v434_v49 = vpop.f32.mrf.mxu3  ;;  %v1133_v45 = vld [vmem:[%s2492_s1] sm:$0x1] }
  0xbc   :  { %v2229_v49 = vld [vmem:[%s2498_s7 + $0x18] sm:$0xff] }
  0xc0   :  { %v615_v51 = vld [vmem:[#allocation2 + $0x1] sm:$0x3] }
  0xc1   :  { %v597_v52 = vld [vmem:[#allocation2] sm:$0x3]  ;;  %v756_v53 = vld [vmem:[#allocation2 + $0x2] sm:$0x3]  ;;  %v616_v54 = vpack.c.bf16 %v615_v51, %v615_v51  ;;  %v2206_v51 = vld [vmem:[#allocation7 + $0x20] sm:$0xff] }
  0xc2   :  { %v598_v55 = vpack.c.bf16 %v597_v52, %v597_v52  ;;  %v757_v56 = vpack.c.bf16 %v756_v53, %v756_v53  ;;  %v2222_v52 = vld [vmem:[#allocation7 + $0xa0] sm:$0xff] }
  0xc3   :  { %690 = vmatmul.bf16.vlgmr.msrb.gmra.mxu2 %v616_v54  ;;  %v2228_v53 = vld [vmem:[%s2498_s7 + $0x10] sm:$0xff] }
  0xc4   :  { %751 = vmatmul.bf16.vlgmr.msrb.gmra.mxu3 %v598_v55  ;;  %831 = vmatmul.bf16.vlgmr.msra.gmra.mxu0 %v757_v56  ;;  %v2213_v55 = vld [vmem:[#allocation7 + $0x58] sm:$0xff] }
  0xc5   :  { %1198 = vmatpush.bf16.msrb.mxu3 %v2201_v50  ;;  %1119 = vmatpush.bf16.msrb.mxu2 %v2193_v57  ;;  %v2214_v50 = vld [vmem:[#allocation7 + $0x60] sm:$0xff]  ;;  %v2205_v56 = vld [vmem:[#allocation7 + $0x18] sm:$0xff] }
  0xc6   :  { %v2221_v57 = vld [vmem:[#allocation7 + $0x98] sm:$0xff] }
  0xc9   :  { %1199 = vmatpush.bf16.msrb.mxu3 %v2200_v60  ;;  %1120 = vmatpush.bf16.msrb.mxu2 %v2192_v61  ;;  %v2212_v61 = vld [vmem:[#allocation7 + $0x50] sm:$0xff] }
  0xca   :  { %v505_v63 = vpop.f32.mrf.mxu0 }
  0xcb   :  { %v506_v1 = vadd.f32 %v505_v63, %v432_v44  ;;  %v588_v2 = vpop.f32.mrf.mxu1  ;;  %v2230_v44 = vld [vmem:[%s2498_s7 + $0x20] sm:$0xff] }
  0xcc   :  { %v2220_v63 = vld [vmem:[#allocation7 + $0x90] sm:$0xff] }
  0xcd   :  { %v592_v4 = vadd.f32 %v588_v2, %v506_v1  ;;  %1200 = vmatpush.bf16.msrb.mxu3 %v2199_v0  ;;  %1121 = vmatpush.bf16.msrb.mxu2 %v2191_v3  ;;  %v2241_v1 = vld [vmem:[%s2496_s5] ss:$0 sm:$0xff]  ;;  %v2211_v3 = vld [vmem:[#allocation7 + $0x48] sm:$0xff] }
  0xce   :  { %v2226_v2 = vld [vmem:[%s2498_s7] sm:$0xff] }
  0xcf   :  { %v593_v6 = vadd.f32 %v2240_v37, %v592_v4  ;;  %v2217_v37 = vld [vmem:[#allocation7 + $0x78] sm:$0xff]  ;;  %v2203_v4 = vld [vmem:[#allocation7 + $0x8] sm:$0xff] }
  0xd0   :  { %1303 = vmatpush.bf16.msra.mxu0 %v2217_v37 }
  0xd1   :  { %v594_v7 = vmax.f32 %v593_v6, 0.0  ;;  %1201 = vmatpush.bf16.msrb.mxu3 %v2198_v5  ;;  %1122 = vmatpush.bf16.msrb.mxu2 %v2190_v19  ;;  %v1476_v5 = vld.sshfl [vmem:[#allocation1] sm:$0xff pattern:$0x73625140] }
  0xd2   :  { %v507_v8 = vpop.f32.mrf.mxu0 }
  0xd3   :  { %595 = vst [vmem:[#allocation2 + $0x5] sm:$0x3] %v594_v7  ;;  %v590_v10 = vpop.f32.mrf.mxu1  ;;  %v2219_v8 = vld [vmem:[#allocation7 + $0x88] sm:$0xff] }
  0xd4   :  { %1304 = vmatpush.bf16.msra.mxu0 %v2216_v41 }
  0xd5   :  { %1202 = vmatpush.bf16.msrb.mxu3 %v2197_v9  ;;  %1123 = vmatpush.bf16.msrb.mxu2 %v2189_v23  ;;  %v1478_v9 = vrot.slane %v1476_v5, 1 }
  0xd8   :  { %1305 = vmatpush.bf16.msra.mxu0 %v2215_v46 }
  0xd9   :  { %1203 = vmatpush.bf16.msrb.mxu3 %v2196_v20  ;;  %1124 = vmatpush.bf16.msrb.mxu2 %v2188_v27 }
  0xda   :  { %v844_v11 = vld [vmem:[#allocation2 + $0x5] sm:$0x3] }
  0xdb   :  { %v842_v12 = vld [vmem:[#allocation2 + $0x4] sm:$0x3]  ;;  %v872_v13 = vld [vmem:[#allocation2 + $0x6] sm:$0x3]  ;;  %v845_v14 = vpack.c.bf16 %v844_v11, %v844_v11  ;;  %v2210_v11 = vld [vmem:[#allocation7 + $0x40] sm:$0xff] }
  0xdc   :  { %v843_v15 = vpack.c.bf16 %v842_v12, %v842_v12  ;;  %v873_v16 = vpack.c.bf16 %v872_v13, %v872_v13  ;;  %1306 = vmatpush.bf16.msra.mxu0 %v2214_v50  ;;  %v2202_v12 = vld [vmem:[#allocation7] sm:$0xff]  ;;  %v2242_v50 = vld [vmem:[%s2499_s8] ss:$0 sm:$0xff] }
  0xdd   :  { %854 = vmatmul.bf16.vlgmr.msra.gmra.mxu1 %v845_v14  ;;  %1204 = vmatpush.bf16.msrb.mxu3 %v2195_v24  ;;  %v2218_v14 = vld [vmem:[#allocation7 + $0x80] sm:$0xff] }
  0xde   :  { %867 = vmatmul.bf16.vlgmr.msra.gmra.mxu2 %v843_v15  ;;  %882 = vmatmul.bf16.vlgmr.msra.gmra.mxu3 %v873_v16 }
  0xdf   :  { %1125 = vmatpush.bf16.msrb.mxu2 %v2187_v32  ;;  %1364 = vmatpush.bf16.msra.mxu1 %v2209_v38 }
  0xe0   :  { %1307 = vmatpush.bf16.msra.mxu0 %v2213_v55 }
  0xe1   :  { %1205 = vmatpush.bf16.msrb.mxu3 %v2194_v28 }
  0xe3   :  { %1126 = vmatpush.bf16.msrb.mxu2 %v2186_v36  ;;  %1365 = vmatpush.bf16.msra.mxu1 %v2208_v42 }
  0xe4   :  { %1308 = vmatpush.bf16.msra.mxu0 %v2212_v61 }
  0xe5   :  { %1528 = vmatpush.bf16.msra.mxu3 %v2233_v29 }
  0xe7   :  { %1443 = vmatpush.bf16.msra.mxu2 %v2225_v39  ;;  %1366 = vmatpush.bf16.msra.mxu1 %v2207_v47 }
  0xe8   :  { %1309 = vmatpush.bf16.msra.mxu0 %v2211_v3 }
  0xe9   :  { %1529 = vmatpush.bf16.msra.mxu3 %v2232_v33 }
  0xeb   :  { %1444 = vmatpush.bf16.msra.mxu2 %v2224_v43  ;;  %1367 = vmatpush.bf16.msra.mxu1 %v2206_v51 }
  0xec   :  { %1310 = vmatpush.bf16.msra.mxu0 %v2210_v11 }
  0xed   :  { %1530 = vmatpush.bf16.msra.mxu3 %v2231_v40 }
  0xee   :  { %1206 = vmatmul.bf16.vlgmr.msrb.gmra.mxu3 %v1133_v45 }
  0xef   :  { %1445 = vmatpush.bf16.msra.mxu2 %v2223_v48  ;;  %1368 = vmatpush.bf16.msra.mxu1 %v2205_v56 }
  0xf1   :  { %1531 = vmatpush.bf16.msra.mxu3 %v2230_v44 }
  0xf3   :  { %1446 = vmatpush.bf16.msra.mxu2 %v2222_v52  ;;  %1369 = vmatpush.bf16.msra.mxu1 %v2204_v62 }
  0xf5   :  { %1532 = vmatpush.bf16.msra.mxu3 %v2229_v49 }
  0xf7   :  { %1447 = vmatpush.bf16.msra.mxu2 %v2221_v57  ;;  %1370 = vmatpush.bf16.msra.mxu1 %v2203_v4 }
  0xf9   :  { %1533 = vmatpush.bf16.msra.mxu3 %v2228_v53 }
  0xfb   :  { %1448 = vmatpush.bf16.msra.mxu2 %v2220_v63  ;;  %1371 = vmatpush.bf16.msra.mxu1 %v2202_v12 }
  0xfd   :  { %1534 = vmatpush.bf16.msra.mxu3 %v2227_v58 }
  0xff   :  { %1449 = vmatpush.bf16.msra.mxu2 %v2219_v8 }
 0x101   :  { %1535 = vmatpush.bf16.msra.mxu3 %v2226_v2 }
 0x103   :  { %1450 = vmatpush.bf16.msra.mxu2 %v2218_v14 }
 0x104   :  { %1536 = vmatmul.bf16.vlgmr.msra.gmra.mxu3 %v1478_v9 }
 0x141   :  { %v832_v54 = vpop.f32.mrf.mxu0 }
 0x146   :  { %v691_v59 = vpop.f32.mrf.mxu2 }
 0x147   :  { %v752_v60 = vpop.f32.mrf.mxu3 }
 0x148   :  { %v753_v0 = vadd.f32 %v752_v60, %v691_v59 }
 0x149   :  { %v834_v7 = vpop.f32.mrf.mxu0 }
 0x14a   :  { %v836_v6 = vadd.f32 %v832_v54, %v753_v0 }
 0x14c   :  { %v840_v10 = vadd.f32 %v2241_v1, %v836_v6 }
 0x14e   :  { %v841_v13 = vmax.f32 %v840_v10, 0.0  ;;  %v693_v15 = vpop.f32.mrf.mxu2 }
 0x14f   :  { %v754_v16 = vpop.f32.mrf.mxu3 }
 0x150   :  { %890 = vst [vmem:[#allocation2 + $0x1] sm:$0x3] %v841_v13 }
 0x157   :  { %v911_v17 = vld [vmem:[#allocation2 + $0x1] sm:$0x3] }
 0x158   :  { %v893_v18 = vld [vmem:[#allocation2] sm:$0x3]  ;;  %v1052_v19 = vld [vmem:[#allocation2 + $0x2] sm:$0x3]  ;;  %v912_v20 = vpack.c.bf16 %v911_v17, %v911_v17 }
 0x159   :  { %v894_v21 = vpack.c.bf16 %v893_v18, %v893_v18  ;;  %v1053_v22 = vpack.c.bf16 %v1052_v19, %v1052_v19 }
 0x15a   :  { %v855_v23 = vpop.f32.mrf.mxu1  ;;  %986 = vmatmul.bf16.vlgmr.msrb.gmra.mxu0 %v912_v20 }
 0x15b   :  { %1047 = vmatmul.bf16.vlgmr.msrb.gmra.mxu1 %v894_v21  ;;  %1127 = vmatmul.bf16.vlgmr.msrb.gmra.mxu2 %v1053_v22 }
 0x161   :  { %v868_v24 = vpop.f32.mrf.mxu2  ;;  %v883_v26 = vpop.f32.mrf.mxu3 }
 0x162   :  { %v869_v25 = vadd.f32 %v868_v24, %v855_v23  ;;  %v857_v27 = vpop.f32.mrf.mxu1 }
 0x164   :  { %v887_v28 = vadd.f32 %v883_v26, %v869_v25 }
 0x166   :  { %v888_v29 = vadd.f32 %v2241_v1, %v887_v28 }
 0x168   :  { %v889_v30 = vmax.f32 %v888_v29, 0.0 }
 0x169   :  { %v870_v31 = vpop.f32.mrf.mxu2  ;;  %v885_v32 = vpop.f32.mrf.mxu3 }
 0x16a   :  { %891 = vst [vmem:[#allocation2 + $0x5] sm:$0x3] %v889_v30 }
 0x171   :  { %v1237_v33 = vld [vmem:[#allocation2 + $0x5] sm:$0x3]  ;;  %v1207_v39 = vpop.f32.mrf.mxu3 }
 0x172   :  { %v1219_v34 = vld [vmem:[#allocation2 + $0x4] sm:$0x3]  ;;  %v1377_v35 = vld [vmem:[#allocation2 + $0x6] sm:$0x3]  ;;  %v1238_v36 = vpack.c.bf16 %v1237_v33, %v1237_v33 }
 0x173   :  { %v1220_v37 = vpack.c.bf16 %v1219_v34, %v1219_v34  ;;  %v1378_v38 = vpack.c.bf16 %v1377_v35, %v1377_v35 }
 0x174   :  { %1311 = vmatmul.bf16.vlgmr.msra.gmra.mxu0 %v1238_v36 }
 0x175   :  { %1372 = vmatmul.bf16.vlgmr.msra.gmra.mxu1 %v1220_v37  ;;  %1451 = vmatmul.bf16.vlgmr.msra.gmra.mxu2 %v1378_v38 }
 0x179   :  { %v1209_v40 = vpop.f32.mrf.mxu3 }
 0x187   :  { %v1537_v41 = vpop.f32.mrf.mxu3 }
 0x18f   :  { %v1539_v44 = vpop.f32.mrf.mxu3 }
 0x1d7   :  { %v987_v42 = vpop.f32.mrf.mxu0 }
 0x1d8   :  { %v1048_v43 = vpop.f32.mrf.mxu1 }
 0x1d9   :  { %v1049_v45 = vadd.f32 %v1048_v43, %v987_v42 }
 0x1de   :  { %v1128_v46 = vpop.f32.mrf.mxu2 }
 0x1df   :  { %v1132_v47 = vadd.f32 %v1128_v46, %v1049_v45  ;;  %v989_v48 = vpop.f32.mrf.mxu0 }
 0x1e0   :  { %v1050_v49 = vpop.f32.mrf.mxu1 }
 0x1e1   :  { %v1211_v51 = vadd.f32 %v1207_v39, %v1132_v47 }
 0x1e3   :  { %v1215_v52 = vadd.f32 %v2242_v50, %v1211_v51 }
 0x1e5   :  { %v1216_v53 = vmax.f32 %v1215_v52, 0.0 }
 0x1e6   :  { %v1130_v54 = vpop.f32.mrf.mxu2 }
 0x1e7   :  { %v1217_v55 = vpack.c.bf16 %v1216_v53, %v1216_v53 }
 0x1e9   :  { %1218 = vst [vmem:[%s2500_s9] sm:$0x1] %v1217_v55 }
 0x1f1   :  { %v1312_v56 = vpop.f32.mrf.mxu0 }
 0x1f2   :  { %v1373_v57 = vpop.f32.mrf.mxu1 }
 0x1f3   :  { %v1374_v58 = vadd.f32 %v1373_v57, %v1312_v56 }
 0x1f8   :  { %v1452_v59 = vpop.f32.mrf.mxu2 }
 0x1f9   :  { %v1456_v60 = vadd.f32 %v1452_v59, %v1374_v58  ;;  %v1314_v61 = vpop.f32.mrf.mxu0 }
 0x1fa   :  { %v1375_v62 = vpop.f32.mrf.mxu1 }
 0x1fb   :  { %v1541_v63 = vadd.f32 %v1537_v41, %v1456_v60 }
 0x1fd   :  { %v1542_v0 = vadd.f32 %v2242_v50, %v1541_v63 }
 0x1ff   :  { %v1543_v1 = vmax.f32 %v1542_v0, 0.0 }
 0x200   :  { %v1454_v2 = vpop.f32.mrf.mxu2 }
 0x201   :  { %v1544_v3 = vpack.c.bf16 %v1543_v1, %v1543_v1 }
 0x203   :  { %2097 = vst [vmem:[%s2500_s9 + $0x1] sm:$0x1] %v1544_v3 }
 0x204   :  { %1551 = vsyncpa [#allocation4], 1 }
 0x205   :  { %1552 = vsyncpa [#allocation6], 1 }

// kernel: detector_forward.4
= control target key start
LH: loop header
LB: loop body
LE: loop exit
PB: predicated region body
PF: predicated region fallthrough
CT: control target
= control target key end

     0   :  { %14 = vsyncpa [#allocation4], 0  ;;  %s1866_s12 = smov [#allocation3]   ;;  %s1867_s14 = smov 64   ;;  %s2254_s0 = inlined_call_operand.vmem [shape: bf16[18,48], index: 0, kind: input, shape index: {}]   ;;  %s2255_s1 = inlined_call_operand.vmem [shape: bf16[16,48], index: 1, kind: input, shape index: {}]   ;;  %s2256_s2 = inlined_call_operand.vmem [shape: bf16[3,48,128], index: 2, kind: input, shape index: {}]   ;;  %s2257_s3 = inlined_call_operand.vmem [shape: f32[1,128], index: 3, kind: input, shape index: {}]   ;;  %s2258_s4 = inlined_call_operand.vmem [shape: bf16[3,128,128], index: 4, kind: input, shape index: {}]   ;;  %s2259_s5 = inlined_call_operand.vmem [shape: f32[1,128], index: 5, kind: input, shape index: {}]   ;;  %s2260_s6 = inlined_call_operand.vmem [shape: bf16[3,128,128], index: 6, kind: input, shape index: {}]   ;;  %s2261_s7 = inlined_call_operand.hbm [shape: bf16[48,128], index: 7, kind: input, shape index: {}]   ;;  %s2262_s8 = inlined_call_operand.vmem [shape: f32[1,128], index: 8, kind: input, shape index: {}]   ;;  %s2263_s9 = inlined_call_operand.vmem [shape: bf16[2,8,128], index: 9, kind: output, shape index: {}]  }
   0x1   :  { %s33_s11 = sshll.u32 %s2261_s7, 4  ;;  %s35_s13 = sshll.u32 %s1866_s12, 4  ;;  %s34_s11 = int_to_ptr.hbm [resolvable:$true] %s33_s11  ;;  %s36_s13 = int_to_ptr.vmem [resolvable:$true] %s35_s13 }
   0x2   :  { %s1868_s15 = smov 4  }
   0x3   :  { %41 = dma.hbm_to_vmem [thread:$0]  %s34_s11, 384, %s36_s13, [#allocation4], %s1867_s14, %s1867_s14, %s1868_s15  }
   0x4   :  { %1864 = dma.done.wait [#allocation4], 384  }
   0x5   :  { %1865 = vsyncadd [#allocation4], 4294966912  ;;  %v1741_v0 = vld [vmem:[%s2256_s2 + $0x28] sm:$0xff]  ;;  %v1738_v1 = vld [vmem:[%s2256_s2 + $0x10] sm:$0xff]  ;;  %vm86_vm0 = vcmask 392192   ;;  %v1869_v59 = vmov 0.0  }
   0x6   :  { %v1745_v2 = vld [vmem:[%s2256_s2 + $0x40] sm:$0xff]  ;;  %95 = vmatpush.bf16.msra.mxu0 %v1741_v0  ;;  %129 = vmatpush.bf16.msra.mxu1 %v1738_v1  ;;  %v1737_v4 = vld [vmem:[%s2256_s2 + $0x8] sm:$0xff]  ;;  %v1744_v6 = vld [vmem:[%s2256_s2 + $0x38] sm:$0xff]  ;;  %49 = vst [vmem:[#allocation2] sm:$0xff] %v1869_v59 }
   0x7   :  { %v1740_v3 = vld [vmem:[%s2256_s2 + $0x20] sm:$0xff]  ;;  %v1751_v5 = vld [vmem:[%s2256_s2 + $0x28] sm:$0xff]  ;;  %184 = vmatpush.bf16.msra.mxu2 %v1745_v2  ;;  %v1739_v11 = vld [vmem:[%s2256_s2 + $0x18] sm:$0xff]  ;;  %50 = vst [vmem:[#allocation2 + $0x8] sm:$0xff] %v1869_v59 }
   0x8   :  { %240 = vmatpush.bf16.msra.mxu3 %v1751_v5  ;;  %v1750_v7 = vld [vmem:[%s2256_s2 + $0x20] sm:$0xff]  ;;  %v1743_v13 = vld [vmem:[%s2256_s2 + $0x30] sm:$0xff]  ;;  %v1749_v18 = vld [vmem:[%s2256_s2 + $0x18] sm:$0xff]  ;;  %51 = vst [vmem:[#allocation2 + $0x10] sm:$0xf] %v1869_v59 }
   0x9   :  { %v1259_v8 = vld [vmem:[%s2254_s0] sm:$0xf]  ;;  %v1742_v9 = vld [vmem:[%s2254_s0] sm:$0x10]  ;;  %v1748_v16 = vld [vmem:[%s2256_s2 + $0x10] sm:$0xff] }
   0xa   :  { %v1260_v10 = vor.u32 %v1742_v9, %v1259_v8  ;;  %96 = vmatpush.bf16.msra.mxu0 %v1740_v3  ;;  %130 = vmatpush.bf16.msra.mxu1 %v1737_v4  ;;  %v1736_v12 = vld [vmem:[%s2256_s2] sm:$0xff]  ;;  %v200_v20 = vld [vmem:[%s2254_s0 + $0x8] sm:$0x1]  ;;  %v1986_v26 = vld [vmem:[%s2258_s4 + $0x38] sm:$0xff] }
   0xb   :  { %185 = vmatpush.bf16.msra.mxu2 %v1744_v6  ;;  %v199_v17 = vld [vmem:[%s2254_s0 + $0x4] sm:$0xf]  ;;  %v251_v23 = vunpack.c.l.b16 %v200_v20  ;;  %v60_v24 = vld [vmem:[%s2255_s1] sm:$0xf]  ;;  %v1747_v28 = vld [vmem:[%s2256_s2 + $0x8] sm:$0xff] }
   0xc   :  { %v152_v14 = vshrl.u32 %v1260_v10, 16  ;;  %v154_v15 = vshll.u32 %v1260_v10, 16  ;;  %241 = vmatpush.bf16.msra.mxu3 %v1750_v7  ;;  %v1754_v19 = vld [vmem:[%s2256_s2 + $0x40] sm:$0xff]  ;;  %v250_v22 = vunpack.c.l.b16 %v199_v17  ;;  %v1753_v30 = vld [vmem:[%s2256_s2 + $0x38] sm:$0xff]  ;;  %v2010_v34 = vld [vmem:[%s2258_s4 + $0x30] sm:$0xff] }
   0xd   :  { %v53_v25 = vld [vmem:[%s2254_s0] sm:$0xf]  ;;  %v207_v29 = vld [vmem:[%s2255_s1 + $0x4] sm:$0xf]  ;;  %v1770_v31 = vld [vmem:[%s2258_s4 + $0x78] sm:$0xff] }
   0xe   :  { %v156_v21 = vrot.slane %v154_v15, 1  ;;  %97 = vmatpush.bf16.msra.mxu0 %v1739_v11  ;;  %131 = vmatpush.bf16.msra.mxu1 %v1736_v12  ;;  %v252_v32 = vpack.c.b16 %v251_v23, %v250_v22  ;;  %v294_v33 = vld [vmem:[%s2254_s0 + $0x4] sm:$0xe]  ;;  %v1752_v36 = vld [vmem:[%s2256_s2 + $0x30] sm:$0xff]  ;;  %v1778_v40 = vld [vmem:[%s2258_s4 + $0xb8] sm:$0xff] }
   0xf   :  { %186 = vmatpush.bf16.msra.mxu2 %v1743_v13  ;;  %v1746_v35 = vld [vmem:[%s2256_s2] sm:$0xff]  ;;  %v1769_v37 = vld [vmem:[%s2258_s4 + $0x70] sm:$0xff]  ;;  %v302_v39 = vunpack.c.l.b16 %v294_v33  ;;  %v1760_v41 = vld [vmem:[%s2258_s4 + $0x28] sm:$0xff] }
  0x10   :  { %v157_v27 = vor.u32 %v156_v21, %v152_v14  ;;  %242 = vmatpush.bf16.msra.mxu3 %v1749_v18  ;;  %v256_v38 = vshll.u32 %v252_v32, 16  ;;  %v1768_v42 = vld [vmem:[%s2258_s4 + $0x68] sm:$0xff]  ;;  %v254_v43 = vshrl.u32 %v252_v32, 16  ;;  %v1777_v46 = vld [vmem:[%s2258_s4 + $0xb0] sm:$0xff]  ;;  %v1759_v47 = vld [vmem:[%s2258_s4 + $0x20] sm:$0xff] }
  0x11   :  { %1237 = vmatmul.msk.bf16.vlgmr.msra.gmra.mxu0 %vm86_vm0, %v60_v24  ;;  %1250 = vmatmul.msk.bf16.vlgmr.msra.gmra.mxu1 %vm86_vm0, %v53_v25  ;;  %v303_v45 = vpack.c.b16 %v251_v23, %v302_v39  ;;  %v1767_v48 = vld [vmem:[%s2258_s4 + $0x60] sm:$0xff]  ;;  %v1758_v51 = vld [vmem:[%s2258_s4 + $0x18] sm:$0xff]  ;;  %v1757_v53 = vld [vmem:[%s2258_s4 + $0x10] sm:$0xff] }
  0x12   :  { %286 = vmatpush.bf16.msrb.mxu0 %v1748_v16  ;;  %331 = vmatpush.bf16.msrb.mxu1 %v1754_v19  ;;  %v258_v44 = vrot.slane %v256_v38, 1  ;;  %v1766_v52 = vld [vmem:[%s2258_s4 + $0x58] sm:$0xff]  ;;  %v1765_v54 = vld [vmem:[%s2258_s4 + $0x50] sm:$0xff]  ;;  %v1764_v55 = vld [vmem:[%s2258_s4 + $0x48] sm:$0xff] }
  0x13   :  { %1273 = vmatmul.msk.bf16.vlgmr.msra.gmra.mxu2 %vm86_vm0, %v157_v27  ;;  %1292 = vmatmul.msk.bf16.vlgmr.msra.gmra.mxu3 %vm86_vm0, %v207_v29  ;;  %v304_v50 = vrot.slane %v303_v45, 1  ;;  %v1776_v56 = vld [vmem:[%s2258_s4 + $0xa8] sm:$0xff]  ;;  %v1775_v58 = vld [vmem:[%s2258_s4 + $0xa0] sm:$0xff]  ;;  %v1774_v62 = vld [vmem:[%s2258_s4 + $0x98] sm:$0xff] }
  0x14   :  { %490 = vmatpush.bf16.msrb.mxu3 %v1986_v26  ;;  %429 = vmatpush.bf16.msrb.mxu2 %v1770_v31  ;;  %v259_v49 = vor.u32 %v258_v44, %v254_v43  ;;  %v1756_v57 = vld [vmem:[%s2258_s4 + $0x8] sm:$0xff]  ;;  %v1763_v60 = vld [vmem:[%s2258_s4 + $0x40] sm:$0xff]  ;;  %v1773_v63 = vld [vmem:[%s2258_s4 + $0x90] sm:$0xff] }
  0x15   :  { %v1755_v61 = vld [vmem:[%s2258_s4] sm:$0xff]  ;;  %v1772_v0 = vld [vmem:[%s2258_s4 + $0x88] sm:$0xff]  ;;  %v1794_v10 = vld [vmem:[%s2260_s6 + $0x78] sm:$0xff] }
  0x16   :  { %287 = vmatpush.bf16.msrb.mxu0 %v1747_v28  ;;  %332 = vmatpush.bf16.msrb.mxu1 %v1753_v30  ;;  %v1771_v1 = vld [vmem:[%s2258_s4 + $0x80] sm:$0xff]  ;;  %v1786_v11 = vld [vmem:[%s2260_s6 + $0x38] sm:$0xff]  ;;  %v1793_v14 = vld [vmem:[%s2260_s6 + $0x70] sm:$0xff] }
  0x17   :  { %v1837_v5 = vld [vmem:[%s2257_s3] ss:$0 sm:$0xff]  ;;  %v1785_v15 = vld [vmem:[%s2260_s6 + $0x30] sm:$0xff]  ;;  %v1802_v17 = vld [vmem:[%s2260_s6 + $0xb8] sm:$0xff] }
  0x18   :  { %491 = vmatpush.bf16.msrb.mxu3 %v2010_v34  ;;  %430 = vmatpush.bf16.msrb.mxu2 %v1769_v37  ;;  %v1792_v19 = vld [vmem:[%s2260_s6 + $0x68] sm:$0xff]  ;;  %v1791_v27 = vld [vmem:[%s2260_s6 + $0x60] sm:$0xff]  ;;  %v1789_v45 = vld [vmem:[%s2260_s6 + $0x50] sm:$0xff] }
  0x19   :  { %v1784_v20 = vld [vmem:[%s2260_s6 + $0x28] sm:$0xff]  ;;  %v1783_v28 = vld [vmem:[%s2260_s6 + $0x20] sm:$0xff]  ;;  %v1798_v59 = vld [vmem:[%s2260_s6 + $0x98] sm:$0xff] }
  0x1a   :  { %288 = vmatpush.bf16.msrb.mxu0 %v1746_v35  ;;  %333 = vmatpush.bf16.msrb.mxu1 %v1752_v36  ;;  %v1790_v35 = vld [vmem:[%s2260_s6 + $0x58] sm:$0xff] }
  0x1b   :  { %v1782_v36 = vld [vmem:[%s2260_s6 + $0x18] sm:$0xff] }
  0x1c   :  { %492 = vmatpush.bf16.msrb.mxu3 %v1760_v41  ;;  %431 = vmatpush.bf16.msrb.mxu2 %v1768_v42 }
  0x1e   :  { %570 = vmatpush.bf16.msra.mxu0 %v1778_v40  ;;  %593 = vmatpush.bf16.msra.mxu1 %v1770_v31 }
  0x20   :  { %493 = vmatpush.bf16.msrb.mxu3 %v1759_v47  ;;  %432 = vmatpush.bf16.msrb.mxu2 %v1767_v48 }
  0x21   :  { %1305 = vmatmul.msk.bf16.vlgmr.msrb.gmra.mxu0 %vm86_vm0, %v259_v49  ;;  %1324 = vmatmul.msk.bf16.vlgmr.msrb.gmra.mxu1 %vm86_vm0, %v304_v50  ;;  %v1787_v49 = vld [vmem:[%s2260_s6 + $0x40] sm:$0xff]  ;;  %v1800_v50 = vld [vmem:[%s2260_s6 + $0xa8] sm:$0xff] }
  0x22   :  { %571 = vmatpush.bf16.msra.mxu0 %v1777_v46  ;;  %594 = vmatpush.bf16.msra.mxu1 %v1769_v37 }
  0x24   :  { %494 = vmatpush.bf16.msrb.mxu3 %v1758_v51  ;;  %433 = vmatpush.bf16.msrb.mxu2 %v1766_v52 }
  0x26   :  { %595 = vmatpush.bf16.msra.mxu1 %v1768_v42  ;;  %572 = vmatpush.bf16.msra.mxu0 %v1776_v56 }
  0x28   :  { %495 = vmatpush.bf16.msrb.mxu3 %v1757_v53  ;;  %434 = vmatpush.bf16.msrb.mxu2 %v1765_v54 }
  0x2a   :  { %596 = vmatpush.bf16.msra.mxu1 %v1767_v48  ;;  %573 = vmatpush.bf16.msra.mxu0 %v1775_v58  ;;  %v1781_v48 = vld [vmem:[%s2260_s6 + $0x10] sm:$0xff] }
  0x2c   :  { %435 = vmatpush.bf16.msrb.mxu2 %v1764_v55  ;;  %496 = vmatpush.bf16.msrb.mxu3 %v1756_v57 }
  0x2e   :  { %597 = vmatpush.bf16.msra.mxu1 %v1766_v52  ;;  %574 = vmatpush.bf16.msra.mxu0 %v1774_v62  ;;  %v1780_v52 = vld [vmem:[%s2260_s6 + $0x8] sm:$0xff] }
  0x30   :  { %436 = vmatpush.bf16.msrb.mxu2 %v1763_v60  ;;  %497 = vmatpush.bf16.msrb.mxu3 %v1755_v61 }
  0x32   :  { %598 = vmatpush.bf16.msra.mxu1 %v1765_v54  ;;  %575 = vmatpush.bf16.msra.mxu0 %v1773_v63  ;;  %v1799_v54 = vld [vmem:[%s2260_s6 + $0xa0] sm:$0xff] }
  0x34   :  { %606 = vmatpush.bf16.msra.mxu2 %v1986_v26  ;;  %621 = vmatpush.bf16.msra.mxu3 %v1778_v40  ;;  %v1801_v26 = vld [vmem:[%s2260_s6 + $0xb0] sm:$0xff] }
  0x36   :  { %599 = vmatpush.bf16.msra.mxu1 %v1764_v55  ;;  %576 = vmatpush.bf16.msra.mxu0 %v1772_v0  ;;  %v1820_v55 = vld [vmem:[%s2260_s6 + $0x70] sm:$0xff] }
  0x38   :  { %607 = vmatpush.bf16.msra.mxu2 %v2010_v34  ;;  %622 = vmatpush.bf16.msra.mxu3 %v1777_v46  ;;  %v1788_v46 = vld [vmem:[%s2260_s6 + $0x48] sm:$0xff] }
  0x3a   :  { %600 = vmatpush.bf16.msra.mxu1 %v1763_v60  ;;  %577 = vmatpush.bf16.msra.mxu0 %v1771_v1  ;;  %v1813_v60 = vld [vmem:[%s2260_s6 + $0x38] sm:$0xff] }
  0x3c   :  { %608 = vmatpush.bf16.msra.mxu2 %v1760_v41  ;;  %623 = vmatpush.bf16.msra.mxu3 %v1776_v56  ;;  %v1803_v56 = vld [vmem:[#allocation3] sm:$0xff] }
  0x3e   :  { %725 = vmatpush.bf16.msrb.mxu0 %v1794_v10  ;;  %786 = vmatpush.bf16.msrb.mxu1 %v1786_v11  ;;  %v1816_v10 = vld [vmem:[%s2260_s6 + $0x50] sm:$0xff]  ;;  %v1825_v11 = vld [vmem:[%s2260_s6 + $0x98] sm:$0xff] }
  0x40   :  { %609 = vmatpush.bf16.msra.mxu2 %v1759_v47  ;;  %624 = vmatpush.bf16.msra.mxu3 %v1775_v58  ;;  %v1805_v47 = vld [vmem:[#allocation3 + $0x10] sm:$0xff]  ;;  %v1779_v58 = vld [vmem:[%s2260_s6] sm:$0xff] }
  0x42   :  { %726 = vmatpush.bf16.msrb.mxu0 %v1793_v14  ;;  %787 = vmatpush.bf16.msrb.mxu1 %v1785_v15  ;;  %v1824_v14 = vld [vmem:[%s2260_s6 + $0x90] sm:$0xff]  ;;  %v1832_v15 = vld [vmem:[#allocation3 + $0x10] sm:$0xff] }
  0x44   :  { %610 = vmatpush.bf16.msra.mxu2 %v1758_v51  ;;  %625 = vmatpush.bf16.msra.mxu3 %v1774_v62  ;;  %v1804_v51 = vld [vmem:[#allocation3 + $0x8] sm:$0xff]  ;;  %v1828_v62 = vld [vmem:[%s2260_s6 + $0xb0] sm:$0xff] }
  0x46   :  { %727 = vmatpush.bf16.msrb.mxu0 %v1792_v19  ;;  %788 = vmatpush.bf16.msrb.mxu1 %v1784_v20  ;;  %v1831_v19 = vld [vmem:[#allocation3 + $0x8] sm:$0xff]  ;;  %v1807_v20 = vld [vmem:[%s2260_s6 + $0x8] sm:$0xff] }
  0x48   :  { %611 = vmatpush.bf16.msra.mxu2 %v1757_v53  ;;  %626 = vmatpush.bf16.msra.mxu3 %v1773_v63  ;;  %v1821_v53 = vld [vmem:[%s2260_s6 + $0x78] sm:$0xff]  ;;  %v1797_v63 = vld [vmem:[%s2260_s6 + $0x90] sm:$0xff] }
  0x4a   :  { %728 = vmatpush.bf16.msrb.mxu0 %v1791_v27  ;;  %789 = vmatpush.bf16.msrb.mxu1 %v1783_v28 }
  0x4c   :  { %612 = vmatpush.bf16.msra.mxu2 %v1756_v57  ;;  %627 = vmatpush.bf16.msra.mxu3 %v1772_v0  ;;  %v1829_v57 = vld [vmem:[%s2260_s6 + $0xb8] sm:$0xff]  ;;  %v1812_v0 = vld [vmem:[%s2260_s6 + $0x30] sm:$0xff] }
  0x4e   :  { %729 = vmatpush.bf16.msrb.mxu0 %v1790_v35  ;;  %790 = vmatpush.bf16.msrb.mxu1 %v1782_v36 }
  0x50   :  { %613 = vmatpush.bf16.msra.mxu2 %v1755_v61  ;;  %628 = vmatpush.bf16.msra.mxu3 %v1771_v1  ;;  %v1819_v61 = vld [vmem:[%s2260_s6 + $0x68] sm:$0xff]  ;;  %v1818_v1 = vld [vmem:[%s2260_s6 + $0x60] sm:$0xff] }
  0x52   :  { %730 = vmatpush.bf16.msrb.mxu0 %v1789_v45  ;;  %791 = vmatpush.bf16.msrb.mxu1 %v1781_v48 }
  0x56   :  { %731 = vmatpush.bf16.msrb.mxu0 %v1788_v46  ;;  %792 = vmatpush.bf16.msrb.mxu1 %v1780_v52 }
  0x5a   :  { %732 = vmatpush.bf16.msrb.mxu0 %v1787_v49  ;;  %793 = vmatpush.bf16.msrb.mxu1 %v1779_v58 }
  0x8e   :  { %v99_v2 = vpop.f32.mrf.mxu0  ;;  %v133_v3 = vpop.f32.mrf.mxu1 }
  0x8f   :  { %v134_v4 = vadd.f32 %v133_v3, %v99_v2  ;;  %v880_v2 = vld [vmem:[%s2255_s1] sm:$0xf]  ;;  %v1827_v3 = vld [vmem:[%s2260_s6 + $0xa8] sm:$0xff] }
  0x96   :  { %v188_v6 = vpop.f32.mrf.mxu2  ;;  %v101_v8 = vpop.f32.mrf.mxu0 }
  0x97   :  { %v192_v7 = vadd.f32 %v188_v6, %v134_v4  ;;  %v135_v9 = vpop.f32.mrf.mxu1  ;;  %v244_v12 = vpop.f32.mrf.mxu3  ;;  %v1796_v4 = vld [vmem:[%s2260_s6 + $0x88] sm:$0xff]  ;;  %v1817_v6 = vld [vmem:[%s2260_s6 + $0x58] sm:$0xff]  ;;  %v1795_v8 = vld [vmem:[%s2260_s6 + $0x80] sm:$0xff] }
  0x98   :  { %v1810_v9 = vld [vmem:[%s2260_s6 + $0x20] sm:$0xff] }
  0x99   :  { %v196_v13 = vadd.f32 %v1837_v5, %v192_v7  ;;  %v1826_v7 = vld [vmem:[%s2260_s6 + $0xa0] sm:$0xff] }
  0x9b   :  { %v197_v16 = vmax.f32 %v196_v13, 0.0  ;;  %v1815_v13 = vld [vmem:[%s2260_s6 + $0x48] sm:$0xff] }
  0x9d   :  { %198 = vst [vmem:[#allocation2 + $0x1] sm:$0xff] %v197_v16  ;;  %v363_v18 = vpack.c.bf16 %v197_v16, %v197_v16  ;;  %v1808_v16 = vld [vmem:[%s2260_s6 + $0x10] sm:$0xff] }
  0x9e   :  { %v190_v21 = vpop.f32.mrf.mxu2  ;;  %v290_v22 = vpop.f32.mrf.mxu0 }
  0x9f   :  { %v335_v23 = vpop.f32.mrf.mxu1  ;;  %437 = vmatmul.bf16.vlgmr.msrb.gmra.mxu2 %v363_v18  ;;  %v291_v24 = vadd.f32 %v290_v22, %v244_v12  ;;  %v246_v25 = vpop.f32.mrf.mxu3  ;;  %v1809_v12 = vld [vmem:[%s2260_s6 + $0x18] sm:$0xff]  ;;  %v1823_v21 = vld [vmem:[%s2260_s6 + $0x88] sm:$0xff] }
  0xa0   :  { %866 = vmatpush.bf16.msrb.mxu2 %v1802_v17  ;;  %v1814_v17 = vld [vmem:[%s2260_s6 + $0x40] sm:$0xff]  ;;  %v1830_v25 = vld [vmem:[#allocation3] sm:$0xff] }
  0xa1   :  { %v339_v29 = vadd.f32 %v335_v23, %v291_v24  ;;  %v1822_v23 = vld [vmem:[%s2260_s6 + $0x80] sm:$0xff] }
  0xa2   :  { %v1806_v24 = vld [vmem:[%s2260_s6] sm:$0xff] }
  0xa3   :  { %v340_v30 = vadd.f32 %v1837_v5, %v339_v29  ;;  %v1811_v5 = vld [vmem:[%s2260_s6 + $0x28] sm:$0xff] }
  0xa4   :  { %v344_v31 = vld [vmem:[#allocation2] sm:$0xff]  ;;  %867 = vmatpush.bf16.msrb.mxu2 %v1801_v26 }
  0xa5   :  { %v503_v32 = vld [vmem:[#allocation2 + $0x2] sm:$0xff]  ;;  %v345_v33 = vpack.c.bf16 %v344_v31, %v344_v31  ;;  %v341_v37 = vmax.f32 %v340_v30, 0.0  ;;  %v1838_v30 = vld [vmem:[%s2259_s5] ss:$0 sm:$0xff] }
  0xa6   :  { %v504_v34 = vpack.c.bf16 %v503_v32, %v503_v32  ;;  %v292_v38 = vpop.f32.mrf.mxu0 }
  0xa7   :  { %498 = vmatmul.bf16.vlgmr.msrb.gmra.mxu3 %v345_v33  ;;  %v337_v39 = vpop.f32.mrf.mxu1  ;;  %342 = vst [vmem:[#allocation2 + $0xb] sm:$0xff] %v341_v37  ;;  %v592_v40 = vpack.c.bf16 %v341_v37, %v341_v37 }
  0xa8   :  { %578 = vmatmul.bf16.vlgmr.msra.gmra.mxu0 %v504_v34  ;;  %913 = vmatpush.bf16.msrb.mxu3 %v1805_v47 }
  0xa9   :  { %601 = vmatmul.bf16.vlgmr.msra.gmra.mxu1 %v592_v40  ;;  %868 = vmatpush.bf16.msrb.mxu2 %v1800_v50 }
  0xaa   :  { %1013 = vmatpush.bf16.msra.mxu0 %v1821_v53  ;;  %1074 = vmatpush.bf16.msra.mxu1 %v1813_v60 }
  0xac   :  { %914 = vmatpush.bf16.msrb.mxu3 %v1804_v51 }
  0xad   :  { %869 = vmatpush.bf16.msrb.mxu2 %v1799_v54  ;;  %v1167_v54 = vld [vmem:[%s2255_s1 + $0x4] sm:$0xf] }
  0xae   :  { %v589_v41 = vld [vmem:[#allocation2 + $0xa] sm:$0xff]  ;;  %1014 = vmatpush.bf16.msra.mxu0 %v1820_v55  ;;  %1075 = vmatpush.bf16.msra.mxu1 %v1812_v0  ;;  %v1839_v0 = vld [vmem:[%s2262_s8] ss:$0 sm:$0xff] }
  0xaf   :  { %v590_v42 = vpack.c.bf16 %v589_v41, %v589_v41  ;;  %v619_v43 = vld [vmem:[#allocation2 + $0xc] sm:$0xff] }
  0xb0   :  { %v620_v44 = vpack.c.bf16 %v619_v43, %v619_v43  ;;  %915 = vmatpush.bf16.msrb.mxu3 %v1803_v56 }
  0xb1   :  { %614 = vmatmul.bf16.vlgmr.msra.gmra.mxu2 %v590_v42 }
  0xb2   :  { %870 = vmatpush.bf16.msrb.mxu2 %v1798_v59  ;;  %1015 = vmatpush.bf16.msra.mxu0 %v1819_v61 }
  0xb3   :  { %1076 = vmatpush.bf16.msra.mxu1 %v1811_v5 }
  0xb6   :  { %871 = vmatpush.bf16.msrb.mxu2 %v1797_v63  ;;  %1016 = vmatpush.bf16.msra.mxu0 %v1818_v1 }
  0xb7   :  { %629 = vmatmul.bf16.vlgmr.msra.gmra.mxu3 %v620_v44  ;;  %1077 = vmatpush.bf16.msra.mxu1 %v1810_v9 }
  0xb8   :  { %1153 = vmatpush.bf16.msra.mxu3 %v1829_v57 }
  0xba   :  { %872 = vmatpush.bf16.msrb.mxu2 %v1796_v4  ;;  %1017 = vmatpush.bf16.msra.mxu0 %v1817_v6 }
  0xbb   :  { %1078 = vmatpush.bf16.msra.mxu1 %v1809_v12 }
  0xbc   :  { %1154 = vmatpush.bf16.msra.mxu3 %v1828_v62 }
  0xbe   :  { %873 = vmatpush.bf16.msrb.mxu2 %v1795_v8  ;;  %1018 = vmatpush.bf16.msra.mxu0 %v1816_v10 }
  0xbf   :  { %1079 = vmatpush.bf16.msra.mxu1 %v1808_v16 }
  0xc0   :  { %1155 = vmatpush.bf16.msra.mxu3 %v1827_v3 }
  0xc2   :  { %1019 = vmatpush.bf16.msra.mxu0 %v1815_v13  ;;  %1200 = vmatpush.bf16.msra.mxu2 %v1832_v15 }
  0xc3   :  { %1080 = vmatpush.bf16.msra.mxu1 %v1807_v20 }
  0xc4   :  { %1156 = vmatpush.bf16.msra.mxu3 %v1826_v7 }
  0xc6   :  { %1020 = vmatpush.bf16.msra.mxu0 %v1814_v17  ;;  %1201 = vmatpush.bf16.msra.mxu2 %v1831_v19 }
  0xc7   :  { %1593 = vmatmul.msk.bf16.vlgmr.msrb.gmra.mxu3 %vm86_vm0, %v880_v2  ;;  %1081 = vmatpush.bf16.msra.mxu1 %v1806_v24 }
  0xc8   :  { %1157 = vmatpush.bf16.msra.mxu3 %v1825_v11 }
  0xca   :  { %1202 = vmatpush.bf16.msra.mxu2 %v1830_v25 }
  0xcc   :  { %1158 = vmatpush.bf16.msra.mxu3 %v1824_v14 }
  0xd0   :  { %1159 = vmatpush.bf16.msra.mxu3 %v1823_v21 }
  0xd4   :  { %1160 = vmatpush.bf16.msra.mxu3 %v1822_v23 }
 0x122   :  { %v438_v18 = vpop.f32.mrf.mxu2 }
 0x125   :  { %v579_v22 = vpop.f32.mrf.mxu0 }
 0x126   :  { %v602_v26 = vpop.f32.mrf.mxu1 }
 0x12a   :  { %v499_v27 = vpop.f32.mrf.mxu3  ;;  %v440_v28 = vpop.f32.mrf.mxu2 }
 0x12b   :  { %v500_v29 = vadd.f32 %v499_v27, %v438_v18 }
 0x12d   :  { %v581_v31 = vpop.f32.mrf.mxu0  ;;  %v583_v32 = vadd.f32 %v579_v22, %v500_v29 }
 0x12e   :  { %v604_v34 = vpop.f32.mrf.mxu1 }
 0x12f   :  { %v587_v33 = vadd.f32 %v1838_v30, %v583_v32 }
 0x131   :  { %v588_v35 = vmax.f32 %v587_v33, 0.0 }
 0x132   :  { %v501_v36 = vpop.f32.mrf.mxu3 }
 0x133   :  { %637 = vst [vmem:[#allocation2 + $0x1] sm:$0xff] %v588_v35  ;;  %v659_v37 = vpack.c.bf16 %v588_v35, %v588_v35 }
 0x134   :  { %v615_v38 = vpop.f32.mrf.mxu2 }
 0x135   :  { %733 = vmatmul.bf16.vlgmr.msrb.gmra.mxu0 %v659_v37  ;;  %v616_v39 = vadd.f32 %v615_v38, %v602_v26 }
 0x13a   :  { %v630_v40 = vpop.f32.mrf.mxu3  ;;  %v640_v41 = vld [vmem:[#allocation2] sm:$0xff] }
 0x13b   :  { %v799_v42 = vld [vmem:[#allocation2 + $0x2] sm:$0xff]  ;;  %v634_v43 = vadd.f32 %v630_v40, %v616_v39  ;;  %v641_v44 = vpack.c.bf16 %v640_v41, %v640_v41 }
 0x13c   :  { %v800_v45 = vpack.c.bf16 %v799_v42, %v799_v42  ;;  %v617_v47 = vpop.f32.mrf.mxu2 }
 0x13d   :  { %v635_v46 = vadd.f32 %v1838_v30, %v634_v43  ;;  %794 = vmatmul.bf16.vlgmr.msrb.gmra.mxu1 %v641_v44 }
 0x13e   :  { %874 = vmatmul.bf16.vlgmr.msrb.gmra.mxu2 %v800_v45 }
 0x13f   :  { %v636_v48 = vmax.f32 %v635_v46, 0.0 }
 0x141   :  { %638 = vst [vmem:[#allocation2 + $0xb] sm:$0xff] %v636_v48  ;;  %v948_v50 = vpack.c.bf16 %v636_v48, %v636_v48 }
 0x142   :  { %v632_v49 = vpop.f32.mrf.mxu3 }
 0x145   :  { %1021 = vmatmul.bf16.vlgmr.msra.gmra.mxu0 %v948_v50 }
 0x148   :  { %v929_v51 = vld [vmem:[#allocation2 + $0xa] sm:$0xff] }
 0x149   :  { %v1087_v52 = vld [vmem:[#allocation2 + $0xc] sm:$0xff]  ;;  %v930_v55 = vpack.c.bf16 %v929_v51, %v929_v51 }
 0x14a   :  { %v1088_v53 = vpack.c.bf16 %v1087_v52, %v1087_v52  ;;  %v917_v56 = vpop.f32.mrf.mxu3 }
 0x14c   :  { %1161 = vmatmul.bf16.vlgmr.msra.gmra.mxu3 %v1088_v53 }
 0x14d   :  { %1082 = vmatmul.bf16.vlgmr.msra.gmra.mxu1 %v930_v55 }
 0x14e   :  { %1734 = vmatmul.msk.bf16.vlgmr.msra.gmra.mxu2 %vm86_vm0, %v1167_v54 }
 0x152   :  { %v919_v57 = vpop.f32.mrf.mxu3 }
 0x1b2   :  { %v734_v58 = vpop.f32.mrf.mxu0 }
 0x1ba   :  { %v795_v59 = vpop.f32.mrf.mxu1  ;;  %v736_v60 = vpop.f32.mrf.mxu0 }
 0x1bb   :  { %v796_v61 = vadd.f32 %v795_v59, %v734_v58 }
 0x1c1   :  { %v875_v62 = vpop.f32.mrf.mxu2 }
 0x1c2   :  { %v879_v63 = vadd.f32 %v875_v62, %v796_v61  ;;  %v797_v1 = vpop.f32.mrf.mxu1  ;;  %v1022_v2 = vpop.f32.mrf.mxu0 }
 0x1c4   :  { %v921_v3 = vadd.f32 %v917_v56, %v879_v63 }
 0x1c6   :  { %v925_v4 = vadd.f32 %v1839_v0, %v921_v3 }
 0x1c8   :  { %v926_v5 = vmax.f32 %v925_v4, 0.0 }
 0x1c9   :  { %v877_v6 = vpop.f32.mrf.mxu2 }
 0x1ca   :  { %v927_v7 = vpack.c.bf16 %v926_v5, %v926_v5  ;;  %v1083_v8 = vpop.f32.mrf.mxu1  ;;  %v1024_v9 = vpop.f32.mrf.mxu0 }
 0x1cb   :  { %v1084_v10 = vadd.f32 %v1083_v8, %v1022_v2 }
 0x1cc   :  { %928 = vst [vmem:[%s2263_s9] sm:$0xf] %v927_v7 }
 0x1cf   :  { %v1162_v11 = vpop.f32.mrf.mxu3 }
 0x1d0   :  { %v1166_v12 = vadd.f32 %v1162_v11, %v1084_v10 }
 0x1d1   :  { %v1204_v13 = vpop.f32.mrf.mxu2 }
 0x1d2   :  { %v1208_v14 = vadd.f32 %v1204_v13, %v1166_v12  ;;  %v1085_v15 = vpop.f32.mrf.mxu1 }
 0x1d4   :  { %v1209_v16 = vadd.f32 %v1839_v0, %v1208_v14 }
 0x1d6   :  { %v1210_v17 = vmax.f32 %v1209_v16, 0.0 }
 0x1d7   :  { %v1164_v18 = vpop.f32.mrf.mxu3 }
 0x1d8   :  { %v1211_v19 = vpack.c.bf16 %v1210_v17, %v1210_v17 }
 0x1d9   :  { %v1206_v20 = vpop.f32.mrf.mxu2 }
 0x1da   :  { %1735 = vst [vmem:[%s2263_s9 + $0x4] sm:$0xf] %v1211_v19 }
 0x1db   :  { %1218 = vsyncpa [#allocation4], 1 }

// kernel: detector_forward.7
= control target key start
LH: loop header
LB: loop body
LE: loop exit
PB: predicated region body
PF: predicated region fallthrough
CT: control target
= control target key end

     0   :  { %s2840_s0 = inlined_call_operand.vmem [shape: bf16[4,128], index: 0, kind: input, shape index: {}]   ;;  %s2841_s1 = inlined_call_operand.vmem [shape: bf16[2,128], index: 1, kind: input, shape index: {}]   ;;  %s2842_s2 = inlined_call_operand.hbm [shape: bf16[3,128,128], index: 2, kind: input, shape index: {}]   ;;  %s2843_s3 = inlined_call_operand.vmem [shape: f32[1,128], index: 3, kind: input, shape index: {}]   ;;  %s2844_s4 = inlined_call_operand.hbm [shape: bf16[3,128,128], index: 4, kind: input, shape index: {}]   ;;  %s2845_s5 = inlined_call_operand.vmem [shape: f32[1,128], index: 5, kind: input, shape index: {}]   ;;  %s2846_s6 = inlined_call_operand.hbm [shape: bf16[3,128,128], index: 6, kind: input, shape index: {}]   ;;  %s2847_s7 = inlined_call_operand.vmem [shape: bf16[128,128], index: 7, kind: input, shape index: {}]   ;;  %s2848_s8 = inlined_call_operand.vmem [shape: f32[1,128], index: 8, kind: input, shape index: {}]   ;;  %s2849_s9 = inlined_call_operand.vmem [shape: bf16[128,1], index: 9, kind: input, shape index: {}]   ;;  %s2850_s10 = inlined_call_operand.<no memory space> [shape: f32[1,1], index: 10, kind: input, shape index: {}]   ;;  %s2851_s11 = inlined_call_operand.vmem [shape: f32[2,1], index: 11, kind: output, shape index: {}]  }
   0x1   :  { %v16_v0 = vstv %s2850_s10 }
   0x2   :  { %17 = vst [vmem:[#allocation3] sm:$0x1] %v16_v0 }
   0x3   :  { %18 = vsyncpa [#allocation5], 0 }
   0x4   :  { %19 = vsyncpa [#allocation7], 0  ;;  %s43_s21 = sshll.u32 %s2844_s4, 4  ;;  %s2588_s22 = smov [#allocation6]   ;;  %s44_s21 = int_to_ptr.hbm [resolvable:$true] %s43_s21 }
   0x5   :  { %s45_s23 = sshll.u32 %s2588_s22, 4  ;;  %s28_s26 = sshll.u32 %s2842_s2, 4  ;;  %s46_s23 = int_to_ptr.vmem [resolvable:$true] %s45_s23  ;;  %s29_s26 = int_to_ptr.hbm [resolvable:$true] %s28_s26 }
   0x6   :  { %s2589_s27 = smov 64   ;;  %s2590_s28 = smov 4  }
   0x7   :  { %51 = dma.hbm_to_vmem [thread:$0]  %s44_s21, 3072, %s46_s23, [#allocation7], %s2589_s27, %s2589_s27, %s2590_s28  }
   0x8   :  { %s2591_s10 = smov [#allocation4]   ;;  %s58_s13 = sshll.u32 %s2846_s6, 4  ;;  %s59_s13 = int_to_ptr.hbm [resolvable:$true] %s58_s13 }
   0x9   :  { %s30_s29 = sshll.u32 %s2591_s10, 4  ;;  %s2592_s4 = smov [#allocation8]   ;;  %s31_s29 = int_to_ptr.vmem [resolvable:$true] %s30_s29 }
   0xa   :  { %36 = dma.hbm_to_vmem [thread:$0]  %s29_s26, 3072, %s31_s29, [#allocation5], %s2589_s27, %s2589_s27, %s2590_s28  }
   0xb   :  { %s60_s14 = sshll.u32 %s2592_s4, 4  ;;  %s61_s14 = int_to_ptr.vmem [resolvable:$true] %s60_s14 }
   0xc   :  { %66 = dma.hbm_to_vmem [thread:$0]  %s59_s13, 3072, %s61_s14, [#allocation7], %s2589_s27, %s2589_s27, %s2590_s28  }
   0xd   :  { %2584 = dma.done.wait [#allocation5], 3072  }
   0xe   :  { %2585 = vsyncadd [#allocation5], 4294964224 }
   0xf   :  { %2586 = dma.done.wait [#allocation7], 6144  }
  0x10   :  { %2587 = vsyncadd [#allocation7], 4294961152  ;;  %v2361_v1 = vld [vmem:[#allocation4 + $0x78] sm:$0xff]  ;;  %v2360_v4 = vld [vmem:[#allocation4 + $0x70] sm:$0xff]  ;;  %vm1305_vm3 = vcmask 0  }
  0x11   :  { %v2353_v2 = vld [vmem:[#allocation4 + $0x38] sm:$0xff]  ;;  %172 = vmatpush.bf16.msra.mxu0 %v2361_v1  ;;  %v2352_v5 = vld [vmem:[#allocation4 + $0x30] sm:$0xff]  ;;  %v2359_v7 = vld [vmem:[#allocation4 + $0x68] sm:$0xff] }
  0x12   :  { %v2369_v3 = vld [vmem:[#allocation4 + $0xb8] sm:$0xff]  ;;  %233 = vmatpush.bf16.msra.mxu1 %v2353_v2  ;;  %v2368_v6 = vld [vmem:[#allocation4 + $0xb0] sm:$0xff]  ;;  %v2351_v8 = vld [vmem:[#allocation4 + $0x28] sm:$0xff] }
  0x13   :  { %317 = vmatpush.bf16.msra.mxu2 %v2369_v3  ;;  %v2367_v9 = vld [vmem:[#allocation4 + $0xa8] sm:$0xff]  ;;  %v2385_v11 = vld [vmem:[#allocation4 + $0x78] sm:$0xff]  ;;  %v2358_v12 = vld [vmem:[#allocation4 + $0x60] sm:$0xff] }
  0x14   :  { %v89_v10 = vld [vmem:[%s2840_s0] sm:$0x1]  ;;  %v2350_v13 = vld [vmem:[#allocation4 + $0x20] sm:$0xff]  ;;  %422 = vmatpush.bf16.msra.mxu3 %v2385_v11  ;;  %v2384_v15 = vld [vmem:[#allocation4 + $0x70] sm:$0xff] }
  0x15   :  { %173 = vmatpush.bf16.msra.mxu0 %v2360_v4  ;;  %264 = vst [vmem:[#allocation1] ss:$4 sm:$0xff] %v89_v10  ;;  %v2366_v14 = vld [vmem:[#allocation4 + $0xa0] sm:$0xff]  ;;  %v2357_v16 = vld [vmem:[#allocation4 + $0x58] sm:$0xff]  ;;  %v351_v18 = vld [vmem:[%s2841_s1] sm:$0x1] }
  0x16   :  { %234 = vmatpush.bf16.msra.mxu1 %v2352_v5  ;;  %v2349_v17 = vld [vmem:[#allocation4 + $0x18] sm:$0xff]  ;;  %v2383_v20 = vld [vmem:[#allocation4 + $0x68] sm:$0xff]  ;;  %v2356_v22 = vld [vmem:[#allocation4 + $0x50] sm:$0xff] }
  0x17   :  { %318 = vmatpush.bf16.msra.mxu2 %v2368_v6  ;;  %v2365_v19 = vld [vmem:[#allocation4 + $0x98] sm:$0xff]  ;;  %v2348_v23 = vld [vmem:[#allocation4 + $0x10] sm:$0xff]  ;;  %v2382_v25 = vld [vmem:[#allocation4 + $0x60] sm:$0xff] }
  0x18   :  { %423 = vmatpush.bf16.msra.mxu3 %v2384_v15  ;;  %v2364_v24 = vld [vmem:[#allocation4 + $0x90] sm:$0xff]  ;;  %v2355_v26 = vld [vmem:[#allocation4 + $0x48] sm:$0xff]  ;;  %v2381_v29 = vld [vmem:[#allocation4 + $0x58] sm:$0xff] }
  0x19   :  { %174 = vmatpush.bf16.msra.mxu0 %v2359_v7  ;;  %v2347_v27 = vld [vmem:[#allocation4 + $0x8] sm:$0xff]  ;;  %v2354_v30 = vld [vmem:[#allocation4 + $0x40] sm:$0xff]  ;;  %v2377_v33 = vld [vmem:[#allocation4 + $0x38] sm:$0xff] }
  0x1a   :  { %235 = vmatpush.bf16.msra.mxu1 %v2351_v8  ;;  %v2363_v28 = vld [vmem:[#allocation4 + $0x88] sm:$0xff]  ;;  %v2346_v31 = vld [vmem:[#allocation4] sm:$0xff]  ;;  %v2380_v34 = vld [vmem:[#allocation4 + $0x50] sm:$0xff] }
  0x1b   :  { %319 = vmatpush.bf16.msra.mxu2 %v2367_v9  ;;  %v2362_v32 = vld [vmem:[#allocation4 + $0x80] sm:$0xff]  ;;  %v2393_v35 = vld [vmem:[#allocation4 + $0xb8] sm:$0xff]  ;;  %v106_v36 = vld [vmem:[%s2841_s1] sm:$0x1] }
  0x1c   :  { %v265_v21 = vld.sshfl [vmem:[#allocation1] sm:$0xff pattern:$0x73625140]  ;;  %424 = vmatpush.bf16.msra.mxu3 %v2383_v20  ;;  %v2675_v40 = vld [vmem:[#allocation6 + $0x78] sm:$0xff]  ;;  %v2378_v46 = vld [vmem:[#allocation4 + $0x40] sm:$0xff] }
  0x1d   :  { %175 = vmatpush.bf16.msra.mxu0 %v2358_v12  ;;  %369 = vst [vmem:[#allocation1] ss:$9 sm:$0xff] %v351_v18  ;;  %v266_v37 = vshrl.u32 %v265_v21, 16  ;;  %v2376_v38 = vld [vmem:[#allocation4 + $0x30] sm:$0xff]  ;;  %v2379_v39 = vld [vmem:[#allocation4 + $0x48] sm:$0xff]  ;;  %v2683_v48 = vld [vmem:[#allocation6 + $0x38] sm:$0xff] }
  0x1e   :  { %236 = vmatpush.bf16.msra.mxu1 %v2350_v13  ;;  %v2392_v41 = vld [vmem:[#allocation4 + $0xb0] sm:$0xff]  ;;  %v2375_v44 = vld [vmem:[#allocation4 + $0x28] sm:$0xff]  ;;  %v2374_v49 = vld [vmem:[#allocation4 + $0x20] sm:$0xff] }
  0x1f   :  { %320 = vmatpush.bf16.msra.mxu2 %v2366_v14  ;;  %v334_v42 = vld [vmem:[%s2840_s0] sm:$0x2]  ;;  %v2391_v47 = vld [vmem:[#allocation4 + $0xa8] sm:$0xff]  ;;  %v2390_v51 = vld [vmem:[#allocation4 + $0xa0] sm:$0xff] }
  0x20   :  { %425 = vmatpush.bf16.msra.mxu3 %v2382_v25  ;;  %v2681_v45 = vld [vmem:[#allocation6 + $0x70] sm:$0xff]  ;;  %v2373_v53 = vld [vmem:[#allocation4 + $0x18] sm:$0xff]  ;;  %v2690_v55 = vld [vmem:[#allocation6 + $0x28] sm:$0xff] }
  0x21   :  { %176 = vmatpush.bf16.msra.mxu0 %v2357_v16  ;;  %v2687_v52 = vld [vmem:[#allocation6 + $0x30] sm:$0xff]  ;;  %v2389_v54 = vld [vmem:[#allocation4 + $0x98] sm:$0xff]  ;;  %v2693_v58 = vld [vmem:[#allocation6 + $0x20] sm:$0xff] }
  0x22   :  { %237 = vmatpush.bf16.msra.mxu1 %v2349_v17  ;;  %v2372_v56 = vld [vmem:[#allocation4 + $0x10] sm:$0xff]  ;;  %v2371_v59 = vld [vmem:[#allocation4 + $0x8] sm:$0xff]  ;;  %v2370_v60 = vld [vmem:[#allocation4] sm:$0xff] }
  0x23   :  { %321 = vmatpush.bf16.msra.mxu2 %v2365_v19  ;;  %v2388_v57 = vld [vmem:[#allocation4 + $0x90] sm:$0xff]  ;;  %v2417_v61 = vld [vmem:[#allocation6 + $0xb8] sm:$0xff]  ;;  %v2387_v1 = vld [vmem:[#allocation4 + $0x88] sm:$0xff] }
  0x24   :  { %426 = vmatpush.bf16.msra.mxu3 %v2381_v29  ;;  %v370_v43 = vld [vmem:[#allocation1] sm:$0xff]  ;;  %v2699_v3 = vld [vmem:[#allocation6 + $0x18] sm:$0xff]  ;;  %v2386_v5 = vld [vmem:[#allocation4 + $0x80] sm:$0xff] }
  0x25   :  { %177 = vmatpush.bf16.msra.mxu0 %v2356_v22  ;;  %436 = vst [vmem:[#allocation1] ss:$4 sm:$0xff] %v334_v42  ;;  %v371_v50 = vshrl.u32 %v370_v43, 16  ;;  %v2416_v62 = vld [vmem:[#allocation6 + $0xb0] sm:$0xff]  ;;  %v2407_v2 = vld [vmem:[#allocation6 + $0x68] sm:$0xff]  ;;  %v2406_v6 = vld [vmem:[#allocation6 + $0x60] sm:$0xff] }
  0x26   :  { %238 = vmatpush.bf16.msra.mxu1 %v2348_v23  ;;  %v502_v0 = vld [vmem:[%s2840_s0] sm:$0x2]  ;;  %v2415_v4 = vld [vmem:[#allocation6 + $0xa8] sm:$0xff]  ;;  %v2414_v9 = vld [vmem:[#allocation6 + $0xa0] sm:$0xff] }
  0x27   :  { %322 = vmatpush.bf16.msra.mxu2 %v2364_v24  ;;  %v2702_v8 = vld [vmem:[#allocation6 + $0x10] sm:$0xff]  ;;  %v2405_v14 = vld [vmem:[#allocation6 + $0x58] sm:$0xff]  ;;  %v2395_v15 = vld [vmem:[#allocation6 + $0x8] sm:$0xff] }
  0x28   :  { %427 = vmatpush.bf16.msra.mxu3 %v2380_v34  ;;  %v2413_v16 = vld [vmem:[#allocation6 + $0x98] sm:$0xff]  ;;  %v2404_v17 = vld [vmem:[#allocation6 + $0x50] sm:$0xff]  ;;  %v2394_v18 = vld [vmem:[#allocation6] sm:$0xff] }
  0x29   :  { %178 = vmatpush.bf16.msra.mxu0 %v2355_v26  ;;  %v2412_v19 = vld [vmem:[#allocation6 + $0x90] sm:$0xff]  ;;  %v1545_v21 = vld [vmem:[%s2841_s1] sm:$0x1]  ;;  %v2402_v25 = vld [vmem:[#allocation6 + $0x40] sm:$0xff] }
  0x2a   :  { %239 = vmatpush.bf16.msra.mxu1 %v2347_v27  ;;  %v2403_v23 = vld [vmem:[#allocation6 + $0x48] sm:$0xff]  ;;  %v2410_v26 = vld [vmem:[#allocation6 + $0x80] sm:$0xff] }
  0x2b   :  { %323 = vmatpush.bf16.msra.mxu2 %v2363_v28  ;;  %v2411_v24 = vld [vmem:[#allocation6 + $0x88] sm:$0xff] }
  0x2c   :  { %428 = vmatpush.bf16.msra.mxu3 %v2379_v39  ;;  %v437_v63 = vld.sshfl [vmem:[#allocation1] sm:$0xff pattern:$0x73625140] }
  0x2d   :  { %179 = vmatpush.bf16.msra.mxu0 %v2354_v30  ;;  %520 = vst [vmem:[#allocation1] ss:$4 sm:$0xff] %v502_v0  ;;  %v439_v7 = vrot.slane %v437_v63, 1  ;;  %v2431_v63 = vld [vmem:[#allocation8 + $0x68] sm:$0xff] }
  0x2e   :  { %240 = vmatpush.bf16.msra.mxu1 %v2346_v31  ;;  %v2445_v0 = vld [vmem:[%s2847_s7 + $0x18] sm:$0xff] }
  0x2f   :  { %324 = vmatpush.bf16.msra.mxu2 %v2362_v32  ;;  %v2718_v32 = vld [vmem:[%s2843_s3] sm:$0x1] }
  0x30   :  { %180 = vmatmul.bf16.vlgmr.msra.gmra.mxu0 %v106_v36  ;;  %429 = vmatpush.bf16.msra.mxu3 %v2378_v46  ;;  %v2425_v46 = vld [vmem:[#allocation8 + $0x38] sm:$0xff] }
  0x31   :  { %489 = vmatpush.bf16.msrb.mxu0 %v2377_v33  ;;  %241 = vmatmul.bf16.vlgmr.msra.gmra.mxu1 %v89_v10  ;;  %v2593_v10 = vmov 0.0  }
  0x32   :  { %574 = vmatpush.bf16.msrb.mxu1 %v2393_v35  ;;  %325 = vmatmul.bf16.vlgmr.msra.gmra.mxu2 %v266_v37  ;;  %87 = vst [vmem:[#allocation2] sm:$0x3f] %v2593_v10 }
  0x33   :  { %677 = vmatpush.bf16.msrb.mxu2 %v2675_v40  ;;  %430 = vmatmul.bf16.vlgmr.msra.gmra.mxu3 %v371_v50  ;;  %v2433_v50 = vld [vmem:[#allocation8 + $0x78] sm:$0xff] }
  0x34   :  { %738 = vmatpush.bf16.msrb.mxu3 %v2683_v48  ;;  %v521_v11 = vld.sshfl [vmem:[#allocation1] sm:$0xff pattern:$0x73625140] }
  0x35   :  { %490 = vmatpush.bf16.msrb.mxu0 %v2376_v38  ;;  %v522_v12 = vshrl.u32 %v521_v11, 16  ;;  %1563 = vst [vmem:[#allocation1] ss:$9 sm:$0xff] %v1545_v21  ;;  %v2429_v21 = vld [vmem:[#allocation8 + $0x58] sm:$0xff] }
  0x36   :  { %575 = vmatpush.bf16.msrb.mxu1 %v2392_v41 }
  0x37   :  { %678 = vmatpush.bf16.msrb.mxu2 %v2681_v45  ;;  %v524_v13 = vrot.slane %v522_v12, 1 }
  0x38   :  { %739 = vmatpush.bf16.msrb.mxu3 %v2687_v52 }
  0x39   :  { %491 = vmatpush.bf16.msrb.mxu0 %v2375_v44  ;;  %v592_v20 = vld [vmem:[#allocation2] sm:$0x1]  ;;  %v751_v27 = vld [vmem:[#allocation2 + $0x2] sm:$0x1] }
  0x3a   :  { %576 = vmatpush.bf16.msrb.mxu1 %v2391_v47  ;;  %v593_v22 = vpack.c.bf16 %v592_v20, %v592_v20  ;;  %v752_v28 = vpack.c.bf16 %v751_v27, %v751_v27  ;;  %v2441_v44 = vld [vmem:[#allocation8 + $0xb8] sm:$0xff]  ;;  %v2440_v47 = vld [vmem:[#allocation8 + $0xb0] sm:$0xff] }
  0x3b   :  { %679 = vmatpush.bf16.msrb.mxu2 %v2407_v2 }
  0x3c   :  { %740 = vmatpush.bf16.msrb.mxu3 %v2690_v55 }
  0x3d   :  { %492 = vmatpush.bf16.msrb.mxu0 %v2374_v49  ;;  %v2424_v49 = vld [vmem:[#allocation8 + $0x30] sm:$0xff] }
  0x3e   :  { %577 = vmatpush.bf16.msrb.mxu1 %v2390_v51  ;;  %v2439_v51 = vld [vmem:[#allocation8 + $0xa8] sm:$0xff] }
  0x3f   :  { %680 = vmatpush.bf16.msrb.mxu2 %v2406_v6 }
  0x40   :  { %741 = vmatpush.bf16.msrb.mxu3 %v2693_v58 }
  0x41   :  { %493 = vmatpush.bf16.msrb.mxu0 %v2373_v53 }
  0x42   :  { %578 = vmatpush.bf16.msrb.mxu1 %v2389_v54  ;;  %v864_v54 = vld [vmem:[#allocation2 + $0x5] sm:$0x1] }
  0x43   :  { %681 = vmatpush.bf16.msrb.mxu2 %v2405_v14 }
  0x44   :  { %742 = vmatpush.bf16.msrb.mxu3 %v2699_v3 }
  0x45   :  { %494 = vmatpush.bf16.msrb.mxu0 %v2372_v56  ;;  %v2447_v56 = vld [vmem:[%s2847_s7 + $0x28] sm:$0xff] }
  0x46   :  { %579 = vmatpush.bf16.msrb.mxu1 %v2388_v57  ;;  %v2423_v57 = vld [vmem:[#allocation8 + $0x28] sm:$0xff] }
  0x47   :  { %682 = vmatpush.bf16.msrb.mxu2 %v2404_v17 }
  0x48   :  { %743 = vmatpush.bf16.msrb.mxu3 %v2702_v8 }
  0x49   :  { %495 = vmatpush.bf16.msrb.mxu0 %v2371_v59  ;;  %v2432_v59 = vld [vmem:[#allocation8 + $0x70] sm:$0xff] }
  0x4a   :  { %580 = vmatpush.bf16.msrb.mxu1 %v2387_v1  ;;  %v2421_v1 = vld [vmem:[#allocation8 + $0x18] sm:$0xff] }
  0x4b   :  { %683 = vmatpush.bf16.msrb.mxu2 %v2403_v23 }
  0x4c   :  { %744 = vmatpush.bf16.msrb.mxu3 %v2395_v15 }
  0x4d   :  { %496 = vmatpush.bf16.msrb.mxu0 %v2370_v60  ;;  %v2446_v60 = vld [vmem:[%s2847_s7 + $0x20] sm:$0xff] }
  0x4e   :  { %581 = vmatpush.bf16.msrb.mxu1 %v2386_v5 }
  0x4f   :  { %684 = vmatpush.bf16.msrb.mxu2 %v2402_v25 }
  0x50   :  { %497 = vmatmul.bf16.vlgmr.msrb.gmra.mxu0 %v439_v7  ;;  %745 = vmatpush.bf16.msrb.mxu3 %v2394_v18 }
  0x51   :  { %818 = vmatpush.bf16.msra.mxu0 %v2417_v61  ;;  %582 = vmatmul.bf16.vlgmr.msrb.gmra.mxu1 %v524_v13 }
  0x52   :  { %838 = vmatpush.bf16.msra.mxu1 %v2675_v40 }
  0x53   :  { %746 = vmatmul.bf16.vlgmr.msrb.gmra.mxu3 %v593_v22  ;;  %851 = vmatpush.bf16.msra.mxu2 %v2683_v48  ;;  %v2448_v48 = vld [vmem:[%s2847_s7 + $0x30] sm:$0xff]  ;;  %v2419_v22 = vld [vmem:[#allocation8 + $0x8] sm:$0xff] }
  0x54   :  { %866 = vmatpush.bf16.msra.mxu3 %v2417_v61  ;;  %v2422_v61 = vld [vmem:[#allocation8 + $0x20] sm:$0xff] }
  0x55   :  { %819 = vmatpush.bf16.msra.mxu0 %v2416_v62 }
  0x56   :  { %839 = vmatpush.bf16.msra.mxu1 %v2681_v45  ;;  %v2449_v45 = vld [vmem:[%s2847_s7 + $0x38] sm:$0xff] }
  0x57   :  { %852 = vmatpush.bf16.msra.mxu2 %v2687_v52  ;;  %v834_v52 = vld [vmem:[#allocation2 + $0x3] sm:$0x1] }
  0x58   :  { %867 = vmatpush.bf16.msra.mxu3 %v2416_v62  ;;  %v835_v53 = vpack.c.bf16 %v834_v52, %v834_v52  ;;  %v2437_v62 = vld [vmem:[#allocation8 + $0x98] sm:$0xff] }
  0x59   :  { %820 = vmatpush.bf16.msra.mxu0 %v2415_v4 }
  0x5a   :  { %840 = vmatpush.bf16.msra.mxu1 %v2407_v2  ;;  %v2436_v2 = vld [vmem:[#allocation8 + $0x90] sm:$0xff] }
  0x5b   :  { %853 = vmatpush.bf16.msra.mxu2 %v2690_v55  ;;  %v865_v55 = vpack.c.bf16 %v864_v54, %v864_v54  ;;  %v2470_v54 = vld [vmem:[#allocation8 + $0x60] sm:$0xff] }
  0x5c   :  { %868 = vmatpush.bf16.msra.mxu3 %v2415_v4 }
  0x5d   :  { %821 = vmatpush.bf16.msra.mxu0 %v2414_v9 }
  0x5e   :  { %841 = vmatpush.bf16.msra.mxu1 %v2406_v6 }
  0x5f   :  { %854 = vmatpush.bf16.msra.mxu2 %v2693_v58  ;;  %v2438_v58 = vld [vmem:[#allocation8 + $0xa0] sm:$0xff] }
  0x60   :  { %869 = vmatpush.bf16.msra.mxu3 %v2414_v9 }
  0x61   :  { %822 = vmatpush.bf16.msra.mxu0 %v2413_v16 }
  0x62   :  { %842 = vmatpush.bf16.msra.mxu1 %v2405_v14 }
  0x63   :  { %855 = vmatpush.bf16.msra.mxu2 %v2699_v3  ;;  %v2444_v3 = vld [vmem:[%s2847_s7 + $0x10] sm:$0xff] }
  0x64   :  { %870 = vmatpush.bf16.msra.mxu3 %v2413_v16  ;;  %v2430_v16 = vld [vmem:[#allocation8 + $0x60] sm:$0xff] }
  0x65   :  { %823 = vmatpush.bf16.msra.mxu0 %v2412_v19 }
  0x66   :  { %843 = vmatpush.bf16.msra.mxu1 %v2404_v17  ;;  %v2420_v17 = vld [vmem:[#allocation8 + $0x10] sm:$0xff] }
  0x67   :  { %856 = vmatpush.bf16.msra.mxu2 %v2702_v8 }
  0x68   :  { %871 = vmatpush.bf16.msra.mxu3 %v2412_v19  ;;  %v2443_v19 = vld [vmem:[%s2847_s7 + $0x8] sm:$0xff] }
  0x69   :  { %824 = vmatpush.bf16.msra.mxu0 %v2411_v24 }
  0x6a   :  { %844 = vmatpush.bf16.msra.mxu1 %v2403_v23  ;;  %v2434_v23 = vld [vmem:[#allocation8 + $0x80] sm:$0xff] }
  0x6b   :  { %857 = vmatpush.bf16.msra.mxu2 %v2395_v15 }
  0x6c   :  { %872 = vmatpush.bf16.msra.mxu3 %v2411_v24 }
  0x6d   :  { %825 = vmatpush.bf16.msra.mxu0 %v2410_v26 }
  0x6e   :  { %845 = vmatpush.bf16.msra.mxu1 %v2402_v25  ;;  %v2442_v25 = vld [vmem:[%s2847_s7] sm:$0xff] }
  0x6f   :  { %858 = vmatpush.bf16.msra.mxu2 %v2394_v18  ;;  %v2435_v18 = vld [vmem:[#allocation8 + $0x88] sm:$0xff] }
  0x70   :  { %826 = vmatmul.bf16.vlgmr.msra.gmra.mxu0 %v752_v28  ;;  %873 = vmatpush.bf16.msra.mxu3 %v2410_v26  ;;  %v1044_v26 = vld [vmem:[#allocation2 + $0x2] sm:$0x1]  ;;  %v2428_v28 = vld [vmem:[#allocation8 + $0x50] sm:$0xff] }
  0x71   :  { %970 = vmatpush.bf16.msrb.mxu0 %v2433_v50  ;;  %v1045_v27 = vpack.c.bf16 %v1044_v26, %v1044_v26 }
  0x72   :  { %1031 = vmatpush.bf16.msrb.mxu1 %v2425_v46 }
  0x73   :  { %874 = vmatmul.bf16.vlgmr.msra.gmra.mxu3 %v865_v55  ;;  %v2479_v55 = vld [vmem:[#allocation8 + $0xa8] sm:$0xff] }
  0x74   :  { %1190 = vmatpush.bf16.msrb.mxu3 %v2449_v45 }
  0x75   :  { %971 = vmatpush.bf16.msrb.mxu0 %v2432_v59  ;;  %v2462_v59 = vld [vmem:[#allocation8 + $0x20] sm:$0xff] }
  0x76   :  { %1032 = vmatpush.bf16.msrb.mxu1 %v2424_v49 }
  0x78   :  { %1191 = vmatpush.bf16.msrb.mxu3 %v2448_v48 }
  0x79   :  { %972 = vmatpush.bf16.msrb.mxu0 %v2431_v63  ;;  %v2461_v63 = vld [vmem:[#allocation8 + $0x18] sm:$0xff] }
  0x7a   :  { %1033 = vmatpush.bf16.msrb.mxu1 %v2423_v57 }
  0x7c   :  { %1192 = vmatpush.bf16.msrb.mxu3 %v2447_v56  ;;  %v2455_v56 = vld [vmem:[%s2849_s9 + $0x28] sm:$0xff] }
  0x7d   :  { %973 = vmatpush.bf16.msrb.mxu0 %v2430_v16  ;;  %v2450_v16 = vld [vmem:[%s2849_s9] sm:$0xff] }
  0x7e   :  { %1034 = vmatpush.bf16.msrb.mxu1 %v2422_v61  ;;  %v2478_v61 = vld [vmem:[#allocation8 + $0xa0] sm:$0xff] }
  0x80   :  { %1193 = vmatpush.bf16.msrb.mxu3 %v2446_v60  ;;  %v2469_v60 = vld [vmem:[#allocation8 + $0x58] sm:$0xff] }
  0x81   :  { %974 = vmatpush.bf16.msrb.mxu0 %v2429_v21 }
  0x82   :  { %1035 = vmatpush.bf16.msrb.mxu1 %v2421_v1 }
  0x84   :  { %1194 = vmatpush.bf16.msrb.mxu3 %v2445_v0  ;;  %v2468_v0 = vld [vmem:[#allocation8 + $0x50] sm:$0xff] }
  0x85   :  { %975 = vmatpush.bf16.msrb.mxu0 %v2428_v28 }
  0x86   :  { %1036 = vmatpush.bf16.msrb.mxu1 %v2420_v17  ;;  %v1465_v17 = vld [vmem:[#allocation2 + $0x5] sm:$0x1] }
  0x88   :  { %1195 = vmatpush.bf16.msrb.mxu3 %v2444_v3  ;;  %v2453_v3 = vld [vmem:[%s2849_s9 + $0x18] sm:$0xff] }
  0x8a   :  { %1037 = vmatpush.bf16.msrb.mxu1 %v2419_v22 }
  0x8c   :  { %1196 = vmatpush.bf16.msrb.mxu3 %v2443_v19 }
  0x90   :  { %1197 = vmatpush.bf16.msrb.mxu3 %v2442_v25 }
  0xad   :  { %v181_v29 = vpop.f32.mrf.mxu0 }
  0xae   :  { %v242_v30 = vpop.f32.mrf.mxu1 }
  0xaf   :  { %v243_v31 = vadd.f32 %v242_v30, %v181_v29  ;;  %v2418_v29 = vld [vmem:[#allocation8] sm:$0xff]  ;;  %v1125_v30 = vld [vmem:[%s2841_s1] sm:$0x1] }
  0xb0   :  { %1038 = vmatpush.bf16.msrb.mxu1 %v2418_v29  ;;  %1198 = vmatmul.bf16.vlgmr.msrb.gmra.mxu3 %v1125_v30 }
  0xb5   :  { %v326_v33 = vpop.f32.mrf.mxu2  ;;  %v183_v35 = vpop.f32.mrf.mxu0 }
  0xb6   :  { %v330_v34 = vadd.f32 %v326_v33, %v243_v31  ;;  %v244_v36 = vpop.f32.mrf.mxu1  ;;  %v431_v40 = vpop.f32.mrf.mxu3  ;;  %v885_v31 = vld [vmem:[#allocation2] sm:$0x1]  ;;  %v2427_v33 = vld [vmem:[#allocation8 + $0x48] sm:$0xff]  ;;  %v2473_v35 = vld [vmem:[#allocation8 + $0x78] sm:$0xff] }
  0xb7   :  { %976 = vmatpush.bf16.msrb.mxu0 %v2427_v33  ;;  %v2465_v36 = vld [vmem:[#allocation8 + $0x38] sm:$0xff] }
  0xb8   :  { %v331_v37 = vadd.f32 %v330_v34, %v2718_v32  ;;  %v2426_v34 = vld [vmem:[#allocation8 + $0x40] sm:$0xff] }
  0xba   :  { %v332_v38 = vmax.f32 %v331_v37, 0.0  ;;  %v2481_v37 = vld [vmem:[#allocation8 + $0xb8] sm:$0xff] }
  0xbb   :  { %977 = vmatpush.bf16.msrb.mxu0 %v2426_v34  ;;  %1531 = vmatpush.bf16.msra.mxu3 %v2481_v37  ;;  %v2486_v37 = vld [vmem:[%s2847_s7 + $0x20] sm:$0xff] }
  0xbc   :  { %333 = vst [vmem:[#allocation2 + $0x1] sm:$0x1] %v332_v38  ;;  %v2457_v38 = vld [vmem:[%s2849_s9 + $0x38] sm:$0xff] }
  0xbd   :  { %v328_v39 = vpop.f32.mrf.mxu2 }
  0xbe   :  { %v433_v43 = vpop.f32.mrf.mxu3  ;;  %v2472_v39 = vld [vmem:[#allocation8 + $0x70] sm:$0xff] }
  0xbf   :  { %1273 = vmatpush.bf16.msra.mxu0 %v2457_v38  ;;  %v2471_v43 = vld [vmem:[#allocation8 + $0x68] sm:$0xff] }
  0xc0   :  { %v2485_v38 = vld [vmem:[%s2847_s7 + $0x18] sm:$0xff] }
  0xc3   :  { %v610_v41 = vld [vmem:[#allocation2 + $0x1] sm:$0x1] }
  0xc4   :  { %v611_v42 = vpack.c.bf16 %v610_v41, %v610_v41  ;;  %v2480_v41 = vld [vmem:[#allocation8 + $0xb0] sm:$0xff] }
  0xc5   :  { %1532 = vmatpush.bf16.msra.mxu3 %v2480_v41  ;;  %v2482_v41 = vld [vmem:[%s2847_s7] sm:$0xff] }
  0xc6   :  { %685 = vmatmul.bf16.vlgmr.msrb.gmra.mxu2 %v611_v42  ;;  %v2456_v42 = vld [vmem:[%s2849_s9 + $0x30] sm:$0xff] }
  0xc7   :  { %1111 = vmatpush.bf16.msrb.mxu2 %v2441_v44  ;;  %v2463_v44 = vld [vmem:[#allocation8 + $0x28] sm:$0xff]  ;;  %1274 = vmatpush.bf16.msra.mxu0 %v2456_v42 }
  0xc9   :  { %1533 = vmatpush.bf16.msra.mxu3 %v2479_v55 }
  0xcb   :  { %1112 = vmatpush.bf16.msrb.mxu2 %v2440_v47  ;;  %v2759_v47 = vld [vmem:[%s2845_s5] sm:$0x1]  ;;  %1275 = vmatpush.bf16.msra.mxu0 %v2455_v56 }
  0xcd   :  { %v498_v4 = vpop.f32.mrf.mxu0  ;;  %1534 = vmatpush.bf16.msra.mxu3 %v2478_v61 }
  0xce   :  { %v499_v5 = vadd.f32 %v498_v4, %v431_v40  ;;  %v583_v6 = vpop.f32.mrf.mxu1  ;;  %v2464_v40 = vld [vmem:[#allocation8 + $0x30] sm:$0xff] }
  0xcf   :  { %1113 = vmatpush.bf16.msrb.mxu2 %v2439_v51 }
  0xd0   :  { %v587_v7 = vadd.f32 %v583_v6, %v499_v5  ;;  %v2460_v5 = vld [vmem:[#allocation8 + $0x10] sm:$0xff]  ;;  %v2467_v6 = vld [vmem:[#allocation8 + $0x48] sm:$0xff] }
  0xd2   :  { %v588_v8 = vadd.f32 %v587_v7, %v2718_v32  ;;  %v886_v32 = vpack.c.bf16 %v885_v31, %v885_v31  ;;  %v2476_v7 = vld [vmem:[#allocation8 + $0x90] sm:$0xff] }
  0xd3   :  { %1114 = vmatpush.bf16.msrb.mxu2 %v2438_v58 }
  0xd4   :  { %v589_v10 = vmax.f32 %v588_v8, 0.0  ;;  %v2452_v8 = vld [vmem:[%s2849_s9 + $0x10] sm:$0xff] }
  0xd5   :  { %v500_v9 = vpop.f32.mrf.mxu0 }
  0xd6   :  { %859 = vmatmul.bf16.vlgmr.msra.gmra.mxu2 %v835_v53  ;;  %590 = vst [vmem:[#allocation2 + $0x4] sm:$0x1] %v589_v10  ;;  %v585_v11 = vpop.f32.mrf.mxu1  ;;  %v747_v13 = vpop.f32.mrf.mxu3  ;;  %v2459_v9 = vld [vmem:[#allocation8 + $0x8] sm:$0xff]  ;;  %v2466_v10 = vld [vmem:[#allocation8 + $0x40] sm:$0xff] }
  0xd7   :  { %1115 = vmatpush.bf16.msrb.mxu2 %v2437_v62  ;;  %v2454_v62 = vld [vmem:[%s2849_s9 + $0x20] sm:$0xff] }
  0xd8   :  { %1276 = vmatpush.bf16.msra.mxu0 %v2454_v62  ;;  %v2475_v11 = vld [vmem:[#allocation8 + $0x88] sm:$0xff] }
  0xdb   :  { %1116 = vmatpush.bf16.msrb.mxu2 %v2436_v2  ;;  %v2477_v2 = vld [vmem:[#allocation8 + $0x98] sm:$0xff] }
  0xdc   :  { %1535 = vmatpush.bf16.msra.mxu3 %v2477_v2  ;;  %1277 = vmatpush.bf16.msra.mxu0 %v2453_v3  ;;  %v2492_v2 = vld [vmem:[%s2849_s9 + $0x10] sm:$0xff]  ;;  %v2491_v3 = vld [vmem:[%s2849_s9 + $0x8] sm:$0xff] }
  0xdd   :  { %v836_v12 = vld [vmem:[#allocation2 + $0x4] sm:$0x1] }
  0xde   :  { %v837_v14 = vpack.c.bf16 %v836_v12, %v836_v12  ;;  %v749_v20 = vpop.f32.mrf.mxu3  ;;  %v2451_v12 = vld [vmem:[%s2849_s9 + $0x8] sm:$0xff] }
  0xdf   :  { %1117 = vmatpush.bf16.msrb.mxu2 %v2435_v18  ;;  %v2489_v18 = vld [vmem:[%s2847_s7 + $0x38] sm:$0xff]  ;;  %v1466_v20 = vpack.c.bf16 %v1465_v17, %v1465_v17 }
  0xe0   :  { %846 = vmatmul.bf16.vlgmr.msra.gmra.mxu1 %v837_v14  ;;  %1536 = vmatpush.bf16.msra.mxu3 %v2476_v7  ;;  %v1307_v14 = vld [vmem:[#allocation2 + $0x3] sm:$0x1] }
  0xe1   :  { %1391 = vmatpush.bf16.msra.mxu1 %v2473_v35  ;;  %1278 = vmatpush.bf16.msra.mxu0 %v2452_v8  ;;  %v1308_v19 = vpack.c.bf16 %v1307_v14, %v1307_v14 }
  0xe3   :  { %1118 = vmatpush.bf16.msrb.mxu2 %v2434_v23 }
  0xe4   :  { %1537 = vmatpush.bf16.msra.mxu3 %v2475_v11 }
  0xe5   :  { %1392 = vmatpush.bf16.msra.mxu1 %v2472_v39  ;;  %1279 = vmatpush.bf16.msra.mxu0 %v2451_v12  ;;  %v2484_v39 = vld [vmem:[%s2847_s7 + $0x10] sm:$0xff] }
  0xe6   :  { %1119 = vmatmul.bf16.vlgmr.msrb.gmra.mxu2 %v1045_v27 }
  0xe7   :  { %1452 = vmatpush.bf16.msra.mxu2 %v2465_v36  ;;  %v2487_v36 = vld [vmem:[%s2847_s7 + $0x28] sm:$0xff] }
  0xe9   :  { %1393 = vmatpush.bf16.msra.mxu1 %v2471_v43  ;;  %1280 = vmatpush.bf16.msra.mxu0 %v2450_v16 }
  0xeb   :  { %1453 = vmatpush.bf16.msra.mxu2 %v2464_v40  ;;  %v2483_v40 = vld [vmem:[%s2847_s7 + $0x8] sm:$0xff] }
  0xed   :  { %v827_v15 = vpop.f32.mrf.mxu0  ;;  %1394 = vmatpush.bf16.msra.mxu1 %v2470_v54  ;;  %v2496_v54 = vld [vmem:[%s2849_s9 + $0x30] sm:$0xff] }
  0xef   :  { %1454 = vmatpush.bf16.msra.mxu2 %v2463_v44 }
  0xf0   :  { %1039 = vmatmul.bf16.vlgmr.msrb.gmra.mxu1 %v886_v32  ;;  %v2488_v32 = vld [vmem:[%s2847_s7 + $0x30] sm:$0xff] }
  0xf1   :  { %1395 = vmatpush.bf16.msra.mxu1 %v2469_v60 }
  0xf3   :  { %1455 = vmatpush.bf16.msra.mxu2 %v2462_v59 }
  0xf5   :  { %v829_v24 = vpop.f32.mrf.mxu0  ;;  %1396 = vmatpush.bf16.msra.mxu1 %v2468_v0  ;;  %v2494_v0 = vld [vmem:[%s2849_s9 + $0x20] sm:$0xff] }
  0xf6   :  { %v875_v57 = vpop.f32.mrf.mxu3 }
  0xf7   :  { %1456 = vmatpush.bf16.msra.mxu2 %v2461_v63  ;;  %v2495_v63 = vld [vmem:[%s2849_s9 + $0x28] sm:$0xff] }
  0xf9   :  { %1397 = vmatpush.bf16.msra.mxu1 %v2467_v6 }
  0xfb   :  { %1457 = vmatpush.bf16.msra.mxu2 %v2460_v5  ;;  %v1224_v5 = vld [vmem:[#allocation3] sm:$0x1] }
  0xfd   :  { %1398 = vmatpush.bf16.msra.mxu1 %v2466_v10 }
  0xfe   :  { %v877_v1 = vpop.f32.mrf.mxu3 }
  0xff   :  { %1458 = vmatpush.bf16.msra.mxu2 %v2459_v9  ;;  %v2493_v1 = vld [vmem:[%s2849_s9 + $0x18] sm:$0xff] }
 0x133   :  { %v1199_v31 = vpop.f32.mrf.mxu3 }
 0x13b   :  { %v1201_v35 = vpop.f32.mrf.mxu3 }
 0x149   :  { %v686_v45 = vpop.f32.mrf.mxu2 }
 0x14a   :  { %v748_v46 = vadd.f32 %v747_v13, %v686_v45  ;;  %v2458_v13 = vld [vmem:[#allocation8] sm:$0xff]  ;;  %v884_v45 = vld [vmem:[%s2848_s8] sm:$0x1] }
 0x14b   :  { %1459 = vmatpush.bf16.msra.mxu2 %v2458_v13 }
 0x14c   :  { %v831_v48 = vadd.f32 %v827_v15, %v748_v46  ;;  %v2474_v15 = vld [vmem:[#allocation8 + $0x80] sm:$0xff] }
 0x14d   :  { %1538 = vmatpush.bf16.msra.mxu3 %v2474_v15 }
 0x14e   :  { %v832_v49 = vadd.f32 %v831_v48, %v2759_v47  ;;  %1460 = vmatmul.bf16.vlgmr.msra.gmra.mxu2 %v1308_v19 }
 0x150   :  { %v833_v50 = vmax.f32 %v832_v49, 0.0  ;;  %1539 = vmatmul.bf16.vlgmr.msra.gmra.mxu3 %v1466_v20 }
 0x151   :  { %v688_v51 = vpop.f32.mrf.mxu2 }
 0x152   :  { %882 = vst [vmem:[#allocation2 + $0x1] sm:$0x1] %v833_v50  ;;  %v1564_v51 = vld [vmem:[#allocation1] sm:$0xff] }
 0x159   :  { %v903_v52 = vld [vmem:[#allocation2 + $0x1] sm:$0x1]  ;;  %v860_v58 = vpop.f32.mrf.mxu2 }
 0x15a   :  { %v904_v53 = vpack.c.bf16 %v903_v52, %v903_v52  ;;  %v1565_v52 = vshrl.u32 %v1564_v51, 16 }
 0x15c   :  { %978 = vmatmul.bf16.vlgmr.msrb.gmra.mxu0 %v904_v53  ;;  %v2497_v53 = vld [vmem:[%s2849_s9 + $0x38] sm:$0xff] }
 0x15d   :  { %1616 = vmatpush.bf16.msrb.mxu0 %v2489_v18  ;;  %v847_v21 = vpop.f32.mrf.mxu1  ;;  %1699 = vmatpush.bf16.msrb.mxu1 %v2497_v53 }
 0x15e   :  { %v861_v22 = vadd.f32 %v860_v58, %v847_v21 }
 0x160   :  { %v879_v23 = vadd.f32 %v875_v57, %v861_v22 }
 0x161   :  { %v862_v4 = vpop.f32.mrf.mxu2  ;;  %1617 = vmatpush.bf16.msrb.mxu0 %v2488_v32  ;;  %1700 = vmatpush.bf16.msrb.mxu1 %v2496_v54 }
 0x162   :  { %v880_v24 = vadd.f32 %v879_v23, %v2759_v47  ;;  %v2490_v4 = vld [vmem:[%s2849_s9] sm:$0xff] }
 0x164   :  { %v881_v25 = vmax.f32 %v880_v24, 0.0 }
 0x165   :  { %v849_v26 = vpop.f32.mrf.mxu1  ;;  %1618 = vmatpush.bf16.msrb.mxu0 %v2487_v36  ;;  %1701 = vmatpush.bf16.msrb.mxu1 %v2495_v63 }
 0x166   :  { %883 = vst [vmem:[#allocation2 + $0x4] sm:$0x1] %v881_v25 }
 0x169   :  { %v1120_v30 = vpop.f32.mrf.mxu2  ;;  %1619 = vmatpush.bf16.msrb.mxu0 %v2486_v37  ;;  %1702 = vmatpush.bf16.msrb.mxu1 %v2494_v0 }
 0x16d   :  { %v1325_v27 = vld [vmem:[#allocation2 + $0x4] sm:$0x1]  ;;  %v1040_v28 = vpop.f32.mrf.mxu1  ;;  %1620 = vmatpush.bf16.msrb.mxu0 %v2485_v38  ;;  %1703 = vmatpush.bf16.msrb.mxu1 %v2493_v1 }
 0x16e   :  { %v1326_v29 = vpack.c.bf16 %v1325_v27, %v1325_v27 }
 0x170   :  { %1399 = vmatmul.bf16.vlgmr.msra.gmra.mxu1 %v1326_v29  ;;  %v1650_v29 = vld [vmem:[#allocation3] sm:$0x1] }
 0x171   :  { %v1122_v34 = vpop.f32.mrf.mxu2  ;;  %1621 = vmatpush.bf16.msrb.mxu0 %v2484_v39  ;;  %1704 = vmatpush.bf16.msrb.mxu1 %v2492_v2 }
 0x175   :  { %v1042_v33 = vpop.f32.mrf.mxu1  ;;  %1622 = vmatpush.bf16.msrb.mxu0 %v2483_v40  ;;  %1705 = vmatpush.bf16.msrb.mxu1 %v2491_v3 }
 0x179   :  { %1623 = vmatpush.bf16.msrb.mxu0 %v2482_v41  ;;  %1706 = vmatpush.bf16.msrb.mxu1 %v2490_v4 }
 0x1d1   :  { %v1461_v55 = vpop.f32.mrf.mxu2 }
 0x1d3   :  { %v1540_v56 = vpop.f32.mrf.mxu3 }
 0x1d9   :  { %v979_v42 = vpop.f32.mrf.mxu0  ;;  %v1463_v57 = vpop.f32.mrf.mxu2 }
 0x1da   :  { %v1041_v43 = vadd.f32 %v1040_v28, %v979_v42 }
 0x1db   :  { %v1542_v58 = vpop.f32.mrf.mxu3 }
 0x1dc   :  { %v1124_v44 = vadd.f32 %v1120_v30, %v1041_v43 }
 0x1de   :  { %v1203_v46 = vadd.f32 %v1199_v31, %v1124_v44 }
 0x1e0   :  { %v1204_v47 = vadd.f32 %v1203_v46, %v884_v45 }
 0x1e1   :  { %v981_v48 = vpop.f32.mrf.mxu0 }
 0x1e2   :  { %v1205_v49 = vmax.f32 %v1204_v47, 0.0 }
 0x1e4   :  { %v1207_v50 = vpack.c.bf16 %v1205_v49, %v1205_v49 }
 0x1e6   :  { %1281 = vmatmul.bf16.vlgmr.msra.gmra.mxu0 %v1207_v50 }
 0x1ed   :  { %v1400_v59 = vpop.f32.mrf.mxu1 }
 0x1ee   :  { %v1462_v60 = vadd.f32 %v1461_v55, %v1400_v59 }
 0x1f0   :  { %v1544_v61 = vadd.f32 %v1540_v56, %v1462_v60 }
 0x1f5   :  { %v1402_v62 = vpop.f32.mrf.mxu1 }
 0x1f6   :  { %1624 = vmatmul.bf16.vlgmr.msrb.gmra.mxu0 %v1565_v52 }
 0x263   :  { %v1282_v6 = vpop.f32.mrf.mxu0 }
 0x264   :  { %v1283_v7 = vadd.f32 %v1282_v6, %v1224_v5 }
 0x266   :  { %v1286_v8 = vsub.f32 0.0, %v1283_v7 }
 0x268   :  { %v1287_v9 = vmul.f32 1.442695, %v1286_v8 }
 0x26a   :  { %2504 = vpow2.f32 %v1287_v9 }
 0x26b   :  { %v1284_v10 = vpop.f32.mrf.mxu0 }
 0x270   :  { %v2505_v11 = vpop.eup %2504 }
 0x271   :  { %v1289_v12 = vadd.f32 1.0, %v2505_v11 }
 0x273   :  { %2506 = vrcp.f32 %v1289_v12  ;;  %v1625_v13 = vpop.f32.mrf.mxu0  ;;  %v1301_v22 = vand.u32 2147483648, %v1289_v12  ;;  %v1299_v24 = vand.u32 2147483647, %v1289_v12  ;;  %vm1295_vm1 = vweird.f32 %v1289_v12 }
 0x274   :  { %v1629_v14 = vadd.f32 %v1625_v13, %v1544_v61 }
 0x275   :  { %v1302_v26 = vor.u32 1.1754944e-38, %v1301_v22  ;;  %vm1300_vm4 = vcmp.eq.f32.partialorder %v1299_v24, 8.507059e+37 }
 0x276   :  { %v1630_v15 = vadd.f32 %v1629_v14, %v884_v45 }
 0x278   :  { %v1631_v16 = vmax.f32 %v1630_v15, 0.0 }
 0x279   :  { %v2507_v17 = vpop.eup %2506 }
 0x27a   :  { %v1291_v18 = vmul.f32 %v2507_v17, %v1289_v12  ;;  %v1633_v19 = vpack.c.bf16 %v1631_v16, %v1631_v16  ;;  %vm1296_vm0 = vweird.f32 %v2507_v17 }
 0x27b   :  { %v1627_v20 = vpop.f32.mrf.mxu0  ;;  %vm1297_vm2 = vmor %vm1295_vm1, %vm1296_vm0 }
 0x27c   :  { %v1292_v21 = vsub.f32 1.0, %v1291_v18  ;;  %1707 = vmatmul.bf16.vlgmr.msrb.gmra.mxu1 %v1633_v19 }
 0x27e   :  { %v1293_v23 = vmul.f32 %v2507_v17, %v1292_v21 }
 0x280   :  { %v1294_v25 = vadd.f32 %v2507_v17, %v1293_v23 }
 0x282   :  { %v1298_v27 = vsel %vm1297_vm2, %v2507_v17, %v1294_v25 }
 0x283   :  { %v1303_v28 = vsel %vm1300_vm4, %v1302_v26, %v1298_v27 }
 0x284   :  { %1306 = vst.msk [vmem:[%s2851_s11] sm:$0x1] %vm1305_vm3, %v1303_v28 }
 0x2f9   :  { %v1708_v30 = vpop.f32.mrf.mxu1 }
 0x2fa   :  { %v1709_v31 = vadd.f32 %v1708_v30, %v1650_v29 }
 0x2fc   :  { %v1712_v32 = vsub.f32 0.0, %v1709_v31 }
 0x2fe   :  { %v1713_v33 = vmul.f32 1.442695, %v1712_v32 }
 0x300   :  { %2508 = vpow2.f32 %v1713_v33 }
 0x301   :  { %v1710_v34 = vpop.f32.mrf.mxu1 }
 0x306   :  { %v2509_v35 = vpop.eup %2508 }
 0x307   :  { %v1715_v36 = vadd.f32 1.0, %v2509_v35 }
 0x309   :  { %2510 = vrcp.f32 %v1715_v36  ;;  %v1727_v40 = vand.u32 2147483648, %v1715_v36  ;;  %v1725_v42 = vand.u32 2147483647, %v1715_v36  ;;  %vm1721_vm6 = vweird.f32 %v1715_v36 }
 0x30b   :  { %v1728_v44 = vor.u32 1.1754944e-38, %v1727_v40  ;;  %vm1726_vm8 = vcmp.eq.f32.partialorder %v1725_v42, 8.507059e+37 }
 0x30f   :  { %v2511_v37 = vpop.eup %2510 }
 0x310   :  { %v1717_v38 = vmul.f32 %v2511_v37, %v1715_v36  ;;  %vm1722_vm5 = vweird.f32 %v2511_v37 }
 0x311   :  { %vm1723_vm7 = vmor %vm1721_vm6, %vm1722_vm5 }
 0x312   :  { %v1718_v39 = vsub.f32 1.0, %v1717_v38 }
 0x314   :  { %v1719_v41 = vmul.f32 %v2511_v37, %v1718_v39 }
 0x316   :  { %v1720_v43 = vadd.f32 %v2511_v37, %v1719_v41 }
 0x318   :  { %v1724_v45 = vsel %vm1723_vm7, %v2511_v37, %v1720_v43 }
 0x319   :  { %v1729_v46 = vsel %vm1726_vm8, %v1728_v44, %v1724_v45 }
 0x31a   :  { %1731 = vst.msk [vmem:[%s2851_s11 + $0x1] sm:$0x1] %vm1305_vm3, %v1729_v46 }
 0x31b   :  { %1736 = vsyncpa [#allocation5], 1 }
 0x31c   :  { %1737 = vsyncpa [#allocation7], 1 }

</bundles_post_ra>
